<compile_context>
chip_gen: v7x
topology: tpu7x:2x2x1
jax: 0.10.0
libtpu: 0.0.40
codegen_flags: <defaults>
</compile_context>

<pallas_src>
import math

import jax
import jax.numpy as jnp
from jax import lax
from jax.experimental import pallas as pl
from jax.experimental.pallas import tpu as pltpu

# ----------------------- model config (small, synthetic) -----------------------
IMAGE_SIZE = 16
PATCH_SIZE = 4
IN_CHANNELS = 4
HIDDEN = 32
NUM_HEADS = 4
HEAD_DIM = HIDDEN // NUM_HEADS
MLP_DIM = 64
NUM_LAYERS = 2
NUM_CLASSES = 10
NUM_PATCHES = (IMAGE_SIZE // PATCH_SIZE) ** 2          # 16
SEQ = NUM_PATCHES + 1                                  # 17 (cls token + patches)
SEQ_PAD = 24                                           # next multiple of 8 sublanes
PATCH_DIM = IN_CHANNELS * PATCH_SIZE * PATCH_SIZE      # 64
LN_EPS = 1e-5
OUT_PAD = 128                                          # lane-dense classifier output
# TODO(synk): dropout is implemented as identity (inference / eval mode).

VMEM = pltpu.MemorySpace.VMEM


# ----------------------------- in-kernel helpers --------------------------------
def _layernorm(x, g, b):
    # PyTorch LayerNorm semantics (biased variance); x: (R, D); g, b: (1, D). f32.
    mu = jnp.mean(x, axis=-1, keepdims=True)
    var = jnp.mean((x - mu) ** 2, axis=-1, keepdims=True)
    return (x - mu) * jax.lax.rsqrt(var + LN_EPS) * g + b


def _erf(x):
    # float32-accurate erf (Abramowitz & Stegun 7.1.26, |err| < 1.5e-7).
    a1, a2, a3, a4, a5 = 0.254829592, -0.284496736, 1.421413741, -1.453152027, 1.061405429
    p = 0.3275911
    sgn = jnp.where(x >= 0.0, 1.0, -1.0)
    z = jnp.abs(x)
    t = 1.0 / (1.0 + p * z)          # exact divide kept for GELU fidelity
    poly = ((((a5 * t + a4) * t + a3) * t + a2) * t + a1) * t
    return sgn * (1.0 - poly * jnp.exp(-z * z))


def _gelu_exact(x):
    # nn.GELU() default (erf-based "exact") GELU, f32.
    return 0.5 * x * (1.0 + _erf(x * (1.0 / math.sqrt(2.0))))


# ------------------------------- fused ViT kernel --------------------------------
def _vit_kernel(patches_ref, proj_w_ref, tok_base_ref,
                wq_ref, wk_ref, wv_ref, qb_ref, kb_ref, vb_ref,
                wo_ref, proj_b_ref,
                ln1_g_ref, ln1_b_ref, ln2_g_ref, ln2_b_ref,
                fc1_w_ref, fc1_b_ref, fc2_w_ref, fc2_b_ref,
                norm_g_ref, norm_b_ref, head_w_ref, head_b_ref,
                out_ref):
    # One image per grid step.  Rows: [cls slot | 16 patch rows | 7 pad rows].
    # Patch embedding + cls/pos/conv-bias base (pre-folded in the wrapper).
    emb = jnp.dot(patches_ref[0], proj_w_ref[...],
                  preferred_element_type=jnp.float32)            # (SEQ_PAD, H) f32
    x = emb + tok_base_ref[...]                                  # (SEQ_PAD, H) f32

    # Additive key-padding mask (pad key columns >= SEQ get -1e30), hoisted once.
    key_id = lax.broadcasted_iota(jnp.int32, (1, SEQ_PAD), 1)
    kmask = jnp.where(key_id < SEQ, 0.0, -1e30).astype(jnp.float32)

    for layer in range(NUM_LAYERS):
        # --- attention branch (per-head weights: no lane slicing / transposes) ---
        h = _layernorm(x, ln1_g_ref[layer], ln1_b_ref[layer])
        h_bf = h.astype(jnp.bfloat16)

        attn = jnp.zeros((SEQ_PAD, HIDDEN), jnp.float32)
        for n in range(NUM_HEADS):
            # 1/sqrt(HEAD_DIM) already folded into wq / qb at pack time.
            q = jnp.dot(h_bf, wq_ref[layer, n],
                        preferred_element_type=jnp.float32) + qb_ref[layer, n]
            k = jnp.dot(h_bf, wk_ref[layer, n],
                        preferred_element_type=jnp.float32) + kb_ref[layer, n]
            v = jnp.dot(h_bf, wv_ref[layer, n],
                        preferred_element_type=jnp.float32) + vb_ref[layer, n]
            # scores = q @ k^T via dot_general contracting the HEAD_DIM axis.
            s = lax.dot_general(q.astype(jnp.bfloat16), k.astype(jnp.bfloat16),
                                (((1,), (1,)), ((), ())),
                                preferred_element_type=jnp.float32)   # (S, S)
            s = s + kmask
            s = s - jnp.max(s, axis=-1, keepdims=True)
            e = jnp.exp(s)
            p = e * pl.reciprocal(jnp.sum(e, axis=-1, keepdims=True), approx=True)
            ctx = jnp.dot(p.astype(jnp.bfloat16), v.astype(jnp.bfloat16),
                          preferred_element_type=jnp.float32)         # (S, HD)
            # Per-head output projection slice (HD, H): summing replaces the
            # head re-merge concat entirely.
            attn = attn + jnp.dot(ctx.astype(jnp.bfloat16), wo_ref[layer, n],
                                  preferred_element_type=jnp.float32)
        x = x + attn + proj_b_ref[layer]                              # residual 1

        # --- MLP branch ---
        h2 = _layernorm(x, ln2_g_ref[layer], ln2_b_ref[layer])
        m = jnp.dot(h2.astype(jnp.bfloat16), fc1_w_ref[layer],
                    preferred_element_type=jnp.float32) + fc1_b_ref[layer]
        m = _gelu_exact(m)
        m = jnp.dot(m.astype(jnp.bfloat16), fc2_w_ref[layer],
                    preferred_element_type=jnp.float32) + fc2_b_ref[layer]
        x = x + m                                                     # residual 2

    # ---- final LayerNorm + classifier head on the cls row only (row 0) ----
    cls = x[0:1, :]                                                   # (1, H)
    hf = _layernorm(cls, norm_g_ref[...], norm_b_ref[...])
    logits = jnp.dot(hf.astype(jnp.bfloat16), head_w_ref[...],
                     preferred_element_type=jnp.float32) + head_b_ref[...]  # (1, 128)
    out_ref[0] = logits


# ------------------------------ parameter packing -------------------------------
def _pack_params(params):
    """Glue: split heads / fold softmax scale / stack over layers / cast to bf16."""
    scale = float(HEAD_DIM) ** -0.5

    def heads_w(w):   # (H, H) with out-col = head*HD + d  ->  (NH, H, HD)
        return w.reshape(HIDDEN, NUM_HEADS, HEAD_DIM).transpose(1, 0, 2)

    def heads_b(b):   # (1, H) -> (NH, 1, HD)
        return b.reshape(NUM_HEADS, HEAD_DIM)[:, None, :]

    keys = ("wq", "wk", "wv", "qb", "kb", "vb", "wo", "proj_b",
            "ln1_g", "ln1_b", "ln2_g", "ln2_b", "fc1_w", "fc1_b", "fc2_w", "fc2_b")
    packs = {k: [] for k in keys}
    for blk in params["blocks"]:
        qkv_w, qkv_b = blk["qkv_w"], blk["qkv_b"]
        packs["wq"].append(heads_w(qkv_w[:, :HIDDEN] * scale))            # scale folded
        packs["wk"].append(heads_w(qkv_w[:, HIDDEN:2 * HIDDEN]))
        packs["wv"].append(heads_w(qkv_w[:, 2 * HIDDEN:]))
        packs["qb"].append(heads_b(qkv_b[:, :HIDDEN] * scale))            # scale folded
        packs["kb"].append(heads_b(qkv_b[:, HIDDEN:2 * HIDDEN]))
        packs["vb"].append(heads_b(qkv_b[:, 2 * HIDDEN:]))
        packs["wo"].append(blk["proj_w"].reshape(NUM_HEADS, HEAD_DIM, HIDDEN))
        for k in ("proj_b", "ln1_g", "ln1_b", "ln2_g", "ln2_b",
                  "fc1_w", "fc1_b", "fc2_w", "fc2_b"):
            packs[k].append(blk[k])
    stacked = {k: jnp.stack(v) for k, v in packs.items()}
    for k in ("wq", "wk", "wv", "wo", "fc1_w", "fc2_w"):                  # MXU operands
        stacked[k] = stacked[k].astype(jnp.bfloat16)
    return stacked


# --------------------------------- full forward ---------------------------------
def vit_forward(x_nchw, params):
    B = x_nchw.shape[0]
    P = PATCH_SIZE
    g = IMAGE_SIZE // P

    # Glue: NCHW -> (B, SEQ_PAD, C*P*P) patch rows with (c, kh, kw) ordering
    # (matches Conv2d weight flattening); row 0 is the cls slot, tail is pad.
    patches = x_nchw.reshape(B, IN_CHANNELS, g, P, g, P)
    patches = patches.transpose(0, 2, 4, 1, 3, 5).reshape(B, NUM_PATCHES, PATCH_DIM)
    patches = jnp.concatenate(
        [jnp.zeros((B, 1, PATCH_DIM), jnp.float32),
         patches,
         jnp.zeros((B, SEQ_PAD - SEQ, PATCH_DIM), jnp.float32)], axis=1)
    patches_bf = patches.astype(jnp.bfloat16)

    # Glue: fold cls token, positional embedding and conv bias into one base.
    pos = params["pos_embed"][0]                                   # (SEQ, H)
    row0 = params["cls_token"].reshape(1, HIDDEN) + pos[0:1]
    rows = pos[1:SEQ] + params["proj_b"]
    tok_base = jnp.concatenate(
        [row0, rows, jnp.zeros((SEQ_PAD - SEQ, HIDDEN), jnp.float32)], axis=0)

    packed = _pack_params(params)
    proj_w_bf = params["proj_w"].astype(jnp.bfloat16)
    head_w_pad = jnp.pad(params["head_w"],
                         ((0, 0), (0, OUT_PAD - NUM_CLASSES))).astype(jnp.bfloat16)
    head_b_pad = jnp.pad(params["head_b"], ((0, 0), (0, OUT_PAD - NUM_CLASSES)))

    operands = (
        patches_bf, proj_w_bf, tok_base,
        packed["wq"], packed["wk"], packed["wv"],
        packed["qb"], packed["kb"], packed["vb"],
        packed["wo"], packed["proj_b"],
        packed["ln1_g"], packed["ln1_b"], packed["ln2_g"], packed["ln2_b"],
        packed["fc1_w"], packed["fc1_b"], packed["fc2_w"], packed["fc2_b"],
        params["norm_g"], params["norm_b"], head_w_pad, head_b_pad,
    )

    def _resident_spec(shape):
        zeros = (0,) * len(shape)
        return pl.BlockSpec(shape, lambda b: zeros, memory_space=VMEM)

    in_specs = [pl.BlockSpec((1, SEQ_PAD, PATCH_DIM), lambda b: (b, 0, 0),
                             memory_space=VMEM)]
    in_specs += [_resident_spec(a.shape) for a in operands[1:]]

    out = pl.pallas_call(
        _vit_kernel,
        out_shape=jax.ShapeDtypeStruct((B, 1, OUT_PAD), jnp.float32),
        grid_spec=pltpu.PrefetchScalarGridSpec(
            num_scalar_prefetch=0,
            grid=(B,),
            in_specs=in_specs,
            out_specs=pl.BlockSpec((1, 1, OUT_PAD), lambda b: (b, 0, 0),
                                   memory_space=VMEM)),
        compiler_params=pltpu.CompilerParams(
            dimension_semantics=("parallel",)),    # v7x: one image per TensorCore
    )(*operands)
    return out.reshape(B, OUT_PAD)[:, :NUM_CLASSES]


# ----------------------------- deterministic params -----------------------------
def init_params(key):
    keys = jax.random.split(key, 4 + NUM_LAYERS)

    def nrm(k, shape, std=0.02):
        return (std * jax.random.normal(k, shape)).astype(jnp.float32)

    params = {
        # Conv weight (hidden, C, P, P) stored pre-flattened/transposed as (C*P*P, hidden).
        "proj_w": nrm(keys[0], (PATCH_DIM, HIDDEN)),
        "proj_b": jnp.zeros((1, HIDDEN), jnp.float32),
        "cls_token": nrm(keys[1], (1, 1, HIDDEN), std=1.0),
        "pos_embed": nrm(keys[2], (1, SEQ, HIDDEN), std=1.0),
        "norm_g": jnp.ones((1, HIDDEN), jnp.float32),
        "norm_b": jnp.zeros((1, HIDDEN), jnp.float32),
        "head_w": nrm(keys[3], (HIDDEN, NUM_CLASSES)),
        "head_b": jnp.zeros((1, NUM_CLASSES), jnp.float32),
        "blocks": [],
    }
    for layer in range(NUM_LAYERS):
        bk = jax.random.split(keys[4 + layer], 4)
        params["blocks"].append({
            "ln1_g": jnp.ones((1, HIDDEN), jnp.float32),
            "ln1_b": jnp.zeros((1, HIDDEN), jnp.float32),
            "qkv_w": nrm(bk[0], (HIDDEN, 3 * HIDDEN)),
            "qkv_b": jnp.zeros((1, 3 * HIDDEN), jnp.float32),
            "proj_w": nrm(bk[1], (HIDDEN, HIDDEN)),
            "proj_b": jnp.zeros((1, HIDDEN), jnp.float32),
            "ln2_g": jnp.ones((1, HIDDEN), jnp.float32),
            "ln2_b": jnp.zeros((1, HIDDEN), jnp.float32),
            "fc1_w": nrm(bk[2], (HIDDEN, MLP_DIM)),
            "fc1_b": jnp.zeros((1, MLP_DIM), jnp.float32),
            "fc2_w": nrm(bk[3], (MLP_DIM, HIDDEN)),
            "fc2_b": jnp.zeros((1, HIDDEN), jnp.float32),
        })
    return params


if __name__ == "__main__":
    key = jax.random.PRNGKey(0)
    pkey, xkey = jax.random.split(key)
    params = init_params(pkey)
    x = jax.random.normal(
        xkey, (2, IN_CHANNELS, IMAGE_SIZE, IMAGE_SIZE), dtype=jnp.float32
    )  # NCHW, matching the PyTorch module's input convention.

    logits = jax.jit(vit_forward)(x, params)
    jax.block_until_ready(logits)
    assert logits.shape == (2, NUM_CLASSES)
    assert bool(jnp.all(jnp.isfinite(logits)))
    print("KERNEL_OK")
</pallas_src>

<mosaic_0001>
module attributes {stable_mosaic.version = 11 : i64} {
  func.func @_vit_kernel(%arg0: i32, %arg1: memref<1x24x64xbf16, #tpu.memory_space<vmem>>, %arg2: memref<64x32xbf16, #tpu.memory_space<vmem>>, %arg3: memref<24x32xf32, #tpu.memory_space<vmem>>, %arg4: memref<2x4x32x8xbf16, #tpu.memory_space<vmem>>, %arg5: memref<2x4x32x8xbf16, #tpu.memory_space<vmem>>, %arg6: memref<2x4x32x8xbf16, #tpu.memory_space<vmem>>, %arg7: memref<2x4x1x8xf32, #tpu.memory_space<vmem>>, %arg8: memref<2x4x1x8xf32, #tpu.memory_space<vmem>>, %arg9: memref<2x4x1x8xf32, #tpu.memory_space<vmem>>, %arg10: memref<2x4x8x32xbf16, #tpu.memory_space<vmem>>, %arg11: memref<2x1x32xf32, #tpu.memory_space<vmem>>, %arg12: memref<2x1x32xf32, #tpu.memory_space<vmem>>, %arg13: memref<2x1x32xf32, #tpu.memory_space<vmem>>, %arg14: memref<2x1x32xf32, #tpu.memory_space<vmem>>, %arg15: memref<2x1x32xf32, #tpu.memory_space<vmem>>, %arg16: memref<2x32x64xbf16, #tpu.memory_space<vmem>>, %arg17: memref<2x1x64xf32, #tpu.memory_space<vmem>>, %arg18: memref<2x64x32xbf16, #tpu.memory_space<vmem>>, %arg19: memref<2x1x32xf32, #tpu.memory_space<vmem>>, %arg20: memref<1x32xf32, #tpu.memory_space<vmem>>, %arg21: memref<1x32xf32, #tpu.memory_space<vmem>>, %arg22: memref<32x128xbf16, #tpu.memory_space<vmem>>, %arg23: memref<1x128xf32, #tpu.memory_space<vmem>>, %arg24: memref<1x1x128xf32, #tpu.memory_space<vmem>>) attributes {dimension_semantics = [#tpu.dimension_semantics<parallel>], iteration_bounds = array<i64: 2>, scalar_prefetch = 0 : i64, scratch_operands = 0 : i64, tpu.core_type = #tpu.core_type<tc>, window_params = [{transform_indices = @transform_0, window_bounds = array<i64: 1, 24, 64>}, {pipeline_mode = #tpu.pipeline_mode<synchronous>, transform_indices = @transform_1, window_bounds = array<i64: 64, 32>}, {pipeline_mode = #tpu.pipeline_mode<synchronous>, transform_indices = @transform_2, window_bounds = array<i64: 24, 32>}, {pipeline_mode = #tpu.pipeline_mode<synchronous>, transform_indices = @transform_3, window_bounds = array<i64: 2, 4, 32, 8>}, {pipeline_mode = #tpu.pipeline_mode<synchronous>, transform_indices = @transform_4, window_bounds = array<i64: 2, 4, 32, 8>}, {pipeline_mode = #tpu.pipeline_mode<synchronous>, transform_indices = @transform_5, window_bounds = array<i64: 2, 4, 32, 8>}, {pipeline_mode = #tpu.pipeline_mode<synchronous>, transform_indices = @transform_6, window_bounds = array<i64: 2, 4, 1, 8>}, {pipeline_mode = #tpu.pipeline_mode<synchronous>, transform_indices = @transform_7, window_bounds = array<i64: 2, 4, 1, 8>}, {pipeline_mode = #tpu.pipeline_mode<synchronous>, transform_indices = @transform_8, window_bounds = array<i64: 2, 4, 1, 8>}, {pipeline_mode = #tpu.pipeline_mode<synchronous>, transform_indices = @transform_9, window_bounds = array<i64: 2, 4, 8, 32>}, {pipeline_mode = #tpu.pipeline_mode<synchronous>, transform_indices = @transform_10, window_bounds = array<i64: 2, 1, 32>}, {pipeline_mode = #tpu.pipeline_mode<synchronous>, transform_indices = @transform_11, window_bounds = array<i64: 2, 1, 32>}, {pipeline_mode = #tpu.pipeline_mode<synchronous>, transform_indices = @transform_12, window_bounds = array<i64: 2, 1, 32>}, {pipeline_mode = #tpu.pipeline_mode<synchronous>, transform_indices = @transform_13, window_bounds = array<i64: 2, 1, 32>}, {pipeline_mode = #tpu.pipeline_mode<synchronous>, transform_indices = @transform_14, window_bounds = array<i64: 2, 1, 32>}, {pipeline_mode = #tpu.pipeline_mode<synchronous>, transform_indices = @transform_15, window_bounds = array<i64: 2, 32, 64>}, {pipeline_mode = #tpu.pipeline_mode<synchronous>, transform_indices = @transform_16, window_bounds = array<i64: 2, 1, 64>}, {pipeline_mode = #tpu.pipeline_mode<synchronous>, transform_indices = @transform_17, window_bounds = array<i64: 2, 64, 32>}, {pipeline_mode = #tpu.pipeline_mode<synchronous>, transform_indices = @transform_18, window_bounds = array<i64: 2, 1, 32>}, {pipeline_mode = #tpu.pipeline_mode<synchronous>, transform_indices = @transform_19, window_bounds = array<i64: 1, 32>}, {pipeline_mode = #tpu.pipeline_mode<synchronous>, transform_indices = @transform_20, window_bounds = array<i64: 1, 32>}, {pipeline_mode = #tpu.pipeline_mode<synchronous>, transform_indices = @transform_21, window_bounds = array<i64: 32, 128>}, {pipeline_mode = #tpu.pipeline_mode<synchronous>, transform_indices = @transform_22, window_bounds = array<i64: 1, 128>}, {transform_indices = @transform_23, window_bounds = array<i64: 1, 1, 128>}]} {
    %c0 = arith.constant 0 : index
    %c0_0 = arith.constant 0 : index
    %c0_1 = arith.constant 0 : index
    %0 = vector.load %arg1[%c0, %c0_0, %c0_1] : memref<1x24x64xbf16, #tpu.memory_space<vmem>>, vector<1x24x64xbf16>
    %1 = vector.shape_cast %0 : vector<1x24x64xbf16> to vector<24x64xbf16>
    %c0_2 = arith.constant 0 : index
    %c0_3 = arith.constant 0 : index
    %2 = vector.load %arg2[%c0_2, %c0_3] : memref<64x32xbf16, #tpu.memory_space<vmem>>, vector<64x32xbf16>
    %cst = arith.constant dense<0.000000e+00> : vector<24x32xf32>
    %3 = tpu.matmul %1, %2, %cst {dimension_numbers = #tpu.dot_dimension_numbers<[1], [0], [0], [1], [0, 0, 1, 1], [], []>} : vector<24x64xbf16>, vector<64x32xbf16>, vector<24x32xf32> -> vector<24x32xf32>
    %c0_4 = arith.constant 0 : index
    %c0_5 = arith.constant 0 : index
    %4 = vector.load %arg3[%c0_4, %c0_5] : memref<24x32xf32, #tpu.memory_space<vmem>>, vector<24x32xf32>
    %5 = arith.addf %3, %4 : vector<24x32xf32>
    %6 = tpu.iota {dimensions = array<i32: 1>} : vector<1x24xi32>
    %c17_i32 = arith.constant 17 : i32
    %7 = vector.broadcast %c17_i32 : i32 to vector<1x24xi32>
    %8 = arith.cmpi slt, %6, %7 : vector<1x24xi32>
    %cst_6 = arith.constant 0.000000e+00 : f32
    %cst_7 = arith.constant -1.000000e+30 : f32
    %9 = vector.broadcast %cst_6 : f32 to vector<1x24xf32>
    %10 = vector.broadcast %cst_7 : f32 to vector<1x24xf32>
    %11 = arith.select %8, %9, %10 : vector<1x24xi1>, vector<1x24xf32>
    %c0_8 = arith.constant 0 : index
    %c0_9 = arith.constant 0 : index
    %c0_10 = arith.constant 0 : index
    %12 = vector.load %arg12[%c0_8, %c0_9, %c0_10] : memref<2x1x32xf32, #tpu.memory_space<vmem>>, vector<1x1x32xf32>
    %13 = vector.shape_cast %12 : vector<1x1x32xf32> to vector<1x32xf32>
    %c0_11 = arith.constant 0 : index
    %c0_12 = arith.constant 0 : index
    %c0_13 = arith.constant 0 : index
    %14 = vector.load %arg13[%c0_11, %c0_12, %c0_13] : memref<2x1x32xf32, #tpu.memory_space<vmem>>, vector<1x1x32xf32>
    %15 = vector.shape_cast %14 : vector<1x1x32xf32> to vector<1x32xf32>
    %cst_14 = arith.constant dense<0.000000e+00> : vector<24xf32>
    %16 = vector.multi_reduction <add>, %5, %cst_14 [1] : vector<24x32xf32> to vector<24xf32>
    %17 = vector.shape_cast %16 : vector<24xf32> to vector<24x1xf32>
    %cst_15 = arith.constant 3.200000e+01 : f32
    %18 = vector.broadcast %cst_15 : f32 to vector<24x1xf32>
    %19 = arith.divf %17, %18 : vector<24x1xf32>
    %20 = vector.broadcast %19 : vector<24x1xf32> to vector<24x32xf32>
    %21 = arith.subf %5, %20 : vector<24x32xf32>
    %22 = arith.mulf %21, %21 : vector<24x32xf32>
    %cst_16 = arith.constant dense<0.000000e+00> : vector<24xf32>
    %23 = vector.multi_reduction <add>, %22, %cst_16 [1] : vector<24x32xf32> to vector<24xf32>
    %24 = vector.shape_cast %23 : vector<24xf32> to vector<24x1xf32>
    %cst_17 = arith.constant 3.200000e+01 : f32
    %25 = vector.broadcast %cst_17 : f32 to vector<24x1xf32>
    %26 = arith.divf %24, %25 : vector<24x1xf32>
    %27 = vector.broadcast %19 : vector<24x1xf32> to vector<24x32xf32>
    %28 = arith.subf %5, %27 : vector<24x32xf32>
    %cst_18 = arith.constant 9.99999974E-6 : f32
    %29 = vector.broadcast %cst_18 : f32 to vector<24x1xf32>
    %30 = arith.addf %26, %29 : vector<24x1xf32>
    %31 = math.rsqrt %30 : vector<24x1xf32>
    %32 = vector.broadcast %31 : vector<24x1xf32> to vector<24x32xf32>
    %33 = arith.mulf %28, %32 : vector<24x32xf32>
    %34 = vector.broadcast %13 : vector<1x32xf32> to vector<24x32xf32>
    %35 = arith.mulf %33, %34 : vector<24x32xf32>
    %36 = vector.broadcast %15 : vector<1x32xf32> to vector<24x32xf32>
    %37 = arith.addf %35, %36 : vector<24x32xf32>
    %38 = arith.truncf %37 : vector<24x32xf32> to vector<24x32xbf16>
    %cst_19 = arith.constant 0.000000e+00 : f32
    %39 = vector.broadcast %cst_19 : f32 to vector<24x32xf32>
    %c0_20 = arith.constant 0 : index
    %c0_21 = arith.constant 0 : index
    %c0_22 = arith.constant 0 : index
    %c0_23 = arith.constant 0 : index
    %40 = vector.load %arg4[%c0_20, %c0_21, %c0_22, %c0_23] : memref<2x4x32x8xbf16, #tpu.memory_space<vmem>>, vector<1x1x32x8xbf16>
    %41 = vector.shape_cast %40 : vector<1x1x32x8xbf16> to vector<32x8xbf16>
    %cst_24 = arith.constant dense<0.000000e+00> : vector<24x8xf32>
    %42 = tpu.matmul %38, %41, %cst_24 {dimension_numbers = #tpu.dot_dimension_numbers<[1], [0], [0], [1], [0, 0, 1, 1], [], []>} : vector<24x32xbf16>, vector<32x8xbf16>, vector<24x8xf32> -> vector<24x8xf32>
    %c0_25 = arith.constant 0 : index
    %c0_26 = arith.constant 0 : index
    %c0_27 = arith.constant 0 : index
    %c0_28 = arith.constant 0 : index
    %43 = vector.load %arg7[%c0_25, %c0_26, %c0_27, %c0_28] : memref<2x4x1x8xf32, #tpu.memory_space<vmem>>, vector<1x1x1x8xf32>
    %44 = vector.shape_cast %43 : vector<1x1x1x8xf32> to vector<1x8xf32>
    %45 = vector.broadcast %44 : vector<1x8xf32> to vector<24x8xf32>
    %46 = arith.addf %42, %45 : vector<24x8xf32>
    %c0_29 = arith.constant 0 : index
    %c0_30 = arith.constant 0 : index
    %c0_31 = arith.constant 0 : index
    %c0_32 = arith.constant 0 : index
    %47 = vector.load %arg5[%c0_29, %c0_30, %c0_31, %c0_32] : memref<2x4x32x8xbf16, #tpu.memory_space<vmem>>, vector<1x1x32x8xbf16>
    %48 = vector.shape_cast %47 : vector<1x1x32x8xbf16> to vector<32x8xbf16>
    %cst_33 = arith.constant dense<0.000000e+00> : vector<24x8xf32>
    %49 = tpu.matmul %38, %48, %cst_33 {dimension_numbers = #tpu.dot_dimension_numbers<[1], [0], [0], [1], [0, 0, 1, 1], [], []>} : vector<24x32xbf16>, vector<32x8xbf16>, vector<24x8xf32> -> vector<24x8xf32>
    %c0_34 = arith.constant 0 : index
    %c0_35 = arith.constant 0 : index
    %c0_36 = arith.constant 0 : index
    %c0_37 = arith.constant 0 : index
    %50 = vector.load %arg8[%c0_34, %c0_35, %c0_36, %c0_37] : memref<2x4x1x8xf32, #tpu.memory_space<vmem>>, vector<1x1x1x8xf32>
    %51 = vector.shape_cast %50 : vector<1x1x1x8xf32> to vector<1x8xf32>
    %52 = vector.broadcast %51 : vector<1x8xf32> to vector<24x8xf32>
    %53 = arith.addf %49, %52 : vector<24x8xf32>
    %c0_38 = arith.constant 0 : index
    %c0_39 = arith.constant 0 : index
    %c0_40 = arith.constant 0 : index
    %c0_41 = arith.constant 0 : index
    %54 = vector.load %arg6[%c0_38, %c0_39, %c0_40, %c0_41] : memref<2x4x32x8xbf16, #tpu.memory_space<vmem>>, vector<1x1x32x8xbf16>
    %55 = vector.shape_cast %54 : vector<1x1x32x8xbf16> to vector<32x8xbf16>
    %cst_42 = arith.constant dense<0.000000e+00> : vector<24x8xf32>
    %56 = tpu.matmul %38, %55, %cst_42 {dimension_numbers = #tpu.dot_dimension_numbers<[1], [0], [0], [1], [0, 0, 1, 1], [], []>} : vector<24x32xbf16>, vector<32x8xbf16>, vector<24x8xf32> -> vector<24x8xf32>
    %c0_43 = arith.constant 0 : index
    %c0_44 = arith.constant 0 : index
    %c0_45 = arith.constant 0 : index
    %c0_46 = arith.constant 0 : index
    %57 = vector.load %arg9[%c0_43, %c0_44, %c0_45, %c0_46] : memref<2x4x1x8xf32, #tpu.memory_space<vmem>>, vector<1x1x1x8xf32>
    %58 = vector.shape_cast %57 : vector<1x1x1x8xf32> to vector<1x8xf32>
    %59 = vector.broadcast %58 : vector<1x8xf32> to vector<24x8xf32>
    %60 = arith.addf %56, %59 : vector<24x8xf32>
    %61 = arith.truncf %46 : vector<24x8xf32> to vector<24x8xbf16>
    %62 = arith.truncf %53 : vector<24x8xf32> to vector<24x8xbf16>
    %cst_47 = arith.constant dense<0.000000e+00> : vector<24x24xf32>
    %63 = tpu.matmul %61, %62, %cst_47 {dimension_numbers = #tpu.dot_dimension_numbers<[1], [1], [0], [0], [0, 0, 1, 0], [], []>} : vector<24x8xbf16>, vector<24x8xbf16>, vector<24x24xf32> -> vector<24x24xf32>
    %64 = vector.broadcast %11 : vector<1x24xf32> to vector<24x24xf32>
    %65 = arith.addf %63, %64 : vector<24x24xf32>
    %cst_48 = arith.constant dense<0xFF800000> : vector<24xf32>
    %66 = vector.multi_reduction <maximumf>, %65, %cst_48 [1] : vector<24x24xf32> to vector<24xf32>
    %67 = vector.shape_cast %66 : vector<24xf32> to vector<24x1xf32>
    %68 = vector.broadcast %67 : vector<24x1xf32> to vector<24x24xf32>
    %69 = arith.subf %65, %68 : vector<24x24xf32>
    %70 = math.exp %69 : vector<24x24xf32>
    %cst_49 = arith.constant dense<0.000000e+00> : vector<24xf32>
    %71 = vector.multi_reduction <add>, %70, %cst_49 [1] : vector<24x24xf32> to vector<24xf32>
    %72 = vector.shape_cast %71 : vector<24xf32> to vector<24x1xf32>
    %73 = tpu.reciprocal %72 {approx = true} : vector<24x1xf32> -> vector<24x1xf32>
    %74 = vector.broadcast %73 : vector<24x1xf32> to vector<24x24xf32>
    %75 = arith.mulf %70, %74 : vector<24x24xf32>
    %76 = arith.truncf %75 : vector<24x24xf32> to vector<24x24xbf16>
    %77 = arith.truncf %60 : vector<24x8xf32> to vector<24x8xbf16>
    %cst_50 = arith.constant dense<0.000000e+00> : vector<24x8xf32>
    %78 = tpu.matmul %76, %77, %cst_50 {dimension_numbers = #tpu.dot_dimension_numbers<[1], [0], [0], [1], [0, 0, 1, 1], [], []>} : vector<24x24xbf16>, vector<24x8xbf16>, vector<24x8xf32> -> vector<24x8xf32>
    %79 = arith.truncf %78 : vector<24x8xf32> to vector<24x8xbf16>
    %c0_51 = arith.constant 0 : index
    %c0_52 = arith.constant 0 : index
    %c0_53 = arith.constant 0 : index
    %c0_54 = arith.constant 0 : index
    %80 = vector.load %arg10[%c0_51, %c0_52, %c0_53, %c0_54] : memref<2x4x8x32xbf16, #tpu.memory_space<vmem>>, vector<1x1x8x32xbf16>
    %81 = vector.shape_cast %80 : vector<1x1x8x32xbf16> to vector<8x32xbf16>
    %cst_55 = arith.constant dense<0.000000e+00> : vector<24x32xf32>
    %82 = tpu.matmul %79, %81, %cst_55 {dimension_numbers = #tpu.dot_dimension_numbers<[1], [0], [0], [1], [0, 0, 1, 1], [], []>} : vector<24x8xbf16>, vector<8x32xbf16>, vector<24x32xf32> -> vector<24x32xf32>
    %83 = arith.addf %39, %82 : vector<24x32xf32>
    %c0_56 = arith.constant 0 : index
    %c1 = arith.constant 1 : index
    %c0_57 = arith.constant 0 : index
    %c0_58 = arith.constant 0 : index
    %84 = vector.load %arg4[%c0_56, %c1, %c0_57, %c0_58] : memref<2x4x32x8xbf16, #tpu.memory_space<vmem>>, vector<1x1x32x8xbf16>
    %85 = vector.shape_cast %84 : vector<1x1x32x8xbf16> to vector<32x8xbf16>
    %cst_59 = arith.constant dense<0.000000e+00> : vector<24x8xf32>
    %86 = tpu.matmul %38, %85, %cst_59 {dimension_numbers = #tpu.dot_dimension_numbers<[1], [0], [0], [1], [0, 0, 1, 1], [], []>} : vector<24x32xbf16>, vector<32x8xbf16>, vector<24x8xf32> -> vector<24x8xf32>
    %c0_60 = arith.constant 0 : index
    %c1_61 = arith.constant 1 : index
    %c0_62 = arith.constant 0 : index
    %c0_63 = arith.constant 0 : index
    %87 = vector.load %arg7[%c0_60, %c1_61, %c0_62, %c0_63] : memref<2x4x1x8xf32, #tpu.memory_space<vmem>>, vector<1x1x1x8xf32>
    %88 = vector.shape_cast %87 : vector<1x1x1x8xf32> to vector<1x8xf32>
    %89 = vector.broadcast %88 : vector<1x8xf32> to vector<24x8xf32>
    %90 = arith.addf %86, %89 : vector<24x8xf32>
    %c0_64 = arith.constant 0 : index
    %c1_65 = arith.constant 1 : index
    %c0_66 = arith.constant 0 : index
    %c0_67 = arith.constant 0 : index
    %91 = vector.load %arg5[%c0_64, %c1_65, %c0_66, %c0_67] : memref<2x4x32x8xbf16, #tpu.memory_space<vmem>>, vector<1x1x32x8xbf16>
    %92 = vector.shape_cast %91 : vector<1x1x32x8xbf16> to vector<32x8xbf16>
    %cst_68 = arith.constant dense<0.000000e+00> : vector<24x8xf32>
    %93 = tpu.matmul %38, %92, %cst_68 {dimension_numbers = #tpu.dot_dimension_numbers<[1], [0], [0], [1], [0, 0, 1, 1], [], []>} : vector<24x32xbf16>, vector<32x8xbf16>, vector<24x8xf32> -> vector<24x8xf32>
    %c0_69 = arith.constant 0 : index
    %c1_70 = arith.constant 1 : index
    %c0_71 = arith.constant 0 : index
    %c0_72 = arith.constant 0 : index
    %94 = vector.load %arg8[%c0_69, %c1_70, %c0_71, %c0_72] : memref<2x4x1x8xf32, #tpu.memory_space<vmem>>, vector<1x1x1x8xf32>
    %95 = vector.shape_cast %94 : vector<1x1x1x8xf32> to vector<1x8xf32>
    %96 = vector.broadcast %95 : vector<1x8xf32> to vector<24x8xf32>
    %97 = arith.addf %93, %96 : vector<24x8xf32>
    %c0_73 = arith.constant 0 : index
    %c1_74 = arith.constant 1 : index
    %c0_75 = arith.constant 0 : index
    %c0_76 = arith.constant 0 : index
    %98 = vector.load %arg6[%c0_73, %c1_74, %c0_75, %c0_76] : memref<2x4x32x8xbf16, #tpu.memory_space<vmem>>, vector<1x1x32x8xbf16>
    %99 = vector.shape_cast %98 : vector<1x1x32x8xbf16> to vector<32x8xbf16>
    %cst_77 = arith.constant dense<0.000000e+00> : vector<24x8xf32>
    %100 = tpu.matmul %38, %99, %cst_77 {dimension_numbers = #tpu.dot_dimension_numbers<[1], [0], [0], [1], [0, 0, 1, 1], [], []>} : vector<24x32xbf16>, vector<32x8xbf16>, vector<24x8xf32> -> vector<24x8xf32>
    %c0_78 = arith.constant 0 : index
    %c1_79 = arith.constant 1 : index
    %c0_80 = arith.constant 0 : index
    %c0_81 = arith.constant 0 : index
    %101 = vector.load %arg9[%c0_78, %c1_79, %c0_80, %c0_81] : memref<2x4x1x8xf32, #tpu.memory_space<vmem>>, vector<1x1x1x8xf32>
    %102 = vector.shape_cast %101 : vector<1x1x1x8xf32> to vector<1x8xf32>
    %103 = vector.broadcast %102 : vector<1x8xf32> to vector<24x8xf32>
    %104 = arith.addf %100, %103 : vector<24x8xf32>
    %105 = arith.truncf %90 : vector<24x8xf32> to vector<24x8xbf16>
    %106 = arith.truncf %97 : vector<24x8xf32> to vector<24x8xbf16>
    %cst_82 = arith.constant dense<0.000000e+00> : vector<24x24xf32>
    %107 = tpu.matmul %105, %106, %cst_82 {dimension_numbers = #tpu.dot_dimension_numbers<[1], [1], [0], [0], [0, 0, 1, 0], [], []>} : vector<24x8xbf16>, vector<24x8xbf16>, vector<24x24xf32> -> vector<24x24xf32>
    %108 = vector.broadcast %11 : vector<1x24xf32> to vector<24x24xf32>
    %109 = arith.addf %107, %108 : vector<24x24xf32>
    %cst_83 = arith.constant dense<0xFF800000> : vector<24xf32>
    %110 = vector.multi_reduction <maximumf>, %109, %cst_83 [1] : vector<24x24xf32> to vector<24xf32>
    %111 = vector.shape_cast %110 : vector<24xf32> to vector<24x1xf32>
    %112 = vector.broadcast %111 : vector<24x1xf32> to vector<24x24xf32>
    %113 = arith.subf %109, %112 : vector<24x24xf32>
    %114 = math.exp %113 : vector<24x24xf32>
    %cst_84 = arith.constant dense<0.000000e+00> : vector<24xf32>
    %115 = vector.multi_reduction <add>, %114, %cst_84 [1] : vector<24x24xf32> to vector<24xf32>
    %116 = vector.shape_cast %115 : vector<24xf32> to vector<24x1xf32>
    %117 = tpu.reciprocal %116 {approx = true} : vector<24x1xf32> -> vector<24x1xf32>
    %118 = vector.broadcast %117 : vector<24x1xf32> to vector<24x24xf32>
    %119 = arith.mulf %114, %118 : vector<24x24xf32>
    %120 = arith.truncf %119 : vector<24x24xf32> to vector<24x24xbf16>
    %121 = arith.truncf %104 : vector<24x8xf32> to vector<24x8xbf16>
    %cst_85 = arith.constant dense<0.000000e+00> : vector<24x8xf32>
    %122 = tpu.matmul %120, %121, %cst_85 {dimension_numbers = #tpu.dot_dimension_numbers<[1], [0], [0], [1], [0, 0, 1, 1], [], []>} : vector<24x24xbf16>, vector<24x8xbf16>, vector<24x8xf32> -> vector<24x8xf32>
    %123 = arith.truncf %122 : vector<24x8xf32> to vector<24x8xbf16>
    %c0_86 = arith.constant 0 : index
    %c1_87 = arith.constant 1 : index
    %c0_88 = arith.constant 0 : index
    %c0_89 = arith.constant 0 : index
    %124 = vector.load %arg10[%c0_86, %c1_87, %c0_88, %c0_89] : memref<2x4x8x32xbf16, #tpu.memory_space<vmem>>, vector<1x1x8x32xbf16>
    %125 = vector.shape_cast %124 : vector<1x1x8x32xbf16> to vector<8x32xbf16>
    %cst_90 = arith.constant dense<0.000000e+00> : vector<24x32xf32>
    %126 = tpu.matmul %123, %125, %cst_90 {dimension_numbers = #tpu.dot_dimension_numbers<[1], [0], [0], [1], [0, 0, 1, 1], [], []>} : vector<24x8xbf16>, vector<8x32xbf16>, vector<24x32xf32> -> vector<24x32xf32>
    %127 = arith.addf %83, %126 : vector<24x32xf32>
    %c0_91 = arith.constant 0 : index
    %c2 = arith.constant 2 : index
    %c0_92 = arith.constant 0 : index
    %c0_93 = arith.constant 0 : index
    %128 = vector.load %arg4[%c0_91, %c2, %c0_92, %c0_93] : memref<2x4x32x8xbf16, #tpu.memory_space<vmem>>, vector<1x1x32x8xbf16>
    %129 = vector.shape_cast %128 : vector<1x1x32x8xbf16> to vector<32x8xbf16>
    %cst_94 = arith.constant dense<0.000000e+00> : vector<24x8xf32>
    %130 = tpu.matmul %38, %129, %cst_94 {dimension_numbers = #tpu.dot_dimension_numbers<[1], [0], [0], [1], [0, 0, 1, 1], [], []>} : vector<24x32xbf16>, vector<32x8xbf16>, vector<24x8xf32> -> vector<24x8xf32>
    %c0_95 = arith.constant 0 : index
    %c2_96 = arith.constant 2 : index
    %c0_97 = arith.constant 0 : index
    %c0_98 = arith.constant 0 : index
    %131 = vector.load %arg7[%c0_95, %c2_96, %c0_97, %c0_98] : memref<2x4x1x8xf32, #tpu.memory_space<vmem>>, vector<1x1x1x8xf32>
    %132 = vector.shape_cast %131 : vector<1x1x1x8xf32> to vector<1x8xf32>
    %133 = vector.broadcast %132 : vector<1x8xf32> to vector<24x8xf32>
    %134 = arith.addf %130, %133 : vector<24x8xf32>
    %c0_99 = arith.constant 0 : index
    %c2_100 = arith.constant 2 : index
    %c0_101 = arith.constant 0 : index
    %c0_102 = arith.constant 0 : index
    %135 = vector.load %arg5[%c0_99, %c2_100, %c0_101, %c0_102] : memref<2x4x32x8xbf16, #tpu.memory_space<vmem>>, vector<1x1x32x8xbf16>
    %136 = vector.shape_cast %135 : vector<1x1x32x8xbf16> to vector<32x8xbf16>
    %cst_103 = arith.constant dense<0.000000e+00> : vector<24x8xf32>
    %137 = tpu.matmul %38, %136, %cst_103 {dimension_numbers = #tpu.dot_dimension_numbers<[1], [0], [0], [1], [0, 0, 1, 1], [], []>} : vector<24x32xbf16>, vector<32x8xbf16>, vector<24x8xf32> -> vector<24x8xf32>
    %c0_104 = arith.constant 0 : index
    %c2_105 = arith.constant 2 : index
    %c0_106 = arith.constant 0 : index
    %c0_107 = arith.constant 0 : index
    %138 = vector.load %arg8[%c0_104, %c2_105, %c0_106, %c0_107] : memref<2x4x1x8xf32, #tpu.memory_space<vmem>>, vector<1x1x1x8xf32>
    %139 = vector.shape_cast %138 : vector<1x1x1x8xf32> to vector<1x8xf32>
    %140 = vector.broadcast %139 : vector<1x8xf32> to vector<24x8xf32>
    %141 = arith.addf %137, %140 : vector<24x8xf32>
    %c0_108 = arith.constant 0 : index
    %c2_109 = arith.constant 2 : index
    %c0_110 = arith.constant 0 : index
    %c0_111 = arith.constant 0 : index
    %142 = vector.load %arg6[%c0_108, %c2_109, %c0_110, %c0_111] : memref<2x4x32x8xbf16, #tpu.memory_space<vmem>>, vector<1x1x32x8xbf16>
    %143 = vector.shape_cast %142 : vector<1x1x32x8xbf16> to vector<32x8xbf16>
    %cst_112 = arith.constant dense<0.000000e+00> : vector<24x8xf32>
    %144 = tpu.matmul %38, %143, %cst_112 {dimension_numbers = #tpu.dot_dimension_numbers<[1], [0], [0], [1], [0, 0, 1, 1], [], []>} : vector<24x32xbf16>, vector<32x8xbf16>, vector<24x8xf32> -> vector<24x8xf32>
    %c0_113 = arith.constant 0 : index
    %c2_114 = arith.constant 2 : index
    %c0_115 = arith.constant 0 : index
    %c0_116 = arith.constant 0 : index
    %145 = vector.load %arg9[%c0_113, %c2_114, %c0_115, %c0_116] : memref<2x4x1x8xf32, #tpu.memory_space<vmem>>, vector<1x1x1x8xf32>
    %146 = vector.shape_cast %145 : vector<1x1x1x8xf32> to vector<1x8xf32>
    %147 = vector.broadcast %146 : vector<1x8xf32> to vector<24x8xf32>
    %148 = arith.addf %144, %147 : vector<24x8xf32>
    %149 = arith.truncf %134 : vector<24x8xf32> to vector<24x8xbf16>
    %150 = arith.truncf %141 : vector<24x8xf32> to vector<24x8xbf16>
    %cst_117 = arith.constant dense<0.000000e+00> : vector<24x24xf32>
    %151 = tpu.matmul %149, %150, %cst_117 {dimension_numbers = #tpu.dot_dimension_numbers<[1], [1], [0], [0], [0, 0, 1, 0], [], []>} : vector<24x8xbf16>, vector<24x8xbf16>, vector<24x24xf32> -> vector<24x24xf32>
    %152 = vector.broadcast %11 : vector<1x24xf32> to vector<24x24xf32>
    %153 = arith.addf %151, %152 : vector<24x24xf32>
    %cst_118 = arith.constant dense<0xFF800000> : vector<24xf32>
    %154 = vector.multi_reduction <maximumf>, %153, %cst_118 [1] : vector<24x24xf32> to vector<24xf32>
    %155 = vector.shape_cast %154 : vector<24xf32> to vector<24x1xf32>
    %156 = vector.broadcast %155 : vector<24x1xf32> to vector<24x24xf32>
    %157 = arith.subf %153, %156 : vector<24x24xf32>
    %158 = math.exp %157 : vector<24x24xf32>
    %cst_119 = arith.constant dense<0.000000e+00> : vector<24xf32>
    %159 = vector.multi_reduction <add>, %158, %cst_119 [1] : vector<24x24xf32> to vector<24xf32>
    %160 = vector.shape_cast %159 : vector<24xf32> to vector<24x1xf32>
    %161 = tpu.reciprocal %160 {approx = true} : vector<24x1xf32> -> vector<24x1xf32>
    %162 = vector.broadcast %161 : vector<24x1xf32> to vector<24x24xf32>
    %163 = arith.mulf %158, %162 : vector<24x24xf32>
    %164 = arith.truncf %163 : vector<24x24xf32> to vector<24x24xbf16>
    %165 = arith.truncf %148 : vector<24x8xf32> to vector<24x8xbf16>
    %cst_120 = arith.constant dense<0.000000e+00> : vector<24x8xf32>
    %166 = tpu.matmul %164, %165, %cst_120 {dimension_numbers = #tpu.dot_dimension_numbers<[1], [0], [0], [1], [0, 0, 1, 1], [], []>} : vector<24x24xbf16>, vector<24x8xbf16>, vector<24x8xf32> -> vector<24x8xf32>
    %167 = arith.truncf %166 : vector<24x8xf32> to vector<24x8xbf16>
    %c0_121 = arith.constant 0 : index
    %c2_122 = arith.constant 2 : index
    %c0_123 = arith.constant 0 : index
    %c0_124 = arith.constant 0 : index
    %168 = vector.load %arg10[%c0_121, %c2_122, %c0_123, %c0_124] : memref<2x4x8x32xbf16, #tpu.memory_space<vmem>>, vector<1x1x8x32xbf16>
    %169 = vector.shape_cast %168 : vector<1x1x8x32xbf16> to vector<8x32xbf16>
    %cst_125 = arith.constant dense<0.000000e+00> : vector<24x32xf32>
    %170 = tpu.matmul %167, %169, %cst_125 {dimension_numbers = #tpu.dot_dimension_numbers<[1], [0], [0], [1], [0, 0, 1, 1], [], []>} : vector<24x8xbf16>, vector<8x32xbf16>, vector<24x32xf32> -> vector<24x32xf32>
    %171 = arith.addf %127, %170 : vector<24x32xf32>
    %c0_126 = arith.constant 0 : index
    %c3 = arith.constant 3 : index
    %c0_127 = arith.constant 0 : index
    %c0_128 = arith.constant 0 : index
    %172 = vector.load %arg4[%c0_126, %c3, %c0_127, %c0_128] : memref<2x4x32x8xbf16, #tpu.memory_space<vmem>>, vector<1x1x32x8xbf16>
    %173 = vector.shape_cast %172 : vector<1x1x32x8xbf16> to vector<32x8xbf16>
    %cst_129 = arith.constant dense<0.000000e+00> : vector<24x8xf32>
    %174 = tpu.matmul %38, %173, %cst_129 {dimension_numbers = #tpu.dot_dimension_numbers<[1], [0], [0], [1], [0, 0, 1, 1], [], []>} : vector<24x32xbf16>, vector<32x8xbf16>, vector<24x8xf32> -> vector<24x8xf32>
    %c0_130 = arith.constant 0 : index
    %c3_131 = arith.constant 3 : index
    %c0_132 = arith.constant 0 : index
    %c0_133 = arith.constant 0 : index
    %175 = vector.load %arg7[%c0_130, %c3_131, %c0_132, %c0_133] : memref<2x4x1x8xf32, #tpu.memory_space<vmem>>, vector<1x1x1x8xf32>
    %176 = vector.shape_cast %175 : vector<1x1x1x8xf32> to vector<1x8xf32>
    %177 = vector.broadcast %176 : vector<1x8xf32> to vector<24x8xf32>
    %178 = arith.addf %174, %177 : vector<24x8xf32>
    %c0_134 = arith.constant 0 : index
    %c3_135 = arith.constant 3 : index
    %c0_136 = arith.constant 0 : index
    %c0_137 = arith.constant 0 : index
    %179 = vector.load %arg5[%c0_134, %c3_135, %c0_136, %c0_137] : memref<2x4x32x8xbf16, #tpu.memory_space<vmem>>, vector<1x1x32x8xbf16>
    %180 = vector.shape_cast %179 : vector<1x1x32x8xbf16> to vector<32x8xbf16>
    %cst_138 = arith.constant dense<0.000000e+00> : vector<24x8xf32>
    %181 = tpu.matmul %38, %180, %cst_138 {dimension_numbers = #tpu.dot_dimension_numbers<[1], [0], [0], [1], [0, 0, 1, 1], [], []>} : vector<24x32xbf16>, vector<32x8xbf16>, vector<24x8xf32> -> vector<24x8xf32>
    %c0_139 = arith.constant 0 : index
    %c3_140 = arith.constant 3 : index
    %c0_141 = arith.constant 0 : index
    %c0_142 = arith.constant 0 : index
    %182 = vector.load %arg8[%c0_139, %c3_140, %c0_141, %c0_142] : memref<2x4x1x8xf32, #tpu.memory_space<vmem>>, vector<1x1x1x8xf32>
    %183 = vector.shape_cast %182 : vector<1x1x1x8xf32> to vector<1x8xf32>
    %184 = vector.broadcast %183 : vector<1x8xf32> to vector<24x8xf32>
    %185 = arith.addf %181, %184 : vector<24x8xf32>
    %c0_143 = arith.constant 0 : index
    %c3_144 = arith.constant 3 : index
    %c0_145 = arith.constant 0 : index
    %c0_146 = arith.constant 0 : index
    %186 = vector.load %arg6[%c0_143, %c3_144, %c0_145, %c0_146] : memref<2x4x32x8xbf16, #tpu.memory_space<vmem>>, vector<1x1x32x8xbf16>
    %187 = vector.shape_cast %186 : vector<1x1x32x8xbf16> to vector<32x8xbf16>
    %cst_147 = arith.constant dense<0.000000e+00> : vector<24x8xf32>
    %188 = tpu.matmul %38, %187, %cst_147 {dimension_numbers = #tpu.dot_dimension_numbers<[1], [0], [0], [1], [0, 0, 1, 1], [], []>} : vector<24x32xbf16>, vector<32x8xbf16>, vector<24x8xf32> -> vector<24x8xf32>
    %c0_148 = arith.constant 0 : index
    %c3_149 = arith.constant 3 : index
    %c0_150 = arith.constant 0 : index
    %c0_151 = arith.constant 0 : index
    %189 = vector.load %arg9[%c0_148, %c3_149, %c0_150, %c0_151] : memref<2x4x1x8xf32, #tpu.memory_space<vmem>>, vector<1x1x1x8xf32>
    %190 = vector.shape_cast %189 : vector<1x1x1x8xf32> to vector<1x8xf32>
    %191 = vector.broadcast %190 : vector<1x8xf32> to vector<24x8xf32>
    %192 = arith.addf %188, %191 : vector<24x8xf32>
    %193 = arith.truncf %178 : vector<24x8xf32> to vector<24x8xbf16>
    %194 = arith.truncf %185 : vector<24x8xf32> to vector<24x8xbf16>
    %cst_152 = arith.constant dense<0.000000e+00> : vector<24x24xf32>
    %195 = tpu.matmul %193, %194, %cst_152 {dimension_numbers = #tpu.dot_dimension_numbers<[1], [1], [0], [0], [0, 0, 1, 0], [], []>} : vector<24x8xbf16>, vector<24x8xbf16>, vector<24x24xf32> -> vector<24x24xf32>
    %196 = vector.broadcast %11 : vector<1x24xf32> to vector<24x24xf32>
    %197 = arith.addf %195, %196 : vector<24x24xf32>
    %cst_153 = arith.constant dense<0xFF800000> : vector<24xf32>
    %198 = vector.multi_reduction <maximumf>, %197, %cst_153 [1] : vector<24x24xf32> to vector<24xf32>
    %199 = vector.shape_cast %198 : vector<24xf32> to vector<24x1xf32>
    %200 = vector.broadcast %199 : vector<24x1xf32> to vector<24x24xf32>
    %201 = arith.subf %197, %200 : vector<24x24xf32>
    %202 = math.exp %201 : vector<24x24xf32>
    %cst_154 = arith.constant dense<0.000000e+00> : vector<24xf32>
    %203 = vector.multi_reduction <add>, %202, %cst_154 [1] : vector<24x24xf32> to vector<24xf32>
    %204 = vector.shape_cast %203 : vector<24xf32> to vector<24x1xf32>
    %205 = tpu.reciprocal %204 {approx = true} : vector<24x1xf32> -> vector<24x1xf32>
    %206 = vector.broadcast %205 : vector<24x1xf32> to vector<24x24xf32>
    %207 = arith.mulf %202, %206 : vector<24x24xf32>
    %208 = arith.truncf %207 : vector<24x24xf32> to vector<24x24xbf16>
    %209 = arith.truncf %192 : vector<24x8xf32> to vector<24x8xbf16>
    %cst_155 = arith.constant dense<0.000000e+00> : vector<24x8xf32>
    %210 = tpu.matmul %208, %209, %cst_155 {dimension_numbers = #tpu.dot_dimension_numbers<[1], [0], [0], [1], [0, 0, 1, 1], [], []>} : vector<24x24xbf16>, vector<24x8xbf16>, vector<24x8xf32> -> vector<24x8xf32>
    %211 = arith.truncf %210 : vector<24x8xf32> to vector<24x8xbf16>
    %c0_156 = arith.constant 0 : index
    %c3_157 = arith.constant 3 : index
    %c0_158 = arith.constant 0 : index
    %c0_159 = arith.constant 0 : index
    %212 = vector.load %arg10[%c0_156, %c3_157, %c0_158, %c0_159] : memref<2x4x8x32xbf16, #tpu.memory_space<vmem>>, vector<1x1x8x32xbf16>
    %213 = vector.shape_cast %212 : vector<1x1x8x32xbf16> to vector<8x32xbf16>
    %cst_160 = arith.constant dense<0.000000e+00> : vector<24x32xf32>
    %214 = tpu.matmul %211, %213, %cst_160 {dimension_numbers = #tpu.dot_dimension_numbers<[1], [0], [0], [1], [0, 0, 1, 1], [], []>} : vector<24x8xbf16>, vector<8x32xbf16>, vector<24x32xf32> -> vector<24x32xf32>
    %215 = arith.addf %171, %214 : vector<24x32xf32>
    %216 = arith.addf %5, %215 : vector<24x32xf32>
    %c0_161 = arith.constant 0 : index
    %c0_162 = arith.constant 0 : index
    %c0_163 = arith.constant 0 : index
    %217 = vector.load %arg11[%c0_161, %c0_162, %c0_163] : memref<2x1x32xf32, #tpu.memory_space<vmem>>, vector<1x1x32xf32>
    %218 = vector.shape_cast %217 : vector<1x1x32xf32> to vector<1x32xf32>
    %219 = vector.broadcast %218 : vector<1x32xf32> to vector<24x32xf32>
    %220 = arith.addf %216, %219 : vector<24x32xf32>
    %c0_164 = arith.constant 0 : index
    %c0_165 = arith.constant 0 : index
    %c0_166 = arith.constant 0 : index
    %221 = vector.load %arg14[%c0_164, %c0_165, %c0_166] : memref<2x1x32xf32, #tpu.memory_space<vmem>>, vector<1x1x32xf32>
    %222 = vector.shape_cast %221 : vector<1x1x32xf32> to vector<1x32xf32>
    %c0_167 = arith.constant 0 : index
    %c0_168 = arith.constant 0 : index
    %c0_169 = arith.constant 0 : index
    %223 = vector.load %arg15[%c0_167, %c0_168, %c0_169] : memref<2x1x32xf32, #tpu.memory_space<vmem>>, vector<1x1x32xf32>
    %224 = vector.shape_cast %223 : vector<1x1x32xf32> to vector<1x32xf32>
    %cst_170 = arith.constant dense<0.000000e+00> : vector<24xf32>
    %225 = vector.multi_reduction <add>, %220, %cst_170 [1] : vector<24x32xf32> to vector<24xf32>
    %226 = vector.shape_cast %225 : vector<24xf32> to vector<24x1xf32>
    %cst_171 = arith.constant 3.200000e+01 : f32
    %227 = vector.broadcast %cst_171 : f32 to vector<24x1xf32>
    %228 = arith.divf %226, %227 : vector<24x1xf32>
    %229 = vector.broadcast %228 : vector<24x1xf32> to vector<24x32xf32>
    %230 = arith.subf %220, %229 : vector<24x32xf32>
    %231 = arith.mulf %230, %230 : vector<24x32xf32>
    %cst_172 = arith.constant dense<0.000000e+00> : vector<24xf32>
    %232 = vector.multi_reduction <add>, %231, %cst_172 [1] : vector<24x32xf32> to vector<24xf32>
    %233 = vector.shape_cast %232 : vector<24xf32> to vector<24x1xf32>
    %cst_173 = arith.constant 3.200000e+01 : f32
    %234 = vector.broadcast %cst_173 : f32 to vector<24x1xf32>
    %235 = arith.divf %233, %234 : vector<24x1xf32>
    %236 = vector.broadcast %228 : vector<24x1xf32> to vector<24x32xf32>
    %237 = arith.subf %220, %236 : vector<24x32xf32>
    %cst_174 = arith.constant 9.99999974E-6 : f32
    %238 = vector.broadcast %cst_174 : f32 to vector<24x1xf32>
    %239 = arith.addf %235, %238 : vector<24x1xf32>
    %240 = math.rsqrt %239 : vector<24x1xf32>
    %241 = vector.broadcast %240 : vector<24x1xf32> to vector<24x32xf32>
    %242 = arith.mulf %237, %241 : vector<24x32xf32>
    %243 = vector.broadcast %222 : vector<1x32xf32> to vector<24x32xf32>
    %244 = arith.mulf %242, %243 : vector<24x32xf32>
    %245 = vector.broadcast %224 : vector<1x32xf32> to vector<24x32xf32>
    %246 = arith.addf %244, %245 : vector<24x32xf32>
    %247 = arith.truncf %246 : vector<24x32xf32> to vector<24x32xbf16>
    %c0_175 = arith.constant 0 : index
    %c0_176 = arith.constant 0 : index
    %c0_177 = arith.constant 0 : index
    %248 = vector.load %arg16[%c0_175, %c0_176, %c0_177] : memref<2x32x64xbf16, #tpu.memory_space<vmem>>, vector<1x32x64xbf16>
    %249 = vector.shape_cast %248 : vector<1x32x64xbf16> to vector<32x64xbf16>
    %cst_178 = arith.constant dense<0.000000e+00> : vector<24x64xf32>
    %250 = tpu.matmul %247, %249, %cst_178 {dimension_numbers = #tpu.dot_dimension_numbers<[1], [0], [0], [1], [0, 0, 1, 1], [], []>} : vector<24x32xbf16>, vector<32x64xbf16>, vector<24x64xf32> -> vector<24x64xf32>
    %c0_179 = arith.constant 0 : index
    %c0_180 = arith.constant 0 : index
    %c0_181 = arith.constant 0 : index
    %251 = vector.load %arg17[%c0_179, %c0_180, %c0_181] : memref<2x1x64xf32, #tpu.memory_space<vmem>>, vector<1x1x64xf32>
    %252 = vector.shape_cast %251 : vector<1x1x64xf32> to vector<1x64xf32>
    %253 = vector.broadcast %252 : vector<1x64xf32> to vector<24x64xf32>
    %254 = arith.addf %250, %253 : vector<24x64xf32>
    %cst_182 = arith.constant 5.000000e-01 : f32
    %255 = vector.broadcast %cst_182 : f32 to vector<24x64xf32>
    %256 = arith.mulf %255, %254 : vector<24x64xf32>
    %cst_183 = arith.constant 0.707106769 : f32
    %257 = vector.broadcast %cst_183 : f32 to vector<24x64xf32>
    %258 = arith.mulf %254, %257 : vector<24x64xf32>
    %cst_184 = arith.constant 0.000000e+00 : f32
    %259 = vector.broadcast %cst_184 : f32 to vector<24x64xf32>
    %260 = arith.cmpf oge, %258, %259 : vector<24x64xf32>
    %cst_185 = arith.constant 1.000000e+00 : f32
    %cst_186 = arith.constant -1.000000e+00 : f32
    %261 = vector.broadcast %cst_185 : f32 to vector<24x64xf32>
    %262 = vector.broadcast %cst_186 : f32 to vector<24x64xf32>
    %263 = arith.select %260, %261, %262 : vector<24x64xi1>, vector<24x64xf32>
    %264 = math.absf %258 : vector<24x64xf32>
    %cst_187 = arith.constant 0.327591091 : f32
    %265 = vector.broadcast %cst_187 : f32 to vector<24x64xf32>
    %266 = arith.mulf %265, %264 : vector<24x64xf32>
    %cst_188 = arith.constant 1.000000e+00 : f32
    %267 = vector.broadcast %cst_188 : f32 to vector<24x64xf32>
    %268 = arith.addf %267, %266 : vector<24x64xf32>
    %cst_189 = arith.constant 1.000000e+00 : f32
    %269 = vector.broadcast %cst_189 : f32 to vector<24x64xf32>
    %270 = arith.divf %269, %268 : vector<24x64xf32>
    %cst_190 = arith.constant 1.06140542 : f32
    %271 = vector.broadcast %cst_190 : f32 to vector<24x64xf32>
    %272 = arith.mulf %271, %270 : vector<24x64xf32>
    %cst_191 = arith.constant -1.45315206 : f32
    %273 = vector.broadcast %cst_191 : f32 to vector<24x64xf32>
    %274 = arith.addf %272, %273 : vector<24x64xf32>
    %275 = arith.mulf %274, %270 : vector<24x64xf32>
    %cst_192 = arith.constant 1.42141378 : f32
    %276 = vector.broadcast %cst_192 : f32 to vector<24x64xf32>
    %277 = arith.addf %275, %276 : vector<24x64xf32>
    %278 = arith.mulf %277, %270 : vector<24x64xf32>
    %cst_193 = arith.constant -0.284496725 : f32
    %279 = vector.broadcast %cst_193 : f32 to vector<24x64xf32>
    %280 = arith.addf %278, %279 : vector<24x64xf32>
    %281 = arith.mulf %280, %270 : vector<24x64xf32>
    %cst_194 = arith.constant 0.254829586 : f32
    %282 = vector.broadcast %cst_194 : f32 to vector<24x64xf32>
    %283 = arith.addf %281, %282 : vector<24x64xf32>
    %284 = arith.mulf %283, %270 : vector<24x64xf32>
    %cst_195 = arith.constant 0.000000e+00 : f32
    %285 = vector.broadcast %cst_195 : f32 to vector<24x64xf32>
    %286 = arith.subf %285, %264 : vector<24x64xf32>
    %287 = arith.mulf %286, %264 : vector<24x64xf32>
    %288 = math.exp %287 : vector<24x64xf32>
    %289 = arith.mulf %284, %288 : vector<24x64xf32>
    %cst_196 = arith.constant 1.000000e+00 : f32
    %290 = vector.broadcast %cst_196 : f32 to vector<24x64xf32>
    %291 = arith.subf %290, %289 : vector<24x64xf32>
    %292 = arith.mulf %263, %291 : vector<24x64xf32>
    %cst_197 = arith.constant 1.000000e+00 : f32
    %293 = vector.broadcast %cst_197 : f32 to vector<24x64xf32>
    %294 = arith.addf %293, %292 : vector<24x64xf32>
    %295 = arith.mulf %256, %294 : vector<24x64xf32>
    %296 = arith.truncf %295 : vector<24x64xf32> to vector<24x64xbf16>
    %c0_198 = arith.constant 0 : index
    %c0_199 = arith.constant 0 : index
    %c0_200 = arith.constant 0 : index
    %297 = vector.load %arg18[%c0_198, %c0_199, %c0_200] : memref<2x64x32xbf16, #tpu.memory_space<vmem>>, vector<1x64x32xbf16>
    %298 = vector.shape_cast %297 : vector<1x64x32xbf16> to vector<64x32xbf16>
    %cst_201 = arith.constant dense<0.000000e+00> : vector<24x32xf32>
    %299 = tpu.matmul %296, %298, %cst_201 {dimension_numbers = #tpu.dot_dimension_numbers<[1], [0], [0], [1], [0, 0, 1, 1], [], []>} : vector<24x64xbf16>, vector<64x32xbf16>, vector<24x32xf32> -> vector<24x32xf32>
    %c0_202 = arith.constant 0 : index
    %c0_203 = arith.constant 0 : index
    %c0_204 = arith.constant 0 : index
    %300 = vector.load %arg19[%c0_202, %c0_203, %c0_204] : memref<2x1x32xf32, #tpu.memory_space<vmem>>, vector<1x1x32xf32>
    %301 = vector.shape_cast %300 : vector<1x1x32xf32> to vector<1x32xf32>
    %302 = vector.broadcast %301 : vector<1x32xf32> to vector<24x32xf32>
    %303 = arith.addf %299, %302 : vector<24x32xf32>
    %304 = arith.addf %220, %303 : vector<24x32xf32>
    %c1_205 = arith.constant 1 : index
    %c0_206 = arith.constant 0 : index
    %c0_207 = arith.constant 0 : index
    %305 = vector.load %arg12[%c1_205, %c0_206, %c0_207] : memref<2x1x32xf32, #tpu.memory_space<vmem>>, vector<1x1x32xf32>
    %306 = vector.shape_cast %305 : vector<1x1x32xf32> to vector<1x32xf32>
    %c1_208 = arith.constant 1 : index
    %c0_209 = arith.constant 0 : index
    %c0_210 = arith.constant 0 : index
    %307 = vector.load %arg13[%c1_208, %c0_209, %c0_210] : memref<2x1x32xf32, #tpu.memory_space<vmem>>, vector<1x1x32xf32>
    %308 = vector.shape_cast %307 : vector<1x1x32xf32> to vector<1x32xf32>
    %cst_211 = arith.constant dense<0.000000e+00> : vector<24xf32>
    %309 = vector.multi_reduction <add>, %304, %cst_211 [1] : vector<24x32xf32> to vector<24xf32>
    %310 = vector.shape_cast %309 : vector<24xf32> to vector<24x1xf32>
    %cst_212 = arith.constant 3.200000e+01 : f32
    %311 = vector.broadcast %cst_212 : f32 to vector<24x1xf32>
    %312 = arith.divf %310, %311 : vector<24x1xf32>
    %313 = vector.broadcast %312 : vector<24x1xf32> to vector<24x32xf32>
    %314 = arith.subf %304, %313 : vector<24x32xf32>
    %315 = arith.mulf %314, %314 : vector<24x32xf32>
    %cst_213 = arith.constant dense<0.000000e+00> : vector<24xf32>
    %316 = vector.multi_reduction <add>, %315, %cst_213 [1] : vector<24x32xf32> to vector<24xf32>
    %317 = vector.shape_cast %316 : vector<24xf32> to vector<24x1xf32>
    %cst_214 = arith.constant 3.200000e+01 : f32
    %318 = vector.broadcast %cst_214 : f32 to vector<24x1xf32>
    %319 = arith.divf %317, %318 : vector<24x1xf32>
    %320 = vector.broadcast %312 : vector<24x1xf32> to vector<24x32xf32>
    %321 = arith.subf %304, %320 : vector<24x32xf32>
    %cst_215 = arith.constant 9.99999974E-6 : f32
    %322 = vector.broadcast %cst_215 : f32 to vector<24x1xf32>
    %323 = arith.addf %319, %322 : vector<24x1xf32>
    %324 = math.rsqrt %323 : vector<24x1xf32>
    %325 = vector.broadcast %324 : vector<24x1xf32> to vector<24x32xf32>
    %326 = arith.mulf %321, %325 : vector<24x32xf32>
    %327 = vector.broadcast %306 : vector<1x32xf32> to vector<24x32xf32>
    %328 = arith.mulf %326, %327 : vector<24x32xf32>
    %329 = vector.broadcast %308 : vector<1x32xf32> to vector<24x32xf32>
    %330 = arith.addf %328, %329 : vector<24x32xf32>
    %331 = arith.truncf %330 : vector<24x32xf32> to vector<24x32xbf16>
    %cst_216 = arith.constant 0.000000e+00 : f32
    %332 = vector.broadcast %cst_216 : f32 to vector<24x32xf32>
    %c1_217 = arith.constant 1 : index
    %c0_218 = arith.constant 0 : index
    %c0_219 = arith.constant 0 : index
    %c0_220 = arith.constant 0 : index
    %333 = vector.load %arg4[%c1_217, %c0_218, %c0_219, %c0_220] : memref<2x4x32x8xbf16, #tpu.memory_space<vmem>>, vector<1x1x32x8xbf16>
    %334 = vector.shape_cast %333 : vector<1x1x32x8xbf16> to vector<32x8xbf16>
    %cst_221 = arith.constant dense<0.000000e+00> : vector<24x8xf32>
    %335 = tpu.matmul %331, %334, %cst_221 {dimension_numbers = #tpu.dot_dimension_numbers<[1], [0], [0], [1], [0, 0, 1, 1], [], []>} : vector<24x32xbf16>, vector<32x8xbf16>, vector<24x8xf32> -> vector<24x8xf32>
    %c1_222 = arith.constant 1 : index
    %c0_223 = arith.constant 0 : index
    %c0_224 = arith.constant 0 : index
    %c0_225 = arith.constant 0 : index
    %336 = vector.load %arg7[%c1_222, %c0_223, %c0_224, %c0_225] : memref<2x4x1x8xf32, #tpu.memory_space<vmem>>, vector<1x1x1x8xf32>
    %337 = vector.shape_cast %336 : vector<1x1x1x8xf32> to vector<1x8xf32>
    %338 = vector.broadcast %337 : vector<1x8xf32> to vector<24x8xf32>
    %339 = arith.addf %335, %338 : vector<24x8xf32>
    %c1_226 = arith.constant 1 : index
    %c0_227 = arith.constant 0 : index
    %c0_228 = arith.constant 0 : index
    %c0_229 = arith.constant 0 : index
    %340 = vector.load %arg5[%c1_226, %c0_227, %c0_228, %c0_229] : memref<2x4x32x8xbf16, #tpu.memory_space<vmem>>, vector<1x1x32x8xbf16>
    %341 = vector.shape_cast %340 : vector<1x1x32x8xbf16> to vector<32x8xbf16>
    %cst_230 = arith.constant dense<0.000000e+00> : vector<24x8xf32>
    %342 = tpu.matmul %331, %341, %cst_230 {dimension_numbers = #tpu.dot_dimension_numbers<[1], [0], [0], [1], [0, 0, 1, 1], [], []>} : vector<24x32xbf16>, vector<32x8xbf16>, vector<24x8xf32> -> vector<24x8xf32>
    %c1_231 = arith.constant 1 : index
    %c0_232 = arith.constant 0 : index
    %c0_233 = arith.constant 0 : index
    %c0_234 = arith.constant 0 : index
    %343 = vector.load %arg8[%c1_231, %c0_232, %c0_233, %c0_234] : memref<2x4x1x8xf32, #tpu.memory_space<vmem>>, vector<1x1x1x8xf32>
    %344 = vector.shape_cast %343 : vector<1x1x1x8xf32> to vector<1x8xf32>
    %345 = vector.broadcast %344 : vector<1x8xf32> to vector<24x8xf32>
    %346 = arith.addf %342, %345 : vector<24x8xf32>
    %c1_235 = arith.constant 1 : index
    %c0_236 = arith.constant 0 : index
    %c0_237 = arith.constant 0 : index
    %c0_238 = arith.constant 0 : index
    %347 = vector.load %arg6[%c1_235, %c0_236, %c0_237, %c0_238] : memref<2x4x32x8xbf16, #tpu.memory_space<vmem>>, vector<1x1x32x8xbf16>
    %348 = vector.shape_cast %347 : vector<1x1x32x8xbf16> to vector<32x8xbf16>
    %cst_239 = arith.constant dense<0.000000e+00> : vector<24x8xf32>
    %349 = tpu.matmul %331, %348, %cst_239 {dimension_numbers = #tpu.dot_dimension_numbers<[1], [0], [0], [1], [0, 0, 1, 1], [], []>} : vector<24x32xbf16>, vector<32x8xbf16>, vector<24x8xf32> -> vector<24x8xf32>
    %c1_240 = arith.constant 1 : index
    %c0_241 = arith.constant 0 : index
    %c0_242 = arith.constant 0 : index
    %c0_243 = arith.constant 0 : index
    %350 = vector.load %arg9[%c1_240, %c0_241, %c0_242, %c0_243] : memref<2x4x1x8xf32, #tpu.memory_space<vmem>>, vector<1x1x1x8xf32>
    %351 = vector.shape_cast %350 : vector<1x1x1x8xf32> to vector<1x8xf32>
    %352 = vector.broadcast %351 : vector<1x8xf32> to vector<24x8xf32>
    %353 = arith.addf %349, %352 : vector<24x8xf32>
    %354 = arith.truncf %339 : vector<24x8xf32> to vector<24x8xbf16>
    %355 = arith.truncf %346 : vector<24x8xf32> to vector<24x8xbf16>
    %cst_244 = arith.constant dense<0.000000e+00> : vector<24x24xf32>
    %356 = tpu.matmul %354, %355, %cst_244 {dimension_numbers = #tpu.dot_dimension_numbers<[1], [1], [0], [0], [0, 0, 1, 0], [], []>} : vector<24x8xbf16>, vector<24x8xbf16>, vector<24x24xf32> -> vector<24x24xf32>
    %357 = vector.broadcast %11 : vector<1x24xf32> to vector<24x24xf32>
    %358 = arith.addf %356, %357 : vector<24x24xf32>
    %cst_245 = arith.constant dense<0xFF800000> : vector<24xf32>
    %359 = vector.multi_reduction <maximumf>, %358, %cst_245 [1] : vector<24x24xf32> to vector<24xf32>
    %360 = vector.shape_cast %359 : vector<24xf32> to vector<24x1xf32>
    %361 = vector.broadcast %360 : vector<24x1xf32> to vector<24x24xf32>
    %362 = arith.subf %358, %361 : vector<24x24xf32>
    %363 = math.exp %362 : vector<24x24xf32>
    %cst_246 = arith.constant dense<0.000000e+00> : vector<24xf32>
    %364 = vector.multi_reduction <add>, %363, %cst_246 [1] : vector<24x24xf32> to vector<24xf32>
    %365 = vector.shape_cast %364 : vector<24xf32> to vector<24x1xf32>
    %366 = tpu.reciprocal %365 {approx = true} : vector<24x1xf32> -> vector<24x1xf32>
    %367 = vector.broadcast %366 : vector<24x1xf32> to vector<24x24xf32>
    %368 = arith.mulf %363, %367 : vector<24x24xf32>
    %369 = arith.truncf %368 : vector<24x24xf32> to vector<24x24xbf16>
    %370 = arith.truncf %353 : vector<24x8xf32> to vector<24x8xbf16>
    %cst_247 = arith.constant dense<0.000000e+00> : vector<24x8xf32>
    %371 = tpu.matmul %369, %370, %cst_247 {dimension_numbers = #tpu.dot_dimension_numbers<[1], [0], [0], [1], [0, 0, 1, 1], [], []>} : vector<24x24xbf16>, vector<24x8xbf16>, vector<24x8xf32> -> vector<24x8xf32>
    %372 = arith.truncf %371 : vector<24x8xf32> to vector<24x8xbf16>
    %c1_248 = arith.constant 1 : index
    %c0_249 = arith.constant 0 : index
    %c0_250 = arith.constant 0 : index
    %c0_251 = arith.constant 0 : index
    %373 = vector.load %arg10[%c1_248, %c0_249, %c0_250, %c0_251] : memref<2x4x8x32xbf16, #tpu.memory_space<vmem>>, vector<1x1x8x32xbf16>
    %374 = vector.shape_cast %373 : vector<1x1x8x32xbf16> to vector<8x32xbf16>
    %cst_252 = arith.constant dense<0.000000e+00> : vector<24x32xf32>
    %375 = tpu.matmul %372, %374, %cst_252 {dimension_numbers = #tpu.dot_dimension_numbers<[1], [0], [0], [1], [0, 0, 1, 1], [], []>} : vector<24x8xbf16>, vector<8x32xbf16>, vector<24x32xf32> -> vector<24x32xf32>
    %376 = arith.addf %332, %375 : vector<24x32xf32>
    %c1_253 = arith.constant 1 : index
    %c1_254 = arith.constant 1 : index
    %c0_255 = arith.constant 0 : index
    %c0_256 = arith.constant 0 : index
    %377 = vector.load %arg4[%c1_253, %c1_254, %c0_255, %c0_256] : memref<2x4x32x8xbf16, #tpu.memory_space<vmem>>, vector<1x1x32x8xbf16>
    %378 = vector.shape_cast %377 : vector<1x1x32x8xbf16> to vector<32x8xbf16>
    %cst_257 = arith.constant dense<0.000000e+00> : vector<24x8xf32>
    %379 = tpu.matmul %331, %378, %cst_257 {dimension_numbers = #tpu.dot_dimension_numbers<[1], [0], [0], [1], [0, 0, 1, 1], [], []>} : vector<24x32xbf16>, vector<32x8xbf16>, vector<24x8xf32> -> vector<24x8xf32>
    %c1_258 = arith.constant 1 : index
    %c1_259 = arith.constant 1 : index
    %c0_260 = arith.constant 0 : index
    %c0_261 = arith.constant 0 : index
    %380 = vector.load %arg7[%c1_258, %c1_259, %c0_260, %c0_261] : memref<2x4x1x8xf32, #tpu.memory_space<vmem>>, vector<1x1x1x8xf32>
    %381 = vector.shape_cast %380 : vector<1x1x1x8xf32> to vector<1x8xf32>
    %382 = vector.broadcast %381 : vector<1x8xf32> to vector<24x8xf32>
    %383 = arith.addf %379, %382 : vector<24x8xf32>
    %c1_262 = arith.constant 1 : index
    %c1_263 = arith.constant 1 : index
    %c0_264 = arith.constant 0 : index
    %c0_265 = arith.constant 0 : index
    %384 = vector.load %arg5[%c1_262, %c1_263, %c0_264, %c0_265] : memref<2x4x32x8xbf16, #tpu.memory_space<vmem>>, vector<1x1x32x8xbf16>
    %385 = vector.shape_cast %384 : vector<1x1x32x8xbf16> to vector<32x8xbf16>
    %cst_266 = arith.constant dense<0.000000e+00> : vector<24x8xf32>
    %386 = tpu.matmul %331, %385, %cst_266 {dimension_numbers = #tpu.dot_dimension_numbers<[1], [0], [0], [1], [0, 0, 1, 1], [], []>} : vector<24x32xbf16>, vector<32x8xbf16>, vector<24x8xf32> -> vector<24x8xf32>
    %c1_267 = arith.constant 1 : index
    %c1_268 = arith.constant 1 : index
    %c0_269 = arith.constant 0 : index
    %c0_270 = arith.constant 0 : index
    %387 = vector.load %arg8[%c1_267, %c1_268, %c0_269, %c0_270] : memref<2x4x1x8xf32, #tpu.memory_space<vmem>>, vector<1x1x1x8xf32>
    %388 = vector.shape_cast %387 : vector<1x1x1x8xf32> to vector<1x8xf32>
    %389 = vector.broadcast %388 : vector<1x8xf32> to vector<24x8xf32>
    %390 = arith.addf %386, %389 : vector<24x8xf32>
    %c1_271 = arith.constant 1 : index
    %c1_272 = arith.constant 1 : index
    %c0_273 = arith.constant 0 : index
    %c0_274 = arith.constant 0 : index
    %391 = vector.load %arg6[%c1_271, %c1_272, %c0_273, %c0_274] : memref<2x4x32x8xbf16, #tpu.memory_space<vmem>>, vector<1x1x32x8xbf16>
    %392 = vector.shape_cast %391 : vector<1x1x32x8xbf16> to vector<32x8xbf16>
    %cst_275 = arith.constant dense<0.000000e+00> : vector<24x8xf32>
    %393 = tpu.matmul %331, %392, %cst_275 {dimension_numbers = #tpu.dot_dimension_numbers<[1], [0], [0], [1], [0, 0, 1, 1], [], []>} : vector<24x32xbf16>, vector<32x8xbf16>, vector<24x8xf32> -> vector<24x8xf32>
    %c1_276 = arith.constant 1 : index
    %c1_277 = arith.constant 1 : index
    %c0_278 = arith.constant 0 : index
    %c0_279 = arith.constant 0 : index
    %394 = vector.load %arg9[%c1_276, %c1_277, %c0_278, %c0_279] : memref<2x4x1x8xf32, #tpu.memory_space<vmem>>, vector<1x1x1x8xf32>
    %395 = vector.shape_cast %394 : vector<1x1x1x8xf32> to vector<1x8xf32>
    %396 = vector.broadcast %395 : vector<1x8xf32> to vector<24x8xf32>
    %397 = arith.addf %393, %396 : vector<24x8xf32>
    %398 = arith.truncf %383 : vector<24x8xf32> to vector<24x8xbf16>
    %399 = arith.truncf %390 : vector<24x8xf32> to vector<24x8xbf16>
    %cst_280 = arith.constant dense<0.000000e+00> : vector<24x24xf32>
    %400 = tpu.matmul %398, %399, %cst_280 {dimension_numbers = #tpu.dot_dimension_numbers<[1], [1], [0], [0], [0, 0, 1, 0], [], []>} : vector<24x8xbf16>, vector<24x8xbf16>, vector<24x24xf32> -> vector<24x24xf32>
    %401 = vector.broadcast %11 : vector<1x24xf32> to vector<24x24xf32>
    %402 = arith.addf %400, %401 : vector<24x24xf32>
    %cst_281 = arith.constant dense<0xFF800000> : vector<24xf32>
    %403 = vector.multi_reduction <maximumf>, %402, %cst_281 [1] : vector<24x24xf32> to vector<24xf32>
    %404 = vector.shape_cast %403 : vector<24xf32> to vector<24x1xf32>
    %405 = vector.broadcast %404 : vector<24x1xf32> to vector<24x24xf32>
    %406 = arith.subf %402, %405 : vector<24x24xf32>
    %407 = math.exp %406 : vector<24x24xf32>
    %cst_282 = arith.constant dense<0.000000e+00> : vector<24xf32>
    %408 = vector.multi_reduction <add>, %407, %cst_282 [1] : vector<24x24xf32> to vector<24xf32>
    %409 = vector.shape_cast %408 : vector<24xf32> to vector<24x1xf32>
    %410 = tpu.reciprocal %409 {approx = true} : vector<24x1xf32> -> vector<24x1xf32>
    %411 = vector.broadcast %410 : vector<24x1xf32> to vector<24x24xf32>
    %412 = arith.mulf %407, %411 : vector<24x24xf32>
    %413 = arith.truncf %412 : vector<24x24xf32> to vector<24x24xbf16>
    %414 = arith.truncf %397 : vector<24x8xf32> to vector<24x8xbf16>
    %cst_283 = arith.constant dense<0.000000e+00> : vector<24x8xf32>
    %415 = tpu.matmul %413, %414, %cst_283 {dimension_numbers = #tpu.dot_dimension_numbers<[1], [0], [0], [1], [0, 0, 1, 1], [], []>} : vector<24x24xbf16>, vector<24x8xbf16>, vector<24x8xf32> -> vector<24x8xf32>
    %416 = arith.truncf %415 : vector<24x8xf32> to vector<24x8xbf16>
    %c1_284 = arith.constant 1 : index
    %c1_285 = arith.constant 1 : index
    %c0_286 = arith.constant 0 : index
    %c0_287 = arith.constant 0 : index
    %417 = vector.load %arg10[%c1_284, %c1_285, %c0_286, %c0_287] : memref<2x4x8x32xbf16, #tpu.memory_space<vmem>>, vector<1x1x8x32xbf16>
    %418 = vector.shape_cast %417 : vector<1x1x8x32xbf16> to vector<8x32xbf16>
    %cst_288 = arith.constant dense<0.000000e+00> : vector<24x32xf32>
    %419 = tpu.matmul %416, %418, %cst_288 {dimension_numbers = #tpu.dot_dimension_numbers<[1], [0], [0], [1], [0, 0, 1, 1], [], []>} : vector<24x8xbf16>, vector<8x32xbf16>, vector<24x32xf32> -> vector<24x32xf32>
    %420 = arith.addf %376, %419 : vector<24x32xf32>
    %c1_289 = arith.constant 1 : index
    %c2_290 = arith.constant 2 : index
    %c0_291 = arith.constant 0 : index
    %c0_292 = arith.constant 0 : index
    %421 = vector.load %arg4[%c1_289, %c2_290, %c0_291, %c0_292] : memref<2x4x32x8xbf16, #tpu.memory_space<vmem>>, vector<1x1x32x8xbf16>
    %422 = vector.shape_cast %421 : vector<1x1x32x8xbf16> to vector<32x8xbf16>
    %cst_293 = arith.constant dense<0.000000e+00> : vector<24x8xf32>
    %423 = tpu.matmul %331, %422, %cst_293 {dimension_numbers = #tpu.dot_dimension_numbers<[1], [0], [0], [1], [0, 0, 1, 1], [], []>} : vector<24x32xbf16>, vector<32x8xbf16>, vector<24x8xf32> -> vector<24x8xf32>
    %c1_294 = arith.constant 1 : index
    %c2_295 = arith.constant 2 : index
    %c0_296 = arith.constant 0 : index
    %c0_297 = arith.constant 0 : index
    %424 = vector.load %arg7[%c1_294, %c2_295, %c0_296, %c0_297] : memref<2x4x1x8xf32, #tpu.memory_space<vmem>>, vector<1x1x1x8xf32>
    %425 = vector.shape_cast %424 : vector<1x1x1x8xf32> to vector<1x8xf32>
    %426 = vector.broadcast %425 : vector<1x8xf32> to vector<24x8xf32>
    %427 = arith.addf %423, %426 : vector<24x8xf32>
    %c1_298 = arith.constant 1 : index
    %c2_299 = arith.constant 2 : index
    %c0_300 = arith.constant 0 : index
    %c0_301 = arith.constant 0 : index
    %428 = vector.load %arg5[%c1_298, %c2_299, %c0_300, %c0_301] : memref<2x4x32x8xbf16, #tpu.memory_space<vmem>>, vector<1x1x32x8xbf16>
    %429 = vector.shape_cast %428 : vector<1x1x32x8xbf16> to vector<32x8xbf16>
    %cst_302 = arith.constant dense<0.000000e+00> : vector<24x8xf32>
    %430 = tpu.matmul %331, %429, %cst_302 {dimension_numbers = #tpu.dot_dimension_numbers<[1], [0], [0], [1], [0, 0, 1, 1], [], []>} : vector<24x32xbf16>, vector<32x8xbf16>, vector<24x8xf32> -> vector<24x8xf32>
    %c1_303 = arith.constant 1 : index
    %c2_304 = arith.constant 2 : index
    %c0_305 = arith.constant 0 : index
    %c0_306 = arith.constant 0 : index
    %431 = vector.load %arg8[%c1_303, %c2_304, %c0_305, %c0_306] : memref<2x4x1x8xf32, #tpu.memory_space<vmem>>, vector<1x1x1x8xf32>
    %432 = vector.shape_cast %431 : vector<1x1x1x8xf32> to vector<1x8xf32>
    %433 = vector.broadcast %432 : vector<1x8xf32> to vector<24x8xf32>
    %434 = arith.addf %430, %433 : vector<24x8xf32>
    %c1_307 = arith.constant 1 : index
    %c2_308 = arith.constant 2 : index
    %c0_309 = arith.constant 0 : index
    %c0_310 = arith.constant 0 : index
    %435 = vector.load %arg6[%c1_307, %c2_308, %c0_309, %c0_310] : memref<2x4x32x8xbf16, #tpu.memory_space<vmem>>, vector<1x1x32x8xbf16>
    %436 = vector.shape_cast %435 : vector<1x1x32x8xbf16> to vector<32x8xbf16>
    %cst_311 = arith.constant dense<0.000000e+00> : vector<24x8xf32>
    %437 = tpu.matmul %331, %436, %cst_311 {dimension_numbers = #tpu.dot_dimension_numbers<[1], [0], [0], [1], [0, 0, 1, 1], [], []>} : vector<24x32xbf16>, vector<32x8xbf16>, vector<24x8xf32> -> vector<24x8xf32>
    %c1_312 = arith.constant 1 : index
    %c2_313 = arith.constant 2 : index
    %c0_314 = arith.constant 0 : index
    %c0_315 = arith.constant 0 : index
    %438 = vector.load %arg9[%c1_312, %c2_313, %c0_314, %c0_315] : memref<2x4x1x8xf32, #tpu.memory_space<vmem>>, vector<1x1x1x8xf32>
    %439 = vector.shape_cast %438 : vector<1x1x1x8xf32> to vector<1x8xf32>
    %440 = vector.broadcast %439 : vector<1x8xf32> to vector<24x8xf32>
    %441 = arith.addf %437, %440 : vector<24x8xf32>
    %442 = arith.truncf %427 : vector<24x8xf32> to vector<24x8xbf16>
    %443 = arith.truncf %434 : vector<24x8xf32> to vector<24x8xbf16>
    %cst_316 = arith.constant dense<0.000000e+00> : vector<24x24xf32>
    %444 = tpu.matmul %442, %443, %cst_316 {dimension_numbers = #tpu.dot_dimension_numbers<[1], [1], [0], [0], [0, 0, 1, 0], [], []>} : vector<24x8xbf16>, vector<24x8xbf16>, vector<24x24xf32> -> vector<24x24xf32>
    %445 = vector.broadcast %11 : vector<1x24xf32> to vector<24x24xf32>
    %446 = arith.addf %444, %445 : vector<24x24xf32>
    %cst_317 = arith.constant dense<0xFF800000> : vector<24xf32>
    %447 = vector.multi_reduction <maximumf>, %446, %cst_317 [1] : vector<24x24xf32> to vector<24xf32>
    %448 = vector.shape_cast %447 : vector<24xf32> to vector<24x1xf32>
    %449 = vector.broadcast %448 : vector<24x1xf32> to vector<24x24xf32>
    %450 = arith.subf %446, %449 : vector<24x24xf32>
    %451 = math.exp %450 : vector<24x24xf32>
    %cst_318 = arith.constant dense<0.000000e+00> : vector<24xf32>
    %452 = vector.multi_reduction <add>, %451, %cst_318 [1] : vector<24x24xf32> to vector<24xf32>
    %453 = vector.shape_cast %452 : vector<24xf32> to vector<24x1xf32>
    %454 = tpu.reciprocal %453 {approx = true} : vector<24x1xf32> -> vector<24x1xf32>
    %455 = vector.broadcast %454 : vector<24x1xf32> to vector<24x24xf32>
    %456 = arith.mulf %451, %455 : vector<24x24xf32>
    %457 = arith.truncf %456 : vector<24x24xf32> to vector<24x24xbf16>
    %458 = arith.truncf %441 : vector<24x8xf32> to vector<24x8xbf16>
    %cst_319 = arith.constant dense<0.000000e+00> : vector<24x8xf32>
    %459 = tpu.matmul %457, %458, %cst_319 {dimension_numbers = #tpu.dot_dimension_numbers<[1], [0], [0], [1], [0, 0, 1, 1], [], []>} : vector<24x24xbf16>, vector<24x8xbf16>, vector<24x8xf32> -> vector<24x8xf32>
    %460 = arith.truncf %459 : vector<24x8xf32> to vector<24x8xbf16>
    %c1_320 = arith.constant 1 : index
    %c2_321 = arith.constant 2 : index
    %c0_322 = arith.constant 0 : index
    %c0_323 = arith.constant 0 : index
    %461 = vector.load %arg10[%c1_320, %c2_321, %c0_322, %c0_323] : memref<2x4x8x32xbf16, #tpu.memory_space<vmem>>, vector<1x1x8x32xbf16>
    %462 = vector.shape_cast %461 : vector<1x1x8x32xbf16> to vector<8x32xbf16>
    %cst_324 = arith.constant dense<0.000000e+00> : vector<24x32xf32>
    %463 = tpu.matmul %460, %462, %cst_324 {dimension_numbers = #tpu.dot_dimension_numbers<[1], [0], [0], [1], [0, 0, 1, 1], [], []>} : vector<24x8xbf16>, vector<8x32xbf16>, vector<24x32xf32> -> vector<24x32xf32>
    %464 = arith.addf %420, %463 : vector<24x32xf32>
    %c1_325 = arith.constant 1 : index
    %c3_326 = arith.constant 3 : index
    %c0_327 = arith.constant 0 : index
    %c0_328 = arith.constant 0 : index
    %465 = vector.load %arg4[%c1_325, %c3_326, %c0_327, %c0_328] : memref<2x4x32x8xbf16, #tpu.memory_space<vmem>>, vector<1x1x32x8xbf16>
    %466 = vector.shape_cast %465 : vector<1x1x32x8xbf16> to vector<32x8xbf16>
    %cst_329 = arith.constant dense<0.000000e+00> : vector<24x8xf32>
    %467 = tpu.matmul %331, %466, %cst_329 {dimension_numbers = #tpu.dot_dimension_numbers<[1], [0], [0], [1], [0, 0, 1, 1], [], []>} : vector<24x32xbf16>, vector<32x8xbf16>, vector<24x8xf32> -> vector<24x8xf32>
    %c1_330 = arith.constant 1 : index
    %c3_331 = arith.constant 3 : index
    %c0_332 = arith.constant 0 : index
    %c0_333 = arith.constant 0 : index
    %468 = vector.load %arg7[%c1_330, %c3_331, %c0_332, %c0_333] : memref<2x4x1x8xf32, #tpu.memory_space<vmem>>, vector<1x1x1x8xf32>
    %469 = vector.shape_cast %468 : vector<1x1x1x8xf32> to vector<1x8xf32>
    %470 = vector.broadcast %469 : vector<1x8xf32> to vector<24x8xf32>
    %471 = arith.addf %467, %470 : vector<24x8xf32>
    %c1_334 = arith.constant 1 : index
    %c3_335 = arith.constant 3 : index
    %c0_336 = arith.constant 0 : index
    %c0_337 = arith.constant 0 : index
    %472 = vector.load %arg5[%c1_334, %c3_335, %c0_336, %c0_337] : memref<2x4x32x8xbf16, #tpu.memory_space<vmem>>, vector<1x1x32x8xbf16>
    %473 = vector.shape_cast %472 : vector<1x1x32x8xbf16> to vector<32x8xbf16>
    %cst_338 = arith.constant dense<0.000000e+00> : vector<24x8xf32>
    %474 = tpu.matmul %331, %473, %cst_338 {dimension_numbers = #tpu.dot_dimension_numbers<[1], [0], [0], [1], [0, 0, 1, 1], [], []>} : vector<24x32xbf16>, vector<32x8xbf16>, vector<24x8xf32> -> vector<24x8xf32>
    %c1_339 = arith.constant 1 : index
    %c3_340 = arith.constant 3 : index
    %c0_341 = arith.constant 0 : index
    %c0_342 = arith.constant 0 : index
    %475 = vector.load %arg8[%c1_339, %c3_340, %c0_341, %c0_342] : memref<2x4x1x8xf32, #tpu.memory_space<vmem>>, vector<1x1x1x8xf32>
    %476 = vector.shape_cast %475 : vector<1x1x1x8xf32> to vector<1x8xf32>
    %477 = vector.broadcast %476 : vector<1x8xf32> to vector<24x8xf32>
    %478 = arith.addf %474, %477 : vector<24x8xf32>
    %c1_343 = arith.constant 1 : index
    %c3_344 = arith.constant 3 : index
    %c0_345 = arith.constant 0 : index
    %c0_346 = arith.constant 0 : index
    %479 = vector.load %arg6[%c1_343, %c3_344, %c0_345, %c0_346] : memref<2x4x32x8xbf16, #tpu.memory_space<vmem>>, vector<1x1x32x8xbf16>
    %480 = vector.shape_cast %479 : vector<1x1x32x8xbf16> to vector<32x8xbf16>
    %cst_347 = arith.constant dense<0.000000e+00> : vector<24x8xf32>
    %481 = tpu.matmul %331, %480, %cst_347 {dimension_numbers = #tpu.dot_dimension_numbers<[1], [0], [0], [1], [0, 0, 1, 1], [], []>} : vector<24x32xbf16>, vector<32x8xbf16>, vector<24x8xf32> -> vector<24x8xf32>
    %c1_348 = arith.constant 1 : index
    %c3_349 = arith.constant 3 : index
    %c0_350 = arith.constant 0 : index
    %c0_351 = arith.constant 0 : index
    %482 = vector.load %arg9[%c1_348, %c3_349, %c0_350, %c0_351] : memref<2x4x1x8xf32, #tpu.memory_space<vmem>>, vector<1x1x1x8xf32>
    %483 = vector.shape_cast %482 : vector<1x1x1x8xf32> to vector<1x8xf32>
    %484 = vector.broadcast %483 : vector<1x8xf32> to vector<24x8xf32>
    %485 = arith.addf %481, %484 : vector<24x8xf32>
    %486 = arith.truncf %471 : vector<24x8xf32> to vector<24x8xbf16>
    %487 = arith.truncf %478 : vector<24x8xf32> to vector<24x8xbf16>
    %cst_352 = arith.constant dense<0.000000e+00> : vector<24x24xf32>
    %488 = tpu.matmul %486, %487, %cst_352 {dimension_numbers = #tpu.dot_dimension_numbers<[1], [1], [0], [0], [0, 0, 1, 0], [], []>} : vector<24x8xbf16>, vector<24x8xbf16>, vector<24x24xf32> -> vector<24x24xf32>
    %489 = vector.broadcast %11 : vector<1x24xf32> to vector<24x24xf32>
    %490 = arith.addf %488, %489 : vector<24x24xf32>
    %cst_353 = arith.constant dense<0xFF800000> : vector<24xf32>
    %491 = vector.multi_reduction <maximumf>, %490, %cst_353 [1] : vector<24x24xf32> to vector<24xf32>
    %492 = vector.shape_cast %491 : vector<24xf32> to vector<24x1xf32>
    %493 = vector.broadcast %492 : vector<24x1xf32> to vector<24x24xf32>
    %494 = arith.subf %490, %493 : vector<24x24xf32>
    %495 = math.exp %494 : vector<24x24xf32>
    %cst_354 = arith.constant dense<0.000000e+00> : vector<24xf32>
    %496 = vector.multi_reduction <add>, %495, %cst_354 [1] : vector<24x24xf32> to vector<24xf32>
    %497 = vector.shape_cast %496 : vector<24xf32> to vector<24x1xf32>
    %498 = tpu.reciprocal %497 {approx = true} : vector<24x1xf32> -> vector<24x1xf32>
    %499 = vector.broadcast %498 : vector<24x1xf32> to vector<24x24xf32>
    %500 = arith.mulf %495, %499 : vector<24x24xf32>
    %501 = arith.truncf %500 : vector<24x24xf32> to vector<24x24xbf16>
    %502 = arith.truncf %485 : vector<24x8xf32> to vector<24x8xbf16>
    %cst_355 = arith.constant dense<0.000000e+00> : vector<24x8xf32>
    %503 = tpu.matmul %501, %502, %cst_355 {dimension_numbers = #tpu.dot_dimension_numbers<[1], [0], [0], [1], [0, 0, 1, 1], [], []>} : vector<24x24xbf16>, vector<24x8xbf16>, vector<24x8xf32> -> vector<24x8xf32>
    %504 = arith.truncf %503 : vector<24x8xf32> to vector<24x8xbf16>
    %c1_356 = arith.constant 1 : index
    %c3_357 = arith.constant 3 : index
    %c0_358 = arith.constant 0 : index
    %c0_359 = arith.constant 0 : index
    %505 = vector.load %arg10[%c1_356, %c3_357, %c0_358, %c0_359] : memref<2x4x8x32xbf16, #tpu.memory_space<vmem>>, vector<1x1x8x32xbf16>
    %506 = vector.shape_cast %505 : vector<1x1x8x32xbf16> to vector<8x32xbf16>
    %cst_360 = arith.constant dense<0.000000e+00> : vector<24x32xf32>
    %507 = tpu.matmul %504, %506, %cst_360 {dimension_numbers = #tpu.dot_dimension_numbers<[1], [0], [0], [1], [0, 0, 1, 1], [], []>} : vector<24x8xbf16>, vector<8x32xbf16>, vector<24x32xf32> -> vector<24x32xf32>
    %508 = arith.addf %464, %507 : vector<24x32xf32>
    %509 = arith.addf %304, %508 : vector<24x32xf32>
    %c1_361 = arith.constant 1 : index
    %c0_362 = arith.constant 0 : index
    %c0_363 = arith.constant 0 : index
    %510 = vector.load %arg11[%c1_361, %c0_362, %c0_363] : memref<2x1x32xf32, #tpu.memory_space<vmem>>, vector<1x1x32xf32>
    %511 = vector.shape_cast %510 : vector<1x1x32xf32> to vector<1x32xf32>
    %512 = vector.broadcast %511 : vector<1x32xf32> to vector<24x32xf32>
    %513 = arith.addf %509, %512 : vector<24x32xf32>
    %c1_364 = arith.constant 1 : index
    %c0_365 = arith.constant 0 : index
    %c0_366 = arith.constant 0 : index
    %514 = vector.load %arg14[%c1_364, %c0_365, %c0_366] : memref<2x1x32xf32, #tpu.memory_space<vmem>>, vector<1x1x32xf32>
    %515 = vector.shape_cast %514 : vector<1x1x32xf32> to vector<1x32xf32>
    %c1_367 = arith.constant 1 : index
    %c0_368 = arith.constant 0 : index
    %c0_369 = arith.constant 0 : index
    %516 = vector.load %arg15[%c1_367, %c0_368, %c0_369] : memref<2x1x32xf32, #tpu.memory_space<vmem>>, vector<1x1x32xf32>
    %517 = vector.shape_cast %516 : vector<1x1x32xf32> to vector<1x32xf32>
    %cst_370 = arith.constant dense<0.000000e+00> : vector<24xf32>
    %518 = vector.multi_reduction <add>, %513, %cst_370 [1] : vector<24x32xf32> to vector<24xf32>
    %519 = vector.shape_cast %518 : vector<24xf32> to vector<24x1xf32>
    %cst_371 = arith.constant 3.200000e+01 : f32
    %520 = vector.broadcast %cst_371 : f32 to vector<24x1xf32>
    %521 = arith.divf %519, %520 : vector<24x1xf32>
    %522 = vector.broadcast %521 : vector<24x1xf32> to vector<24x32xf32>
    %523 = arith.subf %513, %522 : vector<24x32xf32>
    %524 = arith.mulf %523, %523 : vector<24x32xf32>
    %cst_372 = arith.constant dense<0.000000e+00> : vector<24xf32>
    %525 = vector.multi_reduction <add>, %524, %cst_372 [1] : vector<24x32xf32> to vector<24xf32>
    %526 = vector.shape_cast %525 : vector<24xf32> to vector<24x1xf32>
    %cst_373 = arith.constant 3.200000e+01 : f32
    %527 = vector.broadcast %cst_373 : f32 to vector<24x1xf32>
    %528 = arith.divf %526, %527 : vector<24x1xf32>
    %529 = vector.broadcast %521 : vector<24x1xf32> to vector<24x32xf32>
    %530 = arith.subf %513, %529 : vector<24x32xf32>
    %cst_374 = arith.constant 9.99999974E-6 : f32
    %531 = vector.broadcast %cst_374 : f32 to vector<24x1xf32>
    %532 = arith.addf %528, %531 : vector<24x1xf32>
    %533 = math.rsqrt %532 : vector<24x1xf32>
    %534 = vector.broadcast %533 : vector<24x1xf32> to vector<24x32xf32>
    %535 = arith.mulf %530, %534 : vector<24x32xf32>
    %536 = vector.broadcast %515 : vector<1x32xf32> to vector<24x32xf32>
    %537 = arith.mulf %535, %536 : vector<24x32xf32>
    %538 = vector.broadcast %517 : vector<1x32xf32> to vector<24x32xf32>
    %539 = arith.addf %537, %538 : vector<24x32xf32>
    %540 = arith.truncf %539 : vector<24x32xf32> to vector<24x32xbf16>
    %c1_375 = arith.constant 1 : index
    %c0_376 = arith.constant 0 : index
    %c0_377 = arith.constant 0 : index
    %541 = vector.load %arg16[%c1_375, %c0_376, %c0_377] : memref<2x32x64xbf16, #tpu.memory_space<vmem>>, vector<1x32x64xbf16>
    %542 = vector.shape_cast %541 : vector<1x32x64xbf16> to vector<32x64xbf16>
    %cst_378 = arith.constant dense<0.000000e+00> : vector<24x64xf32>
    %543 = tpu.matmul %540, %542, %cst_378 {dimension_numbers = #tpu.dot_dimension_numbers<[1], [0], [0], [1], [0, 0, 1, 1], [], []>} : vector<24x32xbf16>, vector<32x64xbf16>, vector<24x64xf32> -> vector<24x64xf32>
    %c1_379 = arith.constant 1 : index
    %c0_380 = arith.constant 0 : index
    %c0_381 = arith.constant 0 : index
    %544 = vector.load %arg17[%c1_379, %c0_380, %c0_381] : memref<2x1x64xf32, #tpu.memory_space<vmem>>, vector<1x1x64xf32>
    %545 = vector.shape_cast %544 : vector<1x1x64xf32> to vector<1x64xf32>
    %546 = vector.broadcast %545 : vector<1x64xf32> to vector<24x64xf32>
    %547 = arith.addf %543, %546 : vector<24x64xf32>
    %cst_382 = arith.constant 5.000000e-01 : f32
    %548 = vector.broadcast %cst_382 : f32 to vector<24x64xf32>
    %549 = arith.mulf %548, %547 : vector<24x64xf32>
    %cst_383 = arith.constant 0.707106769 : f32
    %550 = vector.broadcast %cst_383 : f32 to vector<24x64xf32>
    %551 = arith.mulf %547, %550 : vector<24x64xf32>
    %cst_384 = arith.constant 0.000000e+00 : f32
    %552 = vector.broadcast %cst_384 : f32 to vector<24x64xf32>
    %553 = arith.cmpf oge, %551, %552 : vector<24x64xf32>
    %cst_385 = arith.constant 1.000000e+00 : f32
    %cst_386 = arith.constant -1.000000e+00 : f32
    %554 = vector.broadcast %cst_385 : f32 to vector<24x64xf32>
    %555 = vector.broadcast %cst_386 : f32 to vector<24x64xf32>
    %556 = arith.select %553, %554, %555 : vector<24x64xi1>, vector<24x64xf32>
    %557 = math.absf %551 : vector<24x64xf32>
    %cst_387 = arith.constant 0.327591091 : f32
    %558 = vector.broadcast %cst_387 : f32 to vector<24x64xf32>
    %559 = arith.mulf %558, %557 : vector<24x64xf32>
    %cst_388 = arith.constant 1.000000e+00 : f32
    %560 = vector.broadcast %cst_388 : f32 to vector<24x64xf32>
    %561 = arith.addf %560, %559 : vector<24x64xf32>
    %cst_389 = arith.constant 1.000000e+00 : f32
    %562 = vector.broadcast %cst_389 : f32 to vector<24x64xf32>
    %563 = arith.divf %562, %561 : vector<24x64xf32>
    %cst_390 = arith.constant 1.06140542 : f32
    %564 = vector.broadcast %cst_390 : f32 to vector<24x64xf32>
    %565 = arith.mulf %564, %563 : vector<24x64xf32>
    %cst_391 = arith.constant -1.45315206 : f32
    %566 = vector.broadcast %cst_391 : f32 to vector<24x64xf32>
    %567 = arith.addf %565, %566 : vector<24x64xf32>
    %568 = arith.mulf %567, %563 : vector<24x64xf32>
    %cst_392 = arith.constant 1.42141378 : f32
    %569 = vector.broadcast %cst_392 : f32 to vector<24x64xf32>
    %570 = arith.addf %568, %569 : vector<24x64xf32>
    %571 = arith.mulf %570, %563 : vector<24x64xf32>
    %cst_393 = arith.constant -0.284496725 : f32
    %572 = vector.broadcast %cst_393 : f32 to vector<24x64xf32>
    %573 = arith.addf %571, %572 : vector<24x64xf32>
    %574 = arith.mulf %573, %563 : vector<24x64xf32>
    %cst_394 = arith.constant 0.254829586 : f32
    %575 = vector.broadcast %cst_394 : f32 to vector<24x64xf32>
    %576 = arith.addf %574, %575 : vector<24x64xf32>
    %577 = arith.mulf %576, %563 : vector<24x64xf32>
    %cst_395 = arith.constant 0.000000e+00 : f32
    %578 = vector.broadcast %cst_395 : f32 to vector<24x64xf32>
    %579 = arith.subf %578, %557 : vector<24x64xf32>
    %580 = arith.mulf %579, %557 : vector<24x64xf32>
    %581 = math.exp %580 : vector<24x64xf32>
    %582 = arith.mulf %577, %581 : vector<24x64xf32>
    %cst_396 = arith.constant 1.000000e+00 : f32
    %583 = vector.broadcast %cst_396 : f32 to vector<24x64xf32>
    %584 = arith.subf %583, %582 : vector<24x64xf32>
    %585 = arith.mulf %556, %584 : vector<24x64xf32>
    %cst_397 = arith.constant 1.000000e+00 : f32
    %586 = vector.broadcast %cst_397 : f32 to vector<24x64xf32>
    %587 = arith.addf %586, %585 : vector<24x64xf32>
    %588 = arith.mulf %549, %587 : vector<24x64xf32>
    %589 = arith.truncf %588 : vector<24x64xf32> to vector<24x64xbf16>
    %c1_398 = arith.constant 1 : index
    %c0_399 = arith.constant 0 : index
    %c0_400 = arith.constant 0 : index
    %590 = vector.load %arg18[%c1_398, %c0_399, %c0_400] : memref<2x64x32xbf16, #tpu.memory_space<vmem>>, vector<1x64x32xbf16>
    %591 = vector.shape_cast %590 : vector<1x64x32xbf16> to vector<64x32xbf16>
    %cst_401 = arith.constant dense<0.000000e+00> : vector<24x32xf32>
    %592 = tpu.matmul %589, %591, %cst_401 {dimension_numbers = #tpu.dot_dimension_numbers<[1], [0], [0], [1], [0, 0, 1, 1], [], []>} : vector<24x64xbf16>, vector<64x32xbf16>, vector<24x32xf32> -> vector<24x32xf32>
    %c1_402 = arith.constant 1 : index
    %c0_403 = arith.constant 0 : index
    %c0_404 = arith.constant 0 : index
    %593 = vector.load %arg19[%c1_402, %c0_403, %c0_404] : memref<2x1x32xf32, #tpu.memory_space<vmem>>, vector<1x1x32xf32>
    %594 = vector.shape_cast %593 : vector<1x1x32xf32> to vector<1x32xf32>
    %595 = vector.broadcast %594 : vector<1x32xf32> to vector<24x32xf32>
    %596 = arith.addf %592, %595 : vector<24x32xf32>
    %597 = arith.addf %513, %596 : vector<24x32xf32>
    %598 = vector.extract_strided_slice %597 {offsets = [0, 0], sizes = [1, 32], strides = [1, 1]} : vector<24x32xf32> to vector<1x32xf32>
    %c0_405 = arith.constant 0 : index
    %c0_406 = arith.constant 0 : index
    %599 = vector.load %arg20[%c0_405, %c0_406] : memref<1x32xf32, #tpu.memory_space<vmem>>, vector<1x32xf32>
    %c0_407 = arith.constant 0 : index
    %c0_408 = arith.constant 0 : index
    %600 = vector.load %arg21[%c0_407, %c0_408] : memref<1x32xf32, #tpu.memory_space<vmem>>, vector<1x32xf32>
    %cst_409 = arith.constant dense<0.000000e+00> : vector<1xf32>
    %601 = vector.multi_reduction <add>, %598, %cst_409 [1] : vector<1x32xf32> to vector<1xf32>
    %602 = vector.shape_cast %601 : vector<1xf32> to vector<1x1xf32>
    %cst_410 = arith.constant 3.200000e+01 : f32
    %603 = vector.broadcast %cst_410 : f32 to vector<1x1xf32>
    %604 = arith.divf %602, %603 : vector<1x1xf32>
    %605 = vector.broadcast %604 : vector<1x1xf32> to vector<1x32xf32>
    %606 = arith.subf %598, %605 : vector<1x32xf32>
    %607 = arith.mulf %606, %606 : vector<1x32xf32>
    %cst_411 = arith.constant dense<0.000000e+00> : vector<1xf32>
    %608 = vector.multi_reduction <add>, %607, %cst_411 [1] : vector<1x32xf32> to vector<1xf32>
    %609 = vector.shape_cast %608 : vector<1xf32> to vector<1x1xf32>
    %cst_412 = arith.constant 3.200000e+01 : f32
    %610 = vector.broadcast %cst_412 : f32 to vector<1x1xf32>
    %611 = arith.divf %609, %610 : vector<1x1xf32>
    %612 = vector.broadcast %604 : vector<1x1xf32> to vector<1x32xf32>
    %613 = arith.subf %598, %612 : vector<1x32xf32>
    %cst_413 = arith.constant 9.99999974E-6 : f32
    %614 = vector.broadcast %cst_413 : f32 to vector<1x1xf32>
    %615 = arith.addf %611, %614 : vector<1x1xf32>
    %616 = math.rsqrt %615 : vector<1x1xf32>
    %617 = vector.broadcast %616 : vector<1x1xf32> to vector<1x32xf32>
    %618 = arith.mulf %613, %617 : vector<1x32xf32>
    %619 = arith.mulf %618, %599 : vector<1x32xf32>
    %620 = arith.addf %619, %600 : vector<1x32xf32>
    %621 = arith.truncf %620 : vector<1x32xf32> to vector<1x32xbf16>
    %c0_414 = arith.constant 0 : index
    %c0_415 = arith.constant 0 : index
    %622 = vector.load %arg22[%c0_414, %c0_415] : memref<32x128xbf16, #tpu.memory_space<vmem>>, vector<32x128xbf16>
    %cst_416 = arith.constant dense<0.000000e+00> : vector<1x128xf32>
    %623 = tpu.matmul %621, %622, %cst_416 {dimension_numbers = #tpu.dot_dimension_numbers<[1], [0], [0], [1], [0, 0, 1, 1], [], []>} : vector<1x32xbf16>, vector<32x128xbf16>, vector<1x128xf32> -> vector<1x128xf32>
    %c0_417 = arith.constant 0 : index
    %c0_418 = arith.constant 0 : index
    %624 = vector.load %arg23[%c0_417, %c0_418] : memref<1x128xf32, #tpu.memory_space<vmem>>, vector<1x128xf32>
    %625 = arith.addf %623, %624 : vector<1x128xf32>
    %c0_419 = arith.constant 0 : index
    %c0_420 = arith.constant 0 : index
    %c0_421 = arith.constant 0 : index
    %626 = vector.load %arg24[%c0_419, %c0_420, %c0_421] : memref<1x1x128xf32, #tpu.memory_space<vmem>>, vector<1x1x128xf32>
    %627 = vector.shape_cast %626 : vector<1x1x128xf32> to vector<1x128xf32>
    %628 = vector.shape_cast %625 : vector<1x128xf32> to vector<1x1x128xf32>
    tpu.vector_store %arg24[%c0_419, %c0_420, %c0_421], %628 {strides = array<i32>} : memref<1x1x128xf32, #tpu.memory_space<vmem>>, vector<1x1x128xf32>,
    return
  }
  func.func @transform_0(%arg0: i32) -> (i32, i32, i32) {
    %c0_i32 = arith.constant 0 : i32
    %c0_i32_0 = arith.constant 0 : i32
    %c0_i32_1 = arith.constant 0 : i32
    return %arg0, %c0_i32, %c0_i32_0 : i32, i32, i32
  }
  func.func @transform_1(%arg0: i32) -> (i32, i32) {
    %c0_i32 = arith.constant 0 : i32
    %c0_i32_0 = arith.constant 0 : i32
    %c0_i32_1 = arith.constant 0 : i32
    return %c0_i32, %c0_i32_0 : i32, i32
  }
  func.func @transform_2(%arg0: i32) -> (i32, i32) {
    %c0_i32 = arith.constant 0 : i32
    %c0_i32_0 = arith.constant 0 : i32
    %c0_i32_1 = arith.constant 0 : i32
    return %c0_i32, %c0_i32_0 : i32, i32
  }
  func.func @transform_3(%arg0: i32) -> (i32, i32, i32, i32) {
    %c0_i32 = arith.constant 0 : i32
    %c0_i32_0 = arith.constant 0 : i32
    %c0_i32_1 = arith.constant 0 : i32
    %c0_i32_2 = arith.constant 0 : i32
    %c0_i32_3 = arith.constant 0 : i32
    return %c0_i32, %c0_i32_0, %c0_i32_1, %c0_i32_2 : i32, i32, i32, i32
  }
  func.func @transform_4(%arg0: i32) -> (i32, i32, i32, i32) {
    %c0_i32 = arith.constant 0 : i32
    %c0_i32_0 = arith.constant 0 : i32
    %c0_i32_1 = arith.constant 0 : i32
    %c0_i32_2 = arith.constant 0 : i32
    %c0_i32_3 = arith.constant 0 : i32
    return %c0_i32, %c0_i32_0, %c0_i32_1, %c0_i32_2 : i32, i32, i32, i32
  }
  func.func @transform_5(%arg0: i32) -> (i32, i32, i32, i32) {
    %c0_i32 = arith.constant 0 : i32
    %c0_i32_0 = arith.constant 0 : i32
    %c0_i32_1 = arith.constant 0 : i32
    %c0_i32_2 = arith.constant 0 : i32
    %c0_i32_3 = arith.constant 0 : i32
    return %c0_i32, %c0_i32_0, %c0_i32_1, %c0_i32_2 : i32, i32, i32, i32
  }
  func.func @transform_6(%arg0: i32) -> (i32, i32, i32, i32) {
    %c0_i32 = arith.constant 0 : i32
    %c0_i32_0 = arith.constant 0 : i32
    %c0_i32_1 = arith.constant 0 : i32
    %c0_i32_2 = arith.constant 0 : i32
    %c0_i32_3 = arith.constant 0 : i32
    return %c0_i32, %c0_i32_0, %c0_i32_1, %c0_i32_2 : i32, i32, i32, i32
  }
  func.func @transform_7(%arg0: i32) -> (i32, i32, i32, i32) {
    %c0_i32 = arith.constant 0 : i32
    %c0_i32_0 = arith.constant 0 : i32
    %c0_i32_1 = arith.constant 0 : i32
    %c0_i32_2 = arith.constant 0 : i32
    %c0_i32_3 = arith.constant 0 : i32
    return %c0_i32, %c0_i32_0, %c0_i32_1, %c0_i32_2 : i32, i32, i32, i32
  }
  func.func @transform_8(%arg0: i32) -> (i32, i32, i32, i32) {
    %c0_i32 = arith.constant 0 : i32
    %c0_i32_0 = arith.constant 0 : i32
    %c0_i32_1 = arith.constant 0 : i32
    %c0_i32_2 = arith.constant 0 : i32
    %c0_i32_3 = arith.constant 0 : i32
    return %c0_i32, %c0_i32_0, %c0_i32_1, %c0_i32_2 : i32, i32, i32, i32
  }
  func.func @transform_9(%arg0: i32) -> (i32, i32, i32, i32) {
    %c0_i32 = arith.constant 0 : i32
    %c0_i32_0 = arith.constant 0 : i32
    %c0_i32_1 = arith.constant 0 : i32
    %c0_i32_2 = arith.constant 0 : i32
    %c0_i32_3 = arith.constant 0 : i32
    return %c0_i32, %c0_i32_0, %c0_i32_1, %c0_i32_2 : i32, i32, i32, i32
  }
  func.func @transform_10(%arg0: i32) -> (i32, i32, i32) {
    %c0_i32 = arith.constant 0 : i32
    %c0_i32_0 = arith.constant 0 : i32
    %c0_i32_1 = arith.constant 0 : i32
    %c0_i32_2 = arith.constant 0 : i32
    return %c0_i32, %c0_i32_0, %c0_i32_1 : i32, i32, i32
  }
  func.func @transform_11(%arg0: i32) -> (i32, i32, i32) {
    %c0_i32 = arith.constant 0 : i32
    %c0_i32_0 = arith.constant 0 : i32
    %c0_i32_1 = arith.constant 0 : i32
    %c0_i32_2 = arith.constant 0 : i32
    return %c0_i32, %c0_i32_0, %c0_i32_1 : i32, i32, i32
  }
  func.func @transform_12(%arg0: i32) -> (i32, i32, i32) {
    %c0_i32 = arith.constant 0 : i32
    %c0_i32_0 = arith.constant 0 : i32
    %c0_i32_1 = arith.constant 0 : i32
    %c0_i32_2 = arith.constant 0 : i32
    return %c0_i32, %c0_i32_0, %c0_i32_1 : i32, i32, i32
  }
  func.func @transform_13(%arg0: i32) -> (i32, i32, i32) {
    %c0_i32 = arith.constant 0 : i32
    %c0_i32_0 = arith.constant 0 : i32
    %c0_i32_1 = arith.constant 0 : i32
    %c0_i32_2 = arith.constant 0 : i32
    return %c0_i32, %c0_i32_0, %c0_i32_1 : i32, i32, i32
  }
  func.func @transform_14(%arg0: i32) -> (i32, i32, i32) {
    %c0_i32 = arith.constant 0 : i32
    %c0_i32_0 = arith.constant 0 : i32
    %c0_i32_1 = arith.constant 0 : i32
    %c0_i32_2 = arith.constant 0 : i32
    return %c0_i32, %c0_i32_0, %c0_i32_1 : i32, i32, i32
  }
  func.func @transform_15(%arg0: i32) -> (i32, i32, i32) {
    %c0_i32 = arith.constant 0 : i32
    %c0_i32_0 = arith.constant 0 : i32
    %c0_i32_1 = arith.constant 0 : i32
    %c0_i32_2 = arith.constant 0 : i32
    return %c0_i32, %c0_i32_0, %c0_i32_1 : i32, i32, i32
  }
  func.func @transform_16(%arg0: i32) -> (i32, i32, i32) {
    %c0_i32 = arith.constant 0 : i32
    %c0_i32_0 = arith.constant 0 : i32
    %c0_i32_1 = arith.constant 0 : i32
    %c0_i32_2 = arith.constant 0 : i32
    return %c0_i32, %c0_i32_0, %c0_i32_1 : i32, i32, i32
  }
  func.func @transform_17(%arg0: i32) -> (i32, i32, i32) {
    %c0_i32 = arith.constant 0 : i32
    %c0_i32_0 = arith.constant 0 : i32
    %c0_i32_1 = arith.constant 0 : i32
    %c0_i32_2 = arith.constant 0 : i32
    return %c0_i32, %c0_i32_0, %c0_i32_1 : i32, i32, i32
  }
  func.func @transform_18(%arg0: i32) -> (i32, i32, i32) {
    %c0_i32 = arith.constant 0 : i32
    %c0_i32_0 = arith.constant 0 : i32
    %c0_i32_1 = arith.constant 0 : i32
    %c0_i32_2 = arith.constant 0 : i32
    return %c0_i32, %c0_i32_0, %c0_i32_1 : i32, i32, i32
  }
  func.func @transform_19(%arg0: i32) -> (i32, i32) {
    %c0_i32 = arith.constant 0 : i32
    %c0_i32_0 = arith.constant 0 : i32
    %c0_i32_1 = arith.constant 0 : i32
    return %c0_i32, %c0_i32_0 : i32, i32
  }
  func.func @transform_20(%arg0: i32) -> (i32, i32) {
    %c0_i32 = arith.constant 0 : i32
    %c0_i32_0 = arith.constant 0 : i32
    %c0_i32_1 = arith.constant 0 : i32
    return %c0_i32, %c0_i32_0 : i32, i32
  }
  func.func @transform_21(%arg0: i32) -> (i32, i32) {
    %c0_i32 = arith.constant 0 : i32
    %c0_i32_0 = arith.constant 0 : i32
    %c0_i32_1 = arith.constant 0 : i32
    return %c0_i32, %c0_i32_0 : i32, i32
  }
  func.func @transform_22(%arg0: i32) -> (i32, i32) {
    %c0_i32 = arith.constant 0 : i32
    %c0_i32_0 = arith.constant 0 : i32
    %c0_i32_1 = arith.constant 0 : i32
    return %c0_i32, %c0_i32_0 : i32, i32
  }
  func.func @transform_23(%arg0: i32) -> (i32, i32, i32) {
    %c0_i32 = arith.constant 0 : i32
    %c0_i32_0 = arith.constant 0 : i32
    %c0_i32_1 = arith.constant 0 : i32
    return %arg0, %c0_i32, %c0_i32_0 : i32, i32, i32
  }
}

</mosaic_0001>

<bundles_post_ra>
// kernel: vit_forward.1
= control target key start
LH: loop header
LB: loop body
LE: loop exit
PB: predicated region body
PF: predicated region fallthrough
CT: control target
= control target key end

     0   :  { %s7710_s0 = inlined_call_operand.vmem [shape: bf16[2,24,64], index: 0, kind: input, shape index: {}]   ;;  %s7711_s1 = inlined_call_operand.vmem [shape: bf16[64,32], index: 1, kind: input, shape index: {}]   ;;  %s7712_s2 = inlined_call_operand.vmem [shape: f32[24,32], index: 2, kind: input, shape index: {}]   ;;  %s7713_s3 = inlined_call_operand.vmem [shape: bf16[2,4,32,8], index: 3, kind: input, shape index: {}]   ;;  %s7714_s4 = inlined_call_operand.vmem [shape: bf16[2,4,32,8], index: 4, kind: input, shape index: {}]   ;;  %s7715_s5 = inlined_call_operand.vmem [shape: bf16[2,4,32,8], index: 5, kind: input, shape index: {}]   ;;  %s7716_s6 = inlined_call_operand.vmem [shape: f32[2,4,1,8], index: 6, kind: input, shape index: {}]   ;;  %s7717_s7 = inlined_call_operand.vmem [shape: f32[2,4,1,8], index: 7, kind: input, shape index: {}]   ;;  %s7718_s8 = inlined_call_operand.vmem [shape: f32[2,4,1,8], index: 8, kind: input, shape index: {}]   ;;  %s7719_s9 = inlined_call_operand.vmem [shape: bf16[2,4,8,32], index: 9, kind: input, shape index: {}]   ;;  %s7720_s10 = inlined_call_operand.vmem [shape: f32[2,1,32], index: 10, kind: input, shape index: {}]   ;;  %s7721_s11 = inlined_call_operand.vmem [shape: f32[2,1,32], index: 11, kind: input, shape index: {}]   ;;  %s7722_s12 = inlined_call_operand.vmem [shape: f32[2,1,32], index: 12, kind: input, shape index: {}]   ;;  %s7723_s13 = inlined_call_operand.vmem [shape: f32[2,1,32], index: 13, kind: input, shape index: {}]   ;;  %s7724_s14 = inlined_call_operand.vmem [shape: f32[2,1,32], index: 14, kind: input, shape index: {}]   ;;  %s7725_s15 = inlined_call_operand.vmem [shape: bf16[2,32,64], index: 15, kind: input, shape index: {}]   ;;  %s7726_s16 = inlined_call_operand.vmem [shape: f32[2,1,64], index: 16, kind: input, shape index: {}]   ;;  %s7727_s17 = inlined_call_operand.vmem [shape: bf16[2,64,32], index: 17, kind: input, shape index: {}]   ;;  %s7728_s18 = inlined_call_operand.vmem [shape: f32[2,1,32], index: 18, kind: input, shape index: {}]   ;;  %s7729_s19 = inlined_call_operand.vmem [shape: f32[1,32], index: 19, kind: input, shape index: {}]   ;;  %s7730_s20 = inlined_call_operand.vmem [shape: f32[1,32], index: 20, kind: input, shape index: {}]   ;;  %s7731_s21 = inlined_call_operand.vmem [shape: bf16[32,128], index: 21, kind: input, shape index: {}]   ;;  %s7732_s22 = inlined_call_operand.vmem [shape: f32[1,128], index: 22, kind: input, shape index: {}]   ;;  %s7733_s23 = inlined_call_operand.hbm [shape: f32[2,1,128], index: 23, kind: output, shape index: {}]  }
   0x1   :  { %7752 = sst [smem:[#allocation11_spill]] %s7710_s0 }
   0x2   :  { %7753 = sst [smem:[#allocation12_spill]] %s7711_s1 }
   0x3   :  { %7754 = sst [smem:[#allocation13_spill]] %s7712_s2 }
   0x4   :  { %7755 = sst [smem:[#allocation14_spill]] %s7713_s3 }
   0x5   :  { %7756 = sst [smem:[#allocation15_spill]] %s7714_s4 }
   0x6   :  { %7757 = sst [smem:[#allocation16_spill]] %s7715_s5 }
   0x7   :  { %7758 = sst [smem:[#allocation17_spill]] %s7716_s6 }
   0x8   :  { %7759 = sst [smem:[#allocation18_spill]] %s7717_s7 }
   0x9   :  { %7760 = sst [smem:[#allocation19_spill]] %s7718_s8 }
   0xa   :  { %7761 = sst [smem:[#allocation20_spill]] %s7733_s23 }
   0xb   :  { %28 = vsyncpa [#allocation3], 0 }
   0xc   :  { %30 = vsyncpa [#allocation3 + $0x1], 0  ;;  %s6747_s4 = smov 0   ;;  %s6749_s30 = smov 0  }
   0xd   :  { %s6751_s24 = smov 0   ;;  %s6753_s25 = smov 0  }
   0xe LB: > { %7762 = sst [smem:[#allocation5_spill]] %s6608_s4  ;;  %s6768_s5 = sadd.s32 4294967295, %s6620_s25   ;;  %s6620_s25 = sphi %s6753_s25, %s7785_s25   ;;  %s6616_s24 = sphi %s6751_s24, %s7787_s24   ;;  %s6612_s30 = sphi %s6749_s30, %s7789_s30   ;;  %s6608_s4 = sphi %s6747_s4, %s7788_s4  }
   0xf   : > { %7763 = sst [smem:[#allocation6_spill]] %s6616_s24  ;;  %s5275_s1 = sadd.s32 4294967294, %s6620_s25  }
  0x10   : > { %7764 = sst [smem:[#allocation7_spill]] %s6620_s25  ;;  %s6772_s26 = sadd.s32 1, %s6620_s25  }
  0x11   : > { %7765 = sst [smem:[#allocation8_spill]] %s6772_s26  ;;  %s531_s2 = sadd.s32 1, %s6616_s24 }
  0x12   : > { %s528_s6 = ssub.s32 %s6620_s25, %s6772_s26  ;;  %p541_p0 = scmp.ne.s32.totalorder %s6616_s24, %s6612_s30 }
  0x13   : > { %p529_p1 = scmp.eq.s32.totalorder %s528_s6, 0  ;;  %p542_p2 = scmp.eq.s32.totalorder %s6768_s5, 1 }
  0x14   : > { %p547_p3 = scmp.ne.s32.totalorder %s6612_s30, %s6608_s4  ;;  %p548_p4 = scmp.eq.s32.totalorder %s5275_s1, 1 }
  0x15   : > { %s6783_s27 = scalar_select %p529_p1, %s6616_s24, %s531_s2  }
  0x16   : > { %p6785_p5 = por %p542_p2, %p541_p0  ;;  %p6789_p6 = por %p548_p4, %p547_p3 }
  0x17   : > { %7766 = sst [smem:[#allocation9_spill]] %s6783_s27  ;;  %p5278_p7 = scmp.ge.s32.totalorder %s6620_s25, 1 }
  0x18   : > { %s7768_s28 = scalar_select %p6789_p6, 1, 0 }
  0x19   : > { %p640_p8 = scmp.lt.s32.totalorder %s6620_s25, 3 }
  0x1a   : > { %7769 = sst [smem:[#allocation10_spill]] %s7768_s28 }
  0x1b   : > { %p641_p9 = pnand %p5278_p7, %p640_p8 }
  0x1c   : > { %s7770_s0 = sld [smem:[#allocation12_spill]] (!%p641_p9)  ;;  %p703_p10 = scmp.lt.s32.totalorder (!%p641_p9), %s6768_s5, 1  ;;  %vm755_vm0 = vcmask (!%p641_p9), 523264   ;;  %vm816_vm1 = vcmask (!%p641_p9), 261120   ;;  %v5288_v50 = vld [vmem:[%s7721_s11] ss:$0 sm:$0xff] (!%p641_p9) }
  0x1d   : > { %644 = sbr.rel (%p641_p9) target bundleno = 10965 (0x2ad5), region = 112  ;;  %s7771_s3 = sld [smem:[#allocation11_spill]] (!%p641_p9)  ;;  %v5289_v56 = vld [vmem:[%s7722_s12] ss:$0 sm:$0xff] (!%p641_p9)  ;;  %vm1100_vm2 = vcmask (!%p641_p9), 64512   ;;  %vm1205_vm3 = vcmask (!%p641_p9), 1043456  }
  0x1e   : > { %s7772_s1 = sld [smem:[#allocation13_spill]] (!%p641_p9)  ;;  %s7774_s24 = sld [smem:[#allocation16_spill]] (!%p641_p9)  ;;  %vm1161_vm5 = vcmask (!%p641_p9), 195584   ;;  %vm5129_vm12 = vcmask (!%p641_p9), 253952   ;;  %vm6625_vm13 = vmmov (!%p641_p9), 0  }
  0x1f   : > { %s7776_s29 = sld [smem:[#allocation15_spill]] (!%p641_p9)  ;;  %s7777_s8 = sld [smem:[#allocation19_spill]] (!%p641_p9) }
  0x20   : > { %s7779_s25 = sld [smem:[#allocation18_spill]] (!%p641_p9)  ;;  %s701_s23 = sand.u32 (!%p641_p9), 1, %s6612_s30  }
  0x21   : > { %s7781_s28 = sld [smem:[#allocation20_spill]] (!%p641_p9) }
  0x22   : > { %v6344_v0 = vld [vmem:[%s7770_s0] sm:$0xff] (!%p641_p9)   ;;  %v6345_v1 = vld [vmem:[%s7770_s0 + $0x8] sm:$0xff] (!%p641_p9)   ;;  %v6346_v2 = vld [vmem:[%s7770_s0 + $0x10] sm:$0xff] (!%p641_p9)  }
  0x23   : > { %5840 = vmatprep.subr.bf16.mxu0 (!%p641_p9), %v6344_v0  ;;  %v6347_v3 = vld [vmem:[%s7770_s0 + $0x18] sm:$0xff] (!%p641_p9)  }
  0x24   : > { %s704_s6 = scalar_select %p703_p10, %s6768_s5, 1  ;;  %5841 = vmatpush3.bf16.msra.mxu0 %v6344_v0  ;;  %v722_v6 = vld [vmem:[%s7772_s1 + $0x10] sm:$0xff]  ;;  %v720_v7 = vld [vmem:[%s7772_s1] sm:$0xff]  ;;  %v721_v11 = vld [vmem:[%s7772_s1 + $0x8] sm:$0xff] }
  0x25   : > { %5842 = vmatprep.subr.bf16.mxu0 %v6345_v1  ;;  %s7775_s27 = smov %s7774_s24  ;;  %v6351_v35 = vld [vmem:[%s7774_s24] sm:$0xff]   ;;  %v6355_v0 = vld [vmem:[%s7776_s29 + $0x8] sm:$0xff]  }
  0x26   : > { %s6300_s26 = smul.u32 12, %s704_s6  ;;  %s7773_s6 = sld [smem:[#allocation14_spill]]  ;;  %v6353_v37 = vld [vmem:[%s7775_s27 + $0x8] sm:$0xff]   ;;  %v6354_v38 = vld [vmem:[%s7776_s29] sm:$0xff]  }
  0x27   : > { %s7780_s2 = smov %s7779_s25 }
  0x28   : > { %s707_s4 = scalar_lea.vmem %s7771_s3, %s6300_s26  ;;  %5843 = vmatpush3.bf16.msra.mxu0 %v6345_v1  ;;  %s7778_s26 = sld [smem:[#allocation17_spill]] }
  0x29   : > { %5844 = vmatprep.subr.bf16.mxu0 %v6346_v2  ;;  %v6348_v4 = vld [vmem:[%s707_s4] sm:$0xff]   ;;  %v6349_v5 = vld [vmem:[%s707_s4 + $0x8] ss:$0 sps:$4 sm:$0xff]   ;;  %s5624_s3 = sshll.u32 %s6768_s5, 4  ;;  %s6626_s4 = smov [#allocation2]  }
  0x2a   : > { %5848 = vmatprep.mubr.msk.bf16.mxu0 %vm755_vm0, %v6348_v4 }
  0x2c   : > { %5845 = vmatpush3.bf16.msra.mxu0 %v6346_v2  ;;  %v6350_v34 = vld [vmem:[%s7773_s6] sm:$0xff]   ;;  %v6352_v36 = vld [vmem:[%s7773_s6 + $0x8] sm:$0xff]  }
  0x2d   : > { %5846 = vmatprep.subr.bf16.mxu0 %v6347_v3  ;;  %5852 = vmatprep.subr.bf16.mxu1 %v6350_v34 }
  0x2e   : > { %5853 = vmatpush3.bf16.msra.mxu1 %v6350_v34  ;;  %v5290_v4 = vld [vmem:[%s7778_s26] ss:$0 sm:$0xff]  ;;  %v6356_v34 = vld [vmem:[%s7776_s29 + $0x10] sm:$0xff]  }
  0x2f   : > { %5854 = vmatprep.subr.bf16.mxu1 %v6352_v36 }
  0x30   : > { %5847 = vmatpush3.bf16.msra.mxu0 %v6347_v3  ;;  %v5300_v3 = vld [vmem:[%s7777_s8] ss:$0 sm:$0xff] }
  0x31   : > { %5868 = vmatprep.subr.bf16.mxu0 %v6351_v35 }
  0x32   : > { %5855 = vmatpush3.bf16.msra.mxu1 %v6352_v36 }
  0x33   : > { %5849 = vmatmul.mubr.msk.bf16.vlgmr.msra.gmra.mrb[0].mxu0 %vm755_vm0, %v6349_v5  ;;  %5860 = vmatprep.subr.bf16.mxu1 %v6354_v38 }
  0x34   : > { %5869 = vmatpush3.bf16.msra.mxu0 %v6351_v35 }
  0x35   : > { %5870 = vmatprep.subr.bf16.mxu0 %v6353_v37 }
  0x38   : > { %5871 = vmatpush3.bf16.msra.mxu0 %v6353_v37 }
 0x106   : > { %v5850_v8 = vpop.f32.mrb[0].mxu0 }
 0x107   : > { %v6820_v9 = vadd.f32 %v5850_v8, %v722_v6  ;;  %v796_v10 = vpop.f32.mrb[1].mxu0 }
 0x108   : > { %v6825_v12 = vadd.f32 %v796_v10, %v720_v7  ;;  %v5851_v13 = vpop.f32.mrb[2].mxu0 }
 0x109   : > { %v799_v14 = vpop.f32.mrb[3].mxu0  ;;  %v823_v15 = vsel %vm816_vm1, %v6820_v9, 0.0 }
 0x10a   : > { %v6829_v16 = vadd.f32 %v799_v14, %v721_v11  ;;  %824 = vadd.xlane.f32.xlu1 %v823_v15  ;;  %v817_v17 = vsel %vm816_vm1, %v6825_v12, 0.0 }
 0x10b   : > { %818 = vadd.xlane.f32.xlu0 %v817_v17 }
 0x10c   : > { %v820_v18 = vsel %vm816_vm1, %v6829_v16, 0.0 }
 0x10f   : > { %821 = vadd.xlane.f32.xlu0 %v820_v18 }
 0x197   : > { %v825_v19 = vpop.xlane.xlu1 %824 }
 0x198   : > { %v829_v20 = vmul.f32 0.03125, %v825_v19  ;;  %v819_v21 = vpop.xlane.xlu0 %818 }
 0x199   : > { %v827_v22 = vmul.f32 0.03125, %v819_v21 }
 0x19a   : > { %v832_v23 = vsub.f32 %v6820_v9, %v829_v20 }
 0x19b   : > { %v830_v24 = vsub.f32 %v6825_v12, %v827_v22 }
 0x19c   : > { %v822_v25 = vpop.xlane.xlu0 %821  ;;  %v835_v30 = vmul.f32 %v832_v23, %v832_v23 }
 0x19d   : > { %v828_v26 = vmul.f32 0.03125, %v822_v25  ;;  %v833_v27 = vmul.f32 %v830_v24, %v830_v24 }
 0x19e   : > { %v842_v32 = vsel %vm816_vm1, %v835_v30, 0.0 }
 0x19f   : > { %v831_v28 = vsub.f32 %v6829_v16, %v828_v26  ;;  %v836_v29 = vsel %vm816_vm1, %v833_v27, 0.0 }
 0x1a0   : > { %837 = vadd.xlane.f32.xlu1 %v836_v29 }
 0x1a1   : > { %v834_v31 = vmul.f32 %v831_v28, %v831_v28 }
 0x1a3   : > { %v839_v33 = vsel %vm816_vm1, %v834_v31, 0.0 }
 0x1a4   : > { %843 = vadd.xlane.f32.xlu1 %v842_v32  ;;  %840 = vadd.xlane.f32.xlu0 %v839_v33 }
 0x22d   : > { %v838_v39 = vpop.xlane.xlu1 %837 }
 0x22e   : > { %v845_v40 = vmul.f32 0.03125, %v838_v39  ;;  %v810_v39 = vlaneseq }
 0x230   : > { %v848_v41 = vadd.f32 1e-05, %v845_v40  ;;  %v811_v40 = vand.u32 127, %v810_v39 }
 0x231   : > { %v844_v42 = vpop.xlane.xlu1 %843  ;;  %v841_v43 = vpop.xlane.xlu0 %840 }
 0x232   : > { %6412 = vrsqrt.f32 %v848_v41  ;;  %v847_v44 = vmul.f32 0.03125, %v844_v42  ;;  %v846_v45 = vmul.f32 0.03125, %v841_v43  ;;  %vm812_vm4 = vcmp.lt.s32.totalorder %v811_v40, 17 }
 0x233   : > { %v6622_v41 = vmov -1e+30  }
 0x234   : > { %v850_v46 = vadd.f32 1e-05, %v847_v44  ;;  %v849_v47 = vadd.f32 1e-05, %v846_v45  ;;  %v6908_v42 = vsel %vm812_vm4, 0.0, %v6622_v41 }
 0x236   : > { %6414 = vrsqrt.f32 %v850_v46 }
 0x237   : > { %6416 = vrsqrt.f32 %v849_v47 }
 0x23c   : > { %v6413_v48 = vpop.eup %6412 }
 0x23d   : > { %v854_v49 = vmul.f32 %v6413_v48, %v830_v24 }
 0x23f   : > { %v863_v54 = vmul.f32 %v5288_v50, %v854_v49 }
 0x240   : > { %v6415_v51 = vpop.eup %6414 }
 0x241   : > { %v6417_v52 = vpop.eup %6416  ;;  %v856_v53 = vmul.f32 %v6415_v51, %v832_v23  ;;  %v872_v60 = vadd.f32 %v5289_v56, %v863_v54  ;;  %v5295_v23 = vld [vmem:[%s7779_s25] ss:$0 sm:$0xff]  ;;  %v5324_v54 = vld [vmem:[%s7780_s2 + $0x1] ss:$0 sm:$0xff]  ;;  %s5208_s25 = scalar_lea.sflag [#allocation3], %s701_s23 }
 0x242   : > { %v855_v55 = vmul.f32 %v6417_v52, %v831_v28 }
 0x243   : > { %v865_v57 = vmul.f32 %v5288_v50, %v856_v53 }
 0x244   : > { %v864_v58 = vmul.f32 %v5288_v50, %v855_v55 }
 0x245   : > { %v874_v59 = vadd.f32 %v5289_v56, %v865_v57 }
 0x246   : > { %v873_v61 = vadd.f32 %v5289_v56, %v864_v58 }
 0x247   : > { %v6862_v62 = vpack.c.bf16 %v874_v59, %v874_v59 }
 0x248   : > { %v6864_v63 = vpack.c.bf16 %v873_v61, %v872_v60 }
 0x24a   : > { %5856 = vmatprep.mubr.msk.bf16.mxu1 %vm816_vm1, %v6864_v63  ;;  %5872 = vmatprep.mubr.msk.bf16.mxu0 %vm816_vm1, %v6864_v63 }
 0x24b   : > { %5857 = vmatmul.mubr.msk.bf16.vlgmr.msra.gmra.mrb[0].mxu1 %vm816_vm1, %v6862_v62  ;;  %5873 = vmatmul.mubr.msk.bf16.vlgmr.msra.gmra.mrb[4].mxu0 %vm816_vm1, %v6862_v62 }
 0x24c   : > { %5861 = vmatpush3.bf16.msra.mxu1 %v6354_v38  ;;  %5864 = vmatprep.mubr.msk.bf16.mxu1 %vm816_vm1, %v6864_v63  ;;  %v6357_v38 = vld [vmem:[%s7776_s29 + $0x18] sm:$0xff]  }
 0x24d   : > { %5862 = vmatprep.subr.bf16.mxu1 %v6355_v0 }
 0x250   : > { %5863 = vmatpush3.bf16.msra.mxu1 %v6355_v0 }
 0x253   : > { %5865 = vmatmul.mubr.msk.bf16.vlgmr.msra.gmra.mrb[4].mxu1 %vm816_vm1, %v6862_v62 }
 0x31e   : > { %v5858_v1 = vpop.f32.mrb[0].mxu1  ;;  %v5874_v2 = vpop.f32.mrb[4].mxu0 }
 0x31f   : > { %v940_v5 = vpop.f32.mrb[1].mxu1  ;;  %v1082_v6 = vpop.f32.mrb[5].mxu0  ;;  %v1091_v10 = vadd.f32 %v5874_v2, %v5300_v3  ;;  %v949_v36 = vadd.f32 %v5858_v1, %v5290_v4 }
 0x320   : > { %v5859_v7 = vpop.f32.mrb[2].mxu1  ;;  %v5875_v8 = vpop.f32.mrb[6].mxu0  ;;  %v941_v14 = vadd.f32 %v5290_v4, %v940_v5  ;;  %v1083_v15 = vadd.f32 %v5300_v3, %v1082_v6 }
 0x321   : > { %v943_v11 = vpop.f32.mrb[3].mxu1  ;;  %v1085_v13 = vpop.f32.mrb[7].mxu0  ;;  %v1198_v21 = vpack.c.bf16 %v1091_v10, %v1091_v10  ;;  %v1097_v37 = vpack.c.bf16 %v949_v36, %v949_v36  ;;  %v1259_v36 = vld [vmem:[%s7719_s9] sm:$0xf] }
 0x322   : > { %v944_v17 = vadd.f32 %v5290_v4, %v943_v11  ;;  %v1086_v18 = vadd.f32 %v5300_v3, %v1085_v13 }
 0x323   : > { %v1207_v27 = vsel %vm1205_vm3, %v1198_v21, 0 }
 0x324   : > { %v1096_v19 = vpack.c.bf16 %v944_v17, %v941_v14  ;;  %v1197_v20 = vpack.c.bf16 %v1086_v18, %v1083_v15 }
 0x326   : > { %v5866_v22 = vpop.f32.mrb[4].mxu1  ;;  %5880 = vmatprep.mubr.msk.bf16.mxu1 %vm1100_vm2, %v1096_v19  ;;  %5884 = vmatprep.subr.bf16.mxu0 %v1197_v20 }
 0x327   : > { %v1011_v24 = vpop.f32.mrb[5].mxu1  ;;  %5885 = vmatpush3.bf16.msra.mxu0 %v1197_v20  ;;  %v1020_v28 = vadd.f32 %v5866_v22, %v5295_v23 }
 0x328   : > { %v5867_v25 = vpop.f32.mrb[6].mxu1  ;;  %6270 = vmatprep.subr.msk.bf16.mxu0 %vm1205_vm3, %v1198_v21  ;;  %v1012_v29 = vadd.f32 %v5295_v23, %v1011_v24  ;;  %v6358_v21 = vld [vmem:[%s7773_s6 + $0x10] sm:$0xff]  }
 0x329   : > { %v1014_v26 = vpop.f32.mrb[7].mxu1  ;;  %v1099_v32 = vpack.c.bf16 %v1020_v28, %v1020_v28 }
 0x32a   : > { %v1015_v30 = vadd.f32 %v5295_v23, %v1014_v26 }
 0x32b   : > { %5887 = vmatpush3.bf16.msra.mxu0 %v1207_v27  ;;  %v1111_v35 = vsel %vm1100_vm2, %v1099_v32, 0 }
 0x32c   : > { %v1098_v31 = vpack.c.bf16 %v1015_v30, %v1012_v29  ;;  %5892 = vmatprep.subr.bf16.mxu0 %v6358_v21 }
 0x32e   : > { %6268 = vmatprep.subr.msk.bf16.mxu1 %vm1100_vm2, %v1098_v31  ;;  %v1108_v33 = vsel %vm1100_vm2, %v1098_v31, 0 }
 0x32f   : > { %5877 = vmatpush3.bf16.xpose.msra.mxu1 %v1108_v33  ;;  %v6359_v33 = vld [vmem:[%s7773_s6 + $0x18] sm:$0xff]  }
 0x330   : > { %6269 = vmatprep.subr.msk.bf16.mxu1 %vm1100_vm2, %v1099_v32 }
 0x337   : > { %5879 = vmatpush3.bf16.xpose.msra.mxu1 %v1111_v35  ;;  %v6361_v35 = vld [vmem:[%s7775_s27 + $0x18] sm:$0xff]  }
 0x338   : > { %5900 = vmatprep.subr.bf16.mxu1 %v6356_v34 }
 0x33e   : > { %5881 = vmatmul.mubr.msk.bf16.vlgmr.msra.gmra.mrb[8].mxu1 %vm1100_vm2, %v1097_v37 }
 0x33f   : > { %5901 = vmatpush3.bf16.msra.mxu1 %v6356_v34  ;;  %5904 = vmatprep.mubr.msk.bf16.mxu1 %vm816_vm1, %v6864_v63  ;;  %v6360_v34 = vld [vmem:[%s7775_s27 + $0x10] sm:$0xff]  }
 0x340   : > { %5902 = vmatprep.subr.bf16.mxu1 %v6357_v38 }
 0x343   : > { %5903 = vmatpush3.bf16.msra.mxu1 %v6357_v38 }
 0x346   : > { %5905 = vmatmul.mubr.msk.bf16.vlgmr.msra.gmra.mrb[12].mxu1 %vm816_vm1, %v6862_v62 }
 0x411   : > { %v5882_v43 = vpop.f32.mrb[8].mxu1 }
 0x412   : > { %v1147_v44 = vpop.f32.mrb[9].mxu1  ;;  %v1156_v48 = vadd.f32 %v5882_v43, %v6908_v42 }
 0x413   : > { %v1148_v45 = vadd.f32 %v1147_v44, %v6908_v42  ;;  %v5883_v46 = vpop.f32.mrb[10].mxu1  ;;  %v5314_v44 = vld [vmem:[%s7778_s26 + $0x1] ss:$0 sm:$0xff] }
 0x414   : > { %v1150_v47 = vpop.f32.mrb[11].mxu1  ;;  %v1168_v53 = vsel %vm1161_vm5, %v1156_v48, -inf }
 0x415   : > { %v1151_v49 = vadd.f32 %v1150_v47, %v6908_v42  ;;  %v1162_v50 = vsel %vm1161_vm5, %v1148_v45, -inf }
 0x416   : > { %1163 = vmax.xlane.f32.xlu0 %v1162_v50 }
 0x417   : > { %v1165_v51 = vsel %vm1161_vm5, %v1151_v49, -inf }
 0x418   : > { %1166 = vmax.xlane.f32.xlu1 %v1165_v51 }
 0x419   : > { %v5906_v52 = vpop.f32.mrb[12].mxu1 }
 0x41a   : > { %v1392_v55 = vpop.f32.mrb[13].mxu1  ;;  %1169 = vmax.xlane.f32.xlu0 %v1168_v53  ;;  %v1401_v58 = vadd.f32 %v5906_v52, %v5324_v54  ;;  %v1705_v53 = vsel %vm1205_vm3, %v1259_v36, 0 }
 0x41b   : > { %v5907_v56 = vpop.f32.mrb[14].mxu1  ;;  %v1393_v59 = vadd.f32 %v5324_v54, %v1392_v55 }
 0x41c   : > { %v1395_v57 = vpop.f32.mrb[15].mxu1  ;;  %v1482_v0 = vpack.c.bf16 %v1401_v58, %v1401_v58  ;;  %v5334_v56 = vld [vmem:[%s7777_s8 + $0x1] ss:$0 sm:$0xff] }
 0x41d   : > { %v1396_v60 = vadd.f32 %v5324_v54, %v1395_v57  ;;  %v6362_v54 = vld [vmem:[%s7776_s29 + $0x20] sm:$0xff]  }
 0x41e   : > { %v1493_v2 = vsel %vm1100_vm2, %v1482_v0, 0 }
 0x41f   : > { %v1481_v61 = vpack.c.bf16 %v1396_v60, %v1393_v59 }
 0x421   : > { %6271 = vmatprep.subr.msk.bf16.mxu1 %vm1100_vm2, %v1481_v61  ;;  %v1490_v1 = vsel %vm1100_vm2, %v1481_v61, 0 }
 0x422   : > { %5917 = vmatpush3.bf16.xpose.msra.mxu1 %v1490_v1 }
 0x423   : > { %6272 = vmatprep.subr.msk.bf16.mxu1 %vm1100_vm2, %v1482_v0 }
 0x42a   : > { %5919 = vmatpush3.bf16.xpose.msra.mxu1 %v1493_v2 }
 0x42b   : > { %6275 = vmatprep.subr.msk.bf16.mxu1 %vm1205_vm3, %v1259_v36 }
 0x4a3   : > { %v1164_v3 = vpop.xlane.xlu0 %1163 }
 0x4a4   : > { %v1171_v4 = vsub.f32 %v1148_v45, %v1164_v3  ;;  %v6363_v3 = vld [vmem:[%s7776_s29 + $0x28] sm:$0xff]  }
 0x4a5   : > { %v1167_v5 = vpop.xlane.xlu1 %1166 }
 0x4a6   : > { %v1174_v6 = vmul.f32 1.442695, %v1171_v4  ;;  %v1172_v7 = vsub.f32 %v1151_v49, %v1167_v5 }
 0x4a7   : > { %v1170_v8 = vpop.xlane.xlu0 %1169 }
 0x4a8   : > { %6418 = vpow2.f32 %v1174_v6  ;;  %v1176_v10 = vmul.f32 1.442695, %v1172_v7  ;;  %v1173_v11 = vsub.f32 %v1156_v48, %v1170_v8 }
 0x4aa   : > { %6420 = vpow2.f32 %v1176_v10  ;;  %v1178_v13 = vmul.f32 1.442695, %v1173_v11 }
 0x4ac   : > { %6422 = vpow2.f32 %v1178_v13 }
 0x4b2   : > { %v6419_v14 = vpop.eup %6418 }
 0x4b3   : > { %v1180_v15 = vsel %vm1161_vm5, %v6419_v14, 0.0 }
 0x4b4   : > { %v6421_v17 = vpop.eup %6420  ;;  %1181 = vadd.xlane.f32.xlu1 %v1180_v15 }
 0x4b5   : > { %v1183_v18 = vsel %vm1161_vm5, %v6421_v17, 0.0 }
 0x4b6   : > { %v6423_v19 = vpop.eup %6422  ;;  %1184 = vadd.xlane.f32.xlu0 %v1183_v18 }
 0x4b7   : > { %v1186_v20 = vsel %vm1161_vm5, %v6423_v19, 0.0 }
 0x4b8   : > { %1187 = vadd.xlane.f32.xlu1 %v1186_v20 }
 0x541   : > { %v1182_v22 = vpop.xlane.xlu1 %1181 }
 0x542   : > { %6424 = vrcp.f32 %v1182_v22 }
 0x543   : > { %v1185_v23 = vpop.xlane.xlu0 %1184 }
 0x544   : > { %6426 = vrcp.f32 %v1185_v23 }
 0x545   : > { %v1188_v24 = vpop.xlane.xlu1 %1187 }
 0x546   : > { %6428 = vrcp.f32 %v1188_v24  ;;  %v5363_v24 = vld [vmem:[%s7780_s2 + $0x2] ss:$0 sm:$0xff] }
 0x54c   : > { %v6425_v25 = vpop.eup %6424 }
 0x54d   : > { %v1192_v27 = vmul.f32 %v6425_v25, %v6419_v14 }
 0x54e   : > { %v6427_v26 = vpop.eup %6426 }
 0x54f   : > { %v1193_v28 = vmul.f32 %v6427_v26, %v6421_v17 }
 0x550   : > { %v6429_v29 = vpop.eup %6428 }
 0x551   : > { %v1194_v30 = vmul.f32 %v6429_v29, %v6423_v19  ;;  %v1195_v31 = vpack.c.bf16 %v1193_v28, %v1192_v27 }
 0x553   : > { %5888 = vmatprep.mubr.msk.bf16.mxu0 %vm1161_vm5, %v1195_v31  ;;  %v1196_v32 = vpack.c.bf16 %v1194_v30, %v1194_v30 }
 0x555   : > { %5889 = vmatmul.mubr.msk.bf16.vlgmr.msra.gmra.mrb[8].mxu0 %vm1161_vm5, %v1196_v32 }
 0x556   : > { %5893 = vmatpush3.bf16.msra.mxu0 %v6358_v21  ;;  %5896 = vmatprep.mubr.msk.bf16.mxu0 %vm816_vm1, %v6864_v63 }
 0x557   : > { %5894 = vmatprep.subr.bf16.mxu0 %v6359_v33 }
 0x55a   : > { %5895 = vmatpush3.bf16.msra.mxu0 %v6359_v33 }
 0x55b   : > { %5908 = vmatprep.subr.bf16.mxu0 %v6360_v34 }
 0x55d   : > { %5897 = vmatmul.mubr.msk.bf16.vlgmr.msra.gmra.mrb[12].mxu0 %vm816_vm1, %v6862_v62 }
 0x55e   : > { %5909 = vmatpush3.bf16.msra.mxu0 %v6360_v34  ;;  %5912 = vmatprep.mubr.msk.bf16.mxu0 %vm816_vm1, %v6864_v63 }
 0x55f   : > { %5910 = vmatprep.subr.bf16.mxu0 %v6361_v35 }
 0x562   : > { %5911 = vmatpush3.bf16.msra.mxu0 %v6361_v35 }
 0x565   : > { %5913 = vmatmul.mubr.msk.bf16.vlgmr.msra.gmra.mrb[16].mxu0 %vm816_vm1, %v6862_v62 }
 0x628   : > { %v5890_v37 = vpop.f32.mrb[8].mxu0 }
 0x629   : > { %v1243_v38 = vpop.f32.mrb[9].mxu0  ;;  %v1258_v2 = vpack.c.bf16 %v5890_v37, %v5890_v37 }
 0x62a   : > { %v5891_v39 = vpop.f32.mrb[10].mxu0 }
 0x62b   : > { %v1246_v40 = vpop.f32.mrb[11].mxu0 }
 0x62c   : > { %v1257_v41 = vpack.c.bf16 %v1246_v40, %v1243_v38 }
 0x630   : > { %v5898_v43 = vpop.f32.mrb[12].mxu0 }
 0x631   : > { %v1319_v45 = vpop.f32.mrb[13].mxu0  ;;  %v1328_v47 = vadd.f32 %v5898_v43, %v5314_v44 }
 0x632   : > { %v5899_v46 = vpop.f32.mrb[14].mxu0  ;;  %v1320_v49 = vadd.f32 %v5314_v44, %v1319_v45 }
 0x633   : > { %v1322_v48 = vpop.f32.mrb[15].mxu0  ;;  %v1480_v52 = vpack.c.bf16 %v1328_v47, %v1328_v47 }
 0x634   : > { %v1323_v50 = vadd.f32 %v5314_v44, %v1322_v48 }
 0x636   : > { %v1479_v51 = vpack.c.bf16 %v1323_v50, %v1320_v49 }
 0x638   : > { %v5914_v55 = vpop.f32.mrb[16].mxu0  ;;  %5920 = vmatprep.mubr.msk.bf16.mxu1 %vm1100_vm2, %v1479_v51  ;;  %v5343_v51 = vld [vmem:[%s7719_s9 + $0x4] sm:$0xf] }
 0x639   : > { %v1465_v57 = vpop.f32.mrb[17].mxu0  ;;  %5921 = vmatmul.mubr.msk.bf16.vlgmr.msra.gmra.mrb[16].mxu1 %vm1100_vm2, %v1480_v52  ;;  %v1474_v60 = vadd.f32 %v5914_v55, %v5334_v56 }
 0x63a   : > { %v5915_v58 = vpop.f32.mrb[18].mxu0  ;;  %5940 = vmatprep.mubr.msk.bf16.mxu1 %vm1100_vm2, %v1257_v41  ;;  %5939 = vmatpush3.bf16.msra.mxu1 %v1705_v53  ;;  %v1466_v61 = vadd.f32 %v5334_v56, %v1465_v57 }
 0x63b   : > { %v1468_v59 = vpop.f32.mrb[19].mxu0  ;;  %5952 = vmatprep.subr.bf16.mxu1 %v6362_v54  ;;  %v1579_v4 = vpack.c.bf16 %v1474_v60, %v1474_v60 }
 0x63c   : > { %v1469_v0 = vadd.f32 %v5334_v56, %v1468_v59 }
 0x63d   : > { %v1587_v5 = vsel %vm1205_vm3, %v1579_v4, 0 }
 0x63e   : > { %v1578_v1 = vpack.c.bf16 %v1469_v0, %v1466_v61 }
 0x640   : > { %5924 = vmatprep.subr.bf16.mxu0 %v1578_v1 }
 0x641   : > { %5925 = vmatpush3.bf16.msra.mxu0 %v1578_v1  ;;  %5941 = vmatmul.mubr.msk.bf16.vlgmr.msra.gmra.mrb[20].mxu1 %vm1100_vm2, %v1258_v2  ;;  %v1648_v1 = vsel %vm1205_vm3, %v5343_v51, 0  ;;  %v6364_v2 = vld [vmem:[%s7773_s6 + $0x20] sm:$0xff]  }
 0x642   : > { %6273 = vmatprep.subr.msk.bf16.mxu0 %vm1205_vm3, %v1579_v4  ;;  %5953 = vmatpush3.bf16.msra.mxu1 %v6362_v54 }
 0x643   : > { %5956 = vmatprep.mubr.msk.bf16.mxu1 %vm816_vm1, %v6864_v63  ;;  %5954 = vmatprep.subr.bf16.mxu1 %v6363_v3 }
 0x645   : > { %5927 = vmatpush3.bf16.msra.mxu0 %v1587_v5 }
 0x646   : > { %5955 = vmatpush3.bf16.msra.mxu1 %v6363_v3  ;;  %6274 = vmatprep.subr.msk.bf16.mxu0 %vm1205_vm3, %v5343_v51 }
 0x649   : > { %5957 = vmatmul.mubr.msk.bf16.vlgmr.msra.gmra.mrb[24].mxu1 %vm816_vm1, %v6862_v62 }
 0x70c   : > { %v5922_v6 = vpop.f32.mrb[16].mxu1 }
 0x70d   : > { %v1529_v7 = vpop.f32.mrb[17].mxu1  ;;  %v1538_v13 = vadd.f32 %v5922_v6, %v6908_v42 }
 0x70e   : > { %v1530_v8 = vadd.f32 %v1529_v7, %v6908_v42  ;;  %v5923_v10 = vpop.f32.mrb[18].mxu1 }
 0x70f   : > { %v1532_v11 = vpop.f32.mrb[19].mxu1  ;;  %v1549_v19 = vsel %vm1161_vm5, %v1538_v13, -inf  ;;  %v6365_v10 = vld [vmem:[%s7773_s6 + $0x28] sm:$0xff]  }
 0x710   : > { %v1533_v14 = vadd.f32 %v1532_v11, %v6908_v42  ;;  %v1543_v15 = vsel %vm1161_vm5, %v1530_v8, -inf  ;;  %v6366_v11 = vld [vmem:[%s7775_s27 + $0x20] sm:$0xff]  }
 0x711   : > { %1544 = vmax.xlane.f32.xlu0 %v1543_v15 }
 0x712   : > { %v1546_v17 = vsel %vm1161_vm5, %v1533_v14, -inf }
 0x713   : > { %1547 = vmax.xlane.f32.xlu1 %v1546_v17 }
 0x714   : > { %v6980_v18 = vpop.f32.mrb[20].mxu1 }
 0x715   : > { %1550 = vmax.xlane.f32.xlu0 %v1549_v19  ;;  %v6983_v20 = vpop.f32.mrb[21].mxu1 }
 0x716   : > { %v5943_v21 = vpop.f32.mrb[22].mxu1 }
 0x717   : > { %v6985_v22 = vpop.f32.mrb[23].mxu1 }
 0x71c   : > { %v5958_v23 = vpop.f32.mrb[24].mxu1 }
 0x71d   : > { %v1887_v25 = vpop.f32.mrb[25].mxu1  ;;  %v1896_v28 = vadd.f32 %v5958_v23, %v5363_v24 }
 0x71e   : > { %v5959_v26 = vpop.f32.mrb[26].mxu1  ;;  %v1888_v29 = vadd.f32 %v5363_v24, %v1887_v25 }
 0x71f   : > { %v1890_v27 = vpop.f32.mrb[27].mxu1  ;;  %v1977_v32 = vpack.c.bf16 %v1896_v28, %v1896_v28 }
 0x720   : > { %v1891_v30 = vadd.f32 %v5363_v24, %v1890_v27  ;;  %v5353_v27 = vld [vmem:[%s7778_s26 + $0x2] ss:$0 sm:$0xff] }
 0x721   : > { %v1988_v34 = vsel %vm1100_vm2, %v1977_v32, 0 }
 0x722   : > { %v1976_v31 = vpack.c.bf16 %v1891_v30, %v1888_v29 }
 0x724   : > { %6276 = vmatprep.subr.msk.bf16.mxu1 %vm1100_vm2, %v1976_v31  ;;  %v1985_v33 = vsel %vm1100_vm2, %v1976_v31, 0 }
 0x725   : > { %5969 = vmatpush3.bf16.xpose.msra.mxu1 %v1985_v33 }
 0x726   : > { %6277 = vmatprep.subr.msk.bf16.mxu1 %vm1100_vm2, %v1977_v32 }
 0x72d   : > { %5971 = vmatpush3.bf16.xpose.msra.mxu1 %v1988_v34 }
 0x79e   : > { %v1545_v35 = vpop.xlane.xlu0 %1544 }
 0x79f   : > { %v1552_v36 = vsub.f32 %v1530_v8, %v1545_v35 }
 0x7a0   : > { %v1548_v37 = vpop.xlane.xlu1 %1547 }
 0x7a1   : > { %v1555_v38 = vmul.f32 1.442695, %v1552_v36  ;;  %v1553_v39 = vsub.f32 %v1533_v14, %v1548_v37  ;;  %v6368_v14 = vld [vmem:[%s7773_s6 + $0x30] sm:$0xff]  }
 0x7a2   : > { %v1551_v40 = vpop.xlane.xlu0 %1550  ;;  %5990 = vmatprep.subr.bf16.mxu1 %v6368_v14 }
 0x7a3   : > { %6430 = vpow2.f32 %v1555_v38  ;;  %v1557_v41 = vmul.f32 1.442695, %v1553_v39  ;;  %v1554_v43 = vsub.f32 %v1538_v13, %v1551_v40  ;;  %v6367_v13 = vld [vmem:[%s7775_s27 + $0x28] sm:$0xff]   ;;  %v6370_v39 = vld [vmem:[%s7775_s27 + $0x30] sm:$0xff]  }
 0x7a5   : > { %6432 = vpow2.f32 %v1557_v41  ;;  %v1559_v44 = vmul.f32 1.442695, %v1554_v43 }
 0x7a7   : > { %6434 = vpow2.f32 %v1559_v44 }
 0x7ad   : > { %v6431_v45 = vpop.eup %6430 }
 0x7ae   : > { %v1561_v46 = vsel %vm1161_vm5, %v6431_v45, 0.0 }
 0x7af   : > { %v6433_v47 = vpop.eup %6432  ;;  %1562 = vadd.xlane.f32.xlu1 %v1561_v46 }
 0x7b0   : > { %v1564_v48 = vsel %vm1161_vm5, %v6433_v47, 0.0 }
 0x7b1   : > { %v6435_v49 = vpop.eup %6434  ;;  %1565 = vadd.xlane.f32.xlu0 %v1564_v48 }
 0x7b2   : > { %v1567_v50 = vsel %vm1161_vm5, %v6435_v49, 0.0 }
 0x7b3   : > { %1568 = vadd.xlane.f32.xlu1 %v1567_v50 }
 0x83c   : > { %v1563_v52 = vpop.xlane.xlu1 %1562 }
 0x83d   : > { %6436 = vrcp.f32 %v1563_v52 }
 0x83e   : > { %v1566_v53 = vpop.xlane.xlu0 %1565 }
 0x83f   : > { %6438 = vrcp.f32 %v1566_v53 }
 0x840   : > { %v1569_v54 = vpop.xlane.xlu1 %1568 }
 0x841   : > { %6440 = vrcp.f32 %v1569_v54 }
 0x847   : > { %v6437_v55 = vpop.eup %6436 }
 0x848   : > { %v1573_v57 = vmul.f32 %v6437_v55, %v6431_v45  ;;  %v6371_v45 = vld [vmem:[%s7775_s27 + $0x38] sm:$0xff]  }
 0x849   : > { %v6439_v56 = vpop.eup %6438 }
 0x84a   : > { %v1574_v58 = vmul.f32 %v6439_v56, %v6433_v47 }
 0x84b   : > { %v6441_v59 = vpop.eup %6440 }
 0x84c   : > { %v1575_v60 = vmul.f32 %v6441_v59, %v6435_v49  ;;  %v1576_v61 = vpack.c.bf16 %v1574_v58, %v1573_v57  ;;  %v5390_v57 = vld [vmem:[%s7778_s26 + $0x3] ss:$0 sm:$0xff] }
 0x84e   : > { %5928 = vmatprep.mubr.msk.bf16.mxu0 %vm1161_vm5, %v1576_v61  ;;  %v1577_v0 = vpack.c.bf16 %v1575_v60, %v1575_v60 }
 0x850   : > { %5929 = vmatmul.mubr.msk.bf16.vlgmr.msra.gmra.mrb[20].mxu0 %vm1161_vm5, %v1577_v0 }
 0x851   : > { %5933 = vmatpush3.bf16.msra.mxu0 %v1648_v1 }
 0x852   : > { %5944 = vmatprep.subr.bf16.mxu0 %v6364_v2 }
 0x923   : > { %v5930_v3 = vpop.f32.mrb[20].mxu0 }
 0x924   : > { %v1623_v4 = vpop.f32.mrb[21].mxu0  ;;  %v1638_v8 = vpack.c.bf16 %v5930_v3, %v5930_v3 }
 0x925   : > { %v5931_v5 = vpop.f32.mrb[22].mxu0 }
 0x926   : > { %v1626_v6 = vpop.f32.mrb[23].mxu0 }
 0x927   : > { %v1637_v7 = vpack.c.bf16 %v1626_v6, %v1623_v4  ;;  %v5410_v6 = vld [vmem:[%s7777_s8 + $0x3] ss:$0 sm:$0xff] }
 0x929   : > { %5934 = vmatprep.mubr.msk.bf16.mxu0 %vm1100_vm2, %v1637_v7 }
 0x92a   : > { %5935 = vmatmul.mubr.msk.bf16.vlgmr.msra.gmra.mrb[24].mxu0 %vm1100_vm2, %v1638_v8 }
 0x92b   : > { %5945 = vmatpush3.bf16.msra.mxu0 %v6364_v2  ;;  %5948 = vmatprep.mubr.msk.bf16.mxu0 %vm816_vm1, %v6864_v63 }
 0x92c   : > { %5946 = vmatprep.subr.bf16.mxu0 %v6365_v10 }
 0x92f   : > { %5947 = vmatpush3.bf16.msra.mxu0 %v6365_v10 }
 0x930   : > { %5960 = vmatprep.subr.bf16.mxu0 %v6366_v11 }
 0x932   : > { %5949 = vmatmul.mubr.msk.bf16.vlgmr.msra.gmra.mrb[28].mxu0 %vm816_vm1, %v6862_v62 }
 0x933   : > { %5961 = vmatpush3.bf16.msra.mxu0 %v6366_v11  ;;  %5964 = vmatprep.mubr.msk.bf16.mxu0 %vm816_vm1, %v6864_v63 }
 0x934   : > { %5962 = vmatprep.subr.bf16.mxu0 %v6367_v13 }
 0x937   : > { %5963 = vmatpush3.bf16.msra.mxu0 %v6367_v13 }
 0x93a   : > { %5965 = vmatmul.mubr.msk.bf16.vlgmr.msra.gmra.mrb[32].mxu0 %vm816_vm1, %v6862_v62 }
 0x9fd   : > { %v5936_v15 = vpop.f32.mrb[24].mxu0 }
 0x9fe   : > { %v7030_v17 = vadd.f32 %v6980_v18, %v5936_v15  ;;  %v1684_v19 = vpop.f32.mrb[25].mxu0 }
 0x9ff   : > { %v7033_v21 = vadd.f32 %v6983_v20, %v1684_v19  ;;  %v5937_v23 = vpop.f32.mrb[26].mxu0  ;;  %v6369_v20 = vld [vmem:[%s7773_s6 + $0x38] sm:$0xff]  }
 0xa00   : > { %v1687_v24 = vpop.f32.mrb[27].mxu0 }
 0xa01   : > { %v7036_v25 = vadd.f32 %v6985_v22, %v1687_v24  ;;  %v5373_v22 = vld [vmem:[%s7777_s8 + $0x2] ss:$0 sm:$0xff] }
 0xa05   : > { %v5950_v26 = vpop.f32.mrb[28].mxu0 }
 0xa06   : > { %v1814_v28 = vpop.f32.mrb[29].mxu0  ;;  %v1823_v30 = vadd.f32 %v5950_v26, %v5353_v27 }
 0xa07   : > { %v5951_v29 = vpop.f32.mrb[30].mxu0  ;;  %v1815_v18 = vadd.f32 %v5353_v27, %v1814_v28 }
 0xa08   : > { %v1817_v31 = vpop.f32.mrb[31].mxu0  ;;  %v1975_v34 = vpack.c.bf16 %v1823_v30, %v1823_v30 }
 0xa09   : > { %v1818_v32 = vadd.f32 %v5353_v27, %v1817_v31 }
 0xa0b   : > { %v1974_v33 = vpack.c.bf16 %v1818_v32, %v1815_v18 }
 0xa0d   : > { %v5966_v35 = vpop.f32.mrb[32].mxu0  ;;  %5972 = vmatprep.mubr.msk.bf16.mxu1 %vm1100_vm2, %v1974_v33 }
 0xa0e   : > { %v1960_v36 = vpop.f32.mrb[33].mxu0  ;;  %5973 = vmatmul.mubr.msk.bf16.vlgmr.msra.gmra.mrb[28].mxu1 %vm1100_vm2, %v1975_v34  ;;  %v1969_v40 = vadd.f32 %v5966_v35, %v5373_v22 }
 0xa0f   : > { %v5967_v37 = vpop.f32.mrb[34].mxu0  ;;  %5991 = vmatpush3.bf16.msra.mxu1 %v6368_v14  ;;  %5994 = vmatprep.mubr.msk.bf16.mxu1 %vm816_vm1, %v6864_v63  ;;  %v1961_v41 = vadd.f32 %v5373_v22, %v1960_v36 }
 0xa10   : > { %v1963_v38 = vpop.f32.mrb[35].mxu0  ;;  %5992 = vmatprep.subr.bf16.mxu1 %v6369_v20  ;;  %v2074_v46 = vpack.c.bf16 %v1969_v40, %v1969_v40  ;;  %v5382_v37 = vld [vmem:[%s7719_s9 + $0x8] sm:$0xf] }
 0xa11   : > { %v1964_v43 = vadd.f32 %v5373_v22, %v1963_v38 }
 0xa12   : > { %v2082_v47 = vsel %vm1205_vm3, %v2074_v46, 0 }
 0xa13   : > { %v2073_v44 = vpack.c.bf16 %v1964_v43, %v1961_v41  ;;  %5993 = vmatpush3.bf16.msra.mxu1 %v6369_v20 }
 0xa14   : > { %6006 = vmatprep.subr.bf16.mxu1 %v6370_v39 }
 0xa15   : > { %5976 = vmatprep.subr.bf16.mxu0 %v2073_v44 }
 0xa16   : > { %5977 = vmatpush3.bf16.msra.mxu0 %v2073_v44  ;;  %5995 = vmatmul.mubr.msk.bf16.vlgmr.msra.gmra.mrb[32].mxu1 %vm816_vm1, %v6862_v62 }
 0xa17   : > { %6278 = vmatprep.subr.msk.bf16.mxu0 %vm1205_vm3, %v2074_v46  ;;  %6007 = vmatpush3.bf16.msra.mxu1 %v6370_v39 }
 0xa18   : > { %6010 = vmatprep.mubr.msk.bf16.mxu1 %vm816_vm1, %v6864_v63  ;;  %6008 = vmatprep.subr.bf16.mxu1 %v6371_v45 }
 0xa1a   : > { %5979 = vmatpush3.bf16.msra.mxu0 %v2082_v47 }
 0xa1b   : > { %6009 = vmatpush3.bf16.msra.mxu1 %v6371_v45  ;;  %6279 = vmatprep.subr.msk.bf16.mxu0 %vm1205_vm3, %v5382_v37 }
 0xa1e   : > { %6011 = vmatmul.mubr.msk.bf16.vlgmr.msra.gmra.mrb[36].mxu1 %vm816_vm1, %v6862_v62 }
 0xae1   : > { %v5974_v48 = vpop.f32.mrb[28].mxu1 }
 0xae2   : > { %v2024_v49 = vpop.f32.mrb[29].mxu1  ;;  %v2033_v53 = vadd.f32 %v5974_v48, %v6908_v42 }
 0xae3   : > { %v2025_v50 = vadd.f32 %v2024_v49, %v6908_v42  ;;  %v5975_v51 = vpop.f32.mrb[30].mxu1 }
 0xae4   : > { %v2027_v52 = vpop.f32.mrb[31].mxu1  ;;  %v2044_v59 = vsel %vm1161_vm5, %v2033_v53, -inf  ;;  %v6372_v51 = vld [vmem:[%s7776_s29 + $0x30] sm:$0xff]  }
 0xae5   : > { %v2028_v54 = vadd.f32 %v2027_v52, %v6908_v42  ;;  %v2038_v55 = vsel %vm1161_vm5, %v2025_v50, -inf }
 0xae6   : > { %2039 = vmax.xlane.f32.xlu0 %v2038_v55 }
 0xae7   : > { %v2041_v56 = vsel %vm1161_vm5, %v2028_v54, -inf }
 0xae8   : > { %2042 = vmax.xlane.f32.xlu1 %v2041_v56 }
 0xae9   : > { %v5996_v58 = vpop.f32.mrb[32].mxu1 }
 0xaea   : > { %v7074_v60 = vadd.f32 %v5996_v58, %v5390_v57  ;;  %v2255_v61 = vpop.f32.mrb[33].mxu1  ;;  %2045 = vmax.xlane.f32.xlu0 %v2044_v59  ;;  %v6373_v58 = vld [vmem:[%s7776_s29 + $0x38] sm:$0xff]  }
 0xaeb   : > { %v5997_v0 = vpop.f32.mrb[34].mxu1  ;;  %v7076_v2 = vadd.f32 %v5390_v57, %v2255_v61 }
 0xaec   : > { %v2258_v1 = vpop.f32.mrb[35].mxu1 }
 0xaed   : > { %v7078_v3 = vadd.f32 %v5390_v57, %v2258_v1 }
 0xaef   : > { %v2415_v4 = vpack.c.bf16 %v7078_v3, %v7076_v2 }
 0xaf1   : > { %v6012_v5 = vpop.f32.mrb[36].mxu1 }
 0xaf2   : > { %v2401_v7 = vpop.f32.mrb[37].mxu1  ;;  %v2410_v11 = vadd.f32 %v6012_v5, %v5410_v6 }
 0xaf3   : > { %v6013_v8 = vpop.f32.mrb[38].mxu1  ;;  %v2402_v13 = vadd.f32 %v5410_v6, %v2401_v7 }
 0xaf4   : > { %v2404_v10 = vpop.f32.mrb[39].mxu1  ;;  %v2515_v19 = vpack.c.bf16 %v2410_v11, %v2410_v11 }
 0xaf5   : > { %v2405_v14 = vadd.f32 %v5410_v6, %v2404_v10 }
 0xaf6   : > { %v2523_v23 = vsel %vm1205_vm3, %v2515_v19, 0 }
 0xaf7   : > { %v2514_v15 = vpack.c.bf16 %v2405_v14, %v2402_v13  ;;  %v2416_v14 = vpack.c.bf16 %v7074_v60, %v7074_v60 }
 0xaf9   : > { %6022 = vmatprep.subr.bf16.mxu1 %v2514_v15 }
 0xafa   : > { %6023 = vmatpush3.bf16.msra.mxu1 %v2514_v15 }
 0xafb   : > { %6282 = vmatprep.subr.msk.bf16.mxu1 %vm1205_vm3, %v2515_v19 }
 0xafe   : > { %6025 = vmatpush3.bf16.msra.mxu1 %v2523_v23 }
 0xb73   : > { %v2040_v24 = vpop.xlane.xlu0 %2039 }
 0xb74   : > { %v2047_v26 = vsub.f32 %v2025_v50, %v2040_v24  ;;  %v2143_v50 = vsel %vm1205_vm3, %v5382_v37, 0 }
 0xb75   : > { %v2043_v27 = vpop.xlane.xlu1 %2042 }
 0xb76   : > { %v2050_v28 = vmul.f32 1.442695, %v2047_v26  ;;  %v2048_v29 = vsub.f32 %v2028_v54, %v2043_v27 }
 0xb77   : > { %v2046_v30 = vpop.xlane.xlu0 %2045 }
 0xb78   : > { %6442 = vpow2.f32 %v2050_v28  ;;  %v2052_v31 = vmul.f32 1.442695, %v2048_v29  ;;  %v2049_v18 = vsub.f32 %v2033_v53, %v2046_v30 }
 0xb7a   : > { %6444 = vpow2.f32 %v2052_v31  ;;  %v2054_v32 = vmul.f32 1.442695, %v2049_v18 }
 0xb7c   : > { %6446 = vpow2.f32 %v2054_v32 }
 0xb82   : > { %v6443_v33 = vpop.eup %6442 }
 0xb83   : > { %v2056_v34 = vsel %vm1161_vm5, %v6443_v33, 0.0 }
 0xb84   : > { %v6445_v20 = vpop.eup %6444  ;;  %2057 = vadd.xlane.f32.xlu1 %v2056_v34 }
 0xb85   : > { %v2059_v35 = vsel %vm1161_vm5, %v6445_v20, 0.0 }
 0xb86   : > { %v6447_v22 = vpop.eup %6446  ;;  %2060 = vadd.xlane.f32.xlu0 %v2059_v35 }
 0xb87   : > { %v2062_v36 = vsel %vm1161_vm5, %v6447_v22, 0.0 }
 0xb88   : > { %2063 = vadd.xlane.f32.xlu1 %v2062_v36 }
 0xc11   : > { %v2058_v38 = vpop.xlane.xlu1 %2057 }
 0xc12   : > { %6448 = vrcp.f32 %v2058_v38 }
 0xc13   : > { %v2061_v39 = vpop.xlane.xlu0 %2060 }
 0xc14   : > { %6450 = vrcp.f32 %v2061_v39 }
 0xc15   : > { %v2064_v40 = vpop.xlane.xlu1 %2063 }
 0xc16   : > { %6452 = vrcp.f32 %v2064_v40 }
 0xc1c   : > { %v6449_v41 = vpop.eup %6448 }
 0xc1d   : > { %v2068_v44 = vmul.f32 %v6449_v41, %v6443_v33 }
 0xc1e   : > { %v6451_v43 = vpop.eup %6450 }
 0xc1f   : > { %v2069_v45 = vmul.f32 %v6451_v43, %v6445_v20 }
 0xc20   : > { %v6453_v46 = vpop.eup %6452 }
 0xc21   : > { %v2070_v47 = vmul.f32 %v6453_v46, %v6447_v22  ;;  %v2071_v48 = vpack.c.bf16 %v2069_v45, %v2068_v44  ;;  %v5419_v44 = vld [vmem:[%s7719_s9 + $0xc] sm:$0xf] }
 0xc22   : > { %6283 = vmatprep.subr.msk.bf16.mxu1 %vm1205_vm3, %v5419_v44 }
 0xc23   : > { %5980 = vmatprep.mubr.msk.bf16.mxu0 %vm1161_vm5, %v2071_v48  ;;  %v2072_v49 = vpack.c.bf16 %v2070_v47, %v2070_v47 }
 0xc25   : > { %5981 = vmatmul.mubr.msk.bf16.vlgmr.msra.gmra.mrb[36].mxu0 %vm1161_vm5, %v2072_v49 }
 0xc26   : > { %5985 = vmatpush3.bf16.msra.mxu0 %v2143_v50 }
 0xc27   : > { %5998 = vmatprep.subr.bf16.mxu0 %v6372_v51 }
 0xcf8   : > { %v5982_v52 = vpop.f32.mrb[36].mxu0 }
 0xcf9   : > { %v2118_v53 = vpop.f32.mrb[37].mxu0  ;;  %v2133_v57 = vpack.c.bf16 %v5982_v52, %v5982_v52 }
 0xcfa   : > { %v5983_v54 = vpop.f32.mrb[38].mxu0 }
 0xcfb   : > { %v2121_v55 = vpop.f32.mrb[39].mxu0 }
 0xcfc   : > { %v2132_v56 = vpack.c.bf16 %v2121_v55, %v2118_v53 }
 0xcfe   : > { %5986 = vmatprep.mubr.msk.bf16.mxu0 %vm1100_vm2, %v2132_v56  ;;  %v2584_v56 = vsel %vm1205_vm3, %v5419_v44, 0  ;;  %v5423_v44 = vld [vmem:[%s7723_s13] ss:$0 sm:$0xff] }
 0xcff   : > { %5987 = vmatmul.mubr.msk.bf16.vlgmr.msra.gmra.mrb[40].mxu0 %vm1100_vm2, %v2133_v57 }
 0xd00   : > { %5999 = vmatpush3.bf16.msra.mxu0 %v6372_v51  ;;  %6002 = vmatprep.mubr.msk.bf16.mxu0 %vm816_vm1, %v6864_v63 }
 0xd01   : > { %6000 = vmatprep.subr.bf16.mxu0 %v6373_v58 }
 0xd04   : > { %6001 = vmatpush3.bf16.msra.mxu0 %v6373_v58 }
 0xd07   : > { %6003 = vmatmul.mubr.msk.bf16.vlgmr.msra.gmra.mrb[44].mxu0 %vm816_vm1, %v6862_v62  ;;  %v5400_v62 = vld [vmem:[%s7780_s2 + $0x3] ss:$0 sm:$0xff] }
 0xd08   : > { %6018 = vmatprep.mubr.msk.bf16.mxu0 %vm1100_vm2, %v2415_v4 }
 0xdd2   : > { %v5988_v59 = vpop.f32.mrb[40].mxu0 }
 0xdd3   : > { %v7114_v61 = vadd.f32 %v5988_v59, %v7030_v17  ;;  %v2179_v0 = vpop.f32.mrb[41].mxu0 }
 0xdd4   : > { %v7117_v1 = vadd.f32 %v2179_v0, %v7033_v21  ;;  %v5989_v5 = vpop.f32.mrb[42].mxu0 }
 0xdd5   : > { %v2182_v63 = vpop.f32.mrb[43].mxu0 }
 0xdd6   : > { %v7120_v6 = vadd.f32 %v2182_v63, %v7036_v25 }
 0xdda   : > { %v6004_v7 = vpop.f32.mrb[44].mxu0 }
 0xddb   : > { %v2328_v2 = vpop.f32.mrb[45].mxu0  ;;  %v2337_v8 = vadd.f32 %v6004_v7, %v5400_v62 }
 0xddc   : > { %v6005_v3 = vpop.f32.mrb[46].mxu0  ;;  %v2329_v17 = vadd.f32 %v5400_v62, %v2328_v2 }
 0xddd   : > { %v2331_v4 = vpop.f32.mrb[47].mxu0  ;;  %v2418_v13 = vpack.c.bf16 %v2337_v8, %v2337_v8  ;;  %v5422_v8 = vld [vmem:[%s7720_s10] ss:$0 sm:$0xff] }
 0xdde   : > { %v2332_v10 = vadd.f32 %v5400_v62, %v2331_v4 }
 0xddf   : > { %v2429_v25 = vsel %vm1100_vm2, %v2418_v13, 0 }
 0xde0   : > { %v2417_v11 = vpack.c.bf16 %v2332_v10, %v2329_v17 }
 0xde2   : > { %6280 = vmatprep.subr.msk.bf16.mxu0 %vm1100_vm2, %v2417_v11  ;;  %v2426_v21 = vsel %vm1100_vm2, %v2417_v11, 0 }
 0xde3   : > { %6015 = vmatpush3.bf16.xpose.msra.mxu0 %v2426_v21 }
 0xde4   : > { %6281 = vmatprep.subr.msk.bf16.mxu0 %vm1100_vm2, %v2418_v13 }
 0xdeb   : > { %6017 = vmatpush3.bf16.xpose.msra.mxu0 %v2429_v25 }
 0xdf2   : > { %6019 = vmatmul.mubr.msk.bf16.vlgmr.msra.gmra.mrb[48].mxu0 %vm1100_vm2, %v2416_v14 }
 0xec5   : > { %v6020_v15 = vpop.f32.mrb[48].mxu0 }
 0xec6   : > { %v2465_v19 = vpop.f32.mrb[49].mxu0  ;;  %v2474_v27 = vadd.f32 %v6020_v15, %v6908_v42 }
 0xec7   : > { %v2466_v23 = vadd.f32 %v2465_v19, %v6908_v42  ;;  %v6021_v24 = vpop.f32.mrb[50].mxu0 }
 0xec8   : > { %v2468_v26 = vpop.f32.mrb[51].mxu0  ;;  %v2485_v60 = vsel %vm1161_vm5, %v2474_v27, -inf }
 0xec9   : > { %v2469_v28 = vadd.f32 %v2468_v26, %v6908_v42  ;;  %v2479_v29 = vsel %vm1161_vm5, %v2466_v23, -inf }
 0xeca   : > { %2480 = vmax.xlane.f32.xlu0 %v2479_v29 }
 0xecb   : > { %v2482_v30 = vsel %vm1161_vm5, %v2469_v28, -inf }
 0xecc   : > { %2483 = vmax.xlane.f32.xlu1 %v2482_v30 }
 0xece   : > { %2486 = vmax.xlane.f32.xlu0 %v2485_v60 }
 0xf57   : > { %v2481_v31 = vpop.xlane.xlu0 %2480 }
 0xf58   : > { %v2488_v18 = vsub.f32 %v2466_v23, %v2481_v31 }
 0xf59   : > { %v2484_v32 = vpop.xlane.xlu1 %2483 }
 0xf5a   : > { %v2491_v33 = vmul.f32 1.442695, %v2488_v18  ;;  %v2489_v34 = vsub.f32 %v2469_v28, %v2484_v32 }
 0xf5b   : > { %v2487_v20 = vpop.xlane.xlu0 %2486 }
 0xf5c   : > { %6454 = vpow2.f32 %v2491_v33  ;;  %v2493_v35 = vmul.f32 1.442695, %v2489_v34  ;;  %v2490_v22 = vsub.f32 %v2474_v27, %v2487_v20  ;;  %v6374_v33 = vld [vmem:[%s7725_s15] sm:$0xff]   ;;  %v6375_v34 = vld [vmem:[%s7725_s15 + $0x8] sm:$0xff]  }
 0xf5d   : > { %6036 = vmatprep.subr.bf16.mxu0 %v6374_v33 }
 0xf5e   : > { %6456 = vpow2.f32 %v2493_v35  ;;  %v2495_v36 = vmul.f32 1.442695, %v2490_v22  ;;  %6037 = vmatpush3.bf16.msra.mxu0 %v6374_v33 }
 0xf5f   : > { %6038 = vmatprep.subr.bf16.mxu0 %v6375_v34 }
 0xf60   : > { %6458 = vpow2.f32 %v2495_v36 }
 0xf62   : > { %6039 = vmatpush3.bf16.msra.mxu0 %v6375_v34 }
 0xf66   : > { %v6455_v37 = vpop.eup %6454 }
 0xf67   : > { %v2497_v38 = vsel %vm1161_vm5, %v6455_v37, 0.0 }
 0xf68   : > { %v6457_v39 = vpop.eup %6456  ;;  %2498 = vadd.xlane.f32.xlu1 %v2497_v38 }
 0xf69   : > { %v2500_v40 = vsel %vm1161_vm5, %v6457_v39, 0.0 }
 0xf6a   : > { %v6459_v41 = vpop.eup %6458  ;;  %2501 = vadd.xlane.f32.xlu0 %v2500_v40 }
 0xf6b   : > { %v2503_v43 = vsel %vm1161_vm5, %v6459_v41, 0.0 }
 0xf6c   : > { %2504 = vadd.xlane.f32.xlu1 %v2503_v43 }
 0xff5   : > { %v2499_v45 = vpop.xlane.xlu1 %2498 }
 0xff6   : > { %6460 = vrcp.f32 %v2499_v45 }
 0xff7   : > { %v2502_v46 = vpop.xlane.xlu0 %2501 }
 0xff8   : > { %6462 = vrcp.f32 %v2502_v46 }
 0xff9   : > { %v2505_v47 = vpop.xlane.xlu1 %2504 }
 0xffa   : > { %6464 = vrcp.f32 %v2505_v47 }
0x1000   : > { %v6461_v48 = vpop.eup %6460 }
0x1001   : > { %v2509_v50 = vmul.f32 %v6461_v48, %v6455_v37 }
0x1002   : > { %v6463_v49 = vpop.eup %6462 }
0x1003   : > { %v2510_v51 = vmul.f32 %v6463_v49, %v6457_v39 }
0x1004   : > { %v6465_v52 = vpop.eup %6464 }
0x1005   : > { %v2511_v53 = vmul.f32 %v6465_v52, %v6459_v41  ;;  %v2512_v54 = vpack.c.bf16 %v2510_v51, %v2509_v50  ;;  %v5424_v50 = vld [vmem:[%s7724_s14] ss:$0 sm:$0xff] }
0x1007   : > { %6026 = vmatprep.mubr.msk.bf16.mxu1 %vm1161_vm5, %v2512_v54  ;;  %v2513_v55 = vpack.c.bf16 %v2511_v53, %v2511_v53 }
0x1009   : > { %6027 = vmatmul.mubr.msk.bf16.vlgmr.msra.gmra.mrb[40].mxu1 %vm1161_vm5, %v2513_v55 }
0x100a   : > { %6031 = vmatpush3.bf16.msra.mxu1 %v2584_v56 }
0x10dc   : > { %v6028_v57 = vpop.f32.mrb[40].mxu1 }
0x10dd   : > { %v2559_v58 = vpop.f32.mrb[41].mxu1  ;;  %v2574_v63 = vpack.c.bf16 %v6028_v57, %v6028_v57 }
0x10de   : > { %v6029_v59 = vpop.f32.mrb[42].mxu1 }
0x10df   : > { %v2562_v0 = vpop.f32.mrb[43].mxu1  ;;  %v6376_v59 = vld [vmem:[%s7727_s17] sm:$0xff]  }
0x10e0   : > { %v2573_v5 = vpack.c.bf16 %v2562_v0, %v2559_v58  ;;  %6044 = vmatprep.subr.bf16.mxu1 %v6376_v59  ;;  %v6377_v0 = vld [vmem:[%s7727_s17 + $0x8] sm:$0xff]  }
0x10e2   : > { %6032 = vmatprep.mubr.msk.bf16.mxu1 %vm1100_vm2, %v2573_v5  ;;  %v6378_v5 = vld [vmem:[%s7727_s17 + $0x10] sm:$0xff]  }
0x10e3   : > { %6033 = vmatmul.mubr.msk.bf16.vlgmr.msra.gmra.mrb[44].mxu1 %vm1100_vm2, %v2574_v63  ;;  %v6379_v63 = vld [vmem:[%s7727_s17 + $0x18] sm:$0xff]  }
0x10e4   : > { %6045 = vmatpush3.bf16.msra.mxu1 %v6376_v59 }
0x10e5   : > { %6046 = vmatprep.subr.bf16.mxu1 %v6377_v0 }
0x10e8   : > { %6047 = vmatpush3.bf16.msra.mxu1 %v6377_v0 }
0x10e9   : > { %6048 = vmatprep.subr.bf16.mxu1 %v6378_v5 }
0x10ec   : > { %6049 = vmatpush3.bf16.msra.mxu1 %v6378_v5 }
0x10ed   : > { %6050 = vmatprep.subr.bf16.mxu1 %v6379_v63 }
0x10f0   : > { %6051 = vmatpush3.bf16.msra.mxu1 %v6379_v63 }
0x11b6   : > { %v6034_v7 = vpop.f32.mrb[44].mxu1 }
0x11b7   : > { %v2636_v62 = vadd.f32 %v6034_v7, %v7114_v61  ;;  %v2620_v2 = vpop.f32.mrb[45].mxu1  ;;  %v5425_v7 = vld [vmem:[%s7726_s16] ss:$0 sm:$0xff] }
0x11b8   : > { %v2634_v3 = vadd.f32 %v2620_v2, %v7117_v1  ;;  %v6035_v4 = vpop.f32.mrb[46].mxu1 }
0x11b9   : > { %v2623_v17 = vpop.f32.mrb[47].mxu1  ;;  %v2639_v10 = vadd.f32 %v2636_v62, %v6820_v9 }
0x11ba   : > { %v2637_v11 = vadd.f32 %v2634_v3, %v6825_v12  ;;  %v2635_v13 = vadd.f32 %v2623_v17, %v7120_v6 }
0x11bb   : > { %v7161_v61 = vadd.f32 %v5422_v8, %v2639_v10 }
0x11bc   : > { %v7158_v21 = vadd.f32 %v5422_v8, %v2637_v11  ;;  %v2638_v25 = vadd.f32 %v2635_v13, %v6829_v16 }
0x11bd   : > { %v2658_v9 = vsel %vm816_vm1, %v7161_v61, 0.0 }
0x11be   : > { %v7163_v14 = vadd.f32 %v5422_v8, %v2638_v25  ;;  %v2652_v1 = vsel %vm816_vm1, %v7158_v21, 0.0 }
0x11bf   : > { %2653 = vadd.xlane.f32.xlu0 %v2652_v1 }
0x11c0   : > { %v2655_v15 = vsel %vm816_vm1, %v7163_v14, 0.0 }
0x11c1   : > { %2656 = vadd.xlane.f32.xlu1 %v2655_v15 }
0x11c3   : > { %2659 = vadd.xlane.f32.xlu0 %v2658_v9 }
0x124c   : > { %v2654_v12 = vpop.xlane.xlu0 %2653 }
0x124d   : > { %v2661_v6 = vmul.f32 0.03125, %v2654_v12 }
0x124e   : > { %v2657_v19 = vpop.xlane.xlu1 %2656 }
0x124f   : > { %v2664_v16 = vsub.f32 %v7158_v21, %v2661_v6  ;;  %v2662_v23 = vmul.f32 0.03125, %v2657_v19 }
0x1250   : > { %v2660_v24 = vpop.xlane.xlu0 %2659 }
0x1251   : > { %v2665_v26 = vsub.f32 %v7163_v14, %v2662_v23  ;;  %v2663_v27 = vmul.f32 0.03125, %v2660_v24  ;;  %v2667_v28 = vmul.f32 %v2664_v16, %v2664_v16 }
0x1253   : > { %v2666_v29 = vsub.f32 %v7161_v61, %v2663_v27  ;;  %v2670_v30 = vsel %vm816_vm1, %v2667_v28, 0.0  ;;  %v2668_v60 = vmul.f32 %v2665_v26, %v2665_v26 }
0x1254   : > { %2671 = vadd.xlane.f32.xlu1 %v2670_v30 }
0x1255   : > { %v2673_v31 = vsel %vm816_vm1, %v2668_v60, 0.0  ;;  %v2669_v18 = vmul.f32 %v2666_v29, %v2666_v29 }
0x1256   : > { %2674 = vadd.xlane.f32.xlu0 %v2673_v31 }
0x1257   : > { %v2676_v32 = vsel %vm816_vm1, %v2669_v18, 0.0 }
0x1258   : > { %2677 = vadd.xlane.f32.xlu1 %v2676_v32 }
0x12e1   : > { %v2672_v20 = vpop.xlane.xlu1 %2671 }
0x12e2   : > { %v2679_v35 = vmul.f32 0.03125, %v2672_v20 }
0x12e3   : > { %v2675_v22 = vpop.xlane.xlu0 %2674 }
0x12e4   : > { %v2682_v36 = vadd.f32 1e-05, %v2679_v35  ;;  %v2680_v37 = vmul.f32 0.03125, %v2675_v22 }
0x12e5   : > { %v2678_v38 = vpop.xlane.xlu1 %2677 }
0x12e6   : > { %6466 = vrsqrt.f32 %v2682_v36  ;;  %v2683_v39 = vadd.f32 1e-05, %v2680_v37  ;;  %v2681_v40 = vmul.f32 0.03125, %v2678_v38 }
0x12e8   : > { %6468 = vrsqrt.f32 %v2683_v39  ;;  %v2684_v41 = vadd.f32 1e-05, %v2681_v40 }
0x12ea   : > { %6470 = vrsqrt.f32 %v2684_v41 }
0x12f0   : > { %v6467_v43 = vpop.eup %6466 }
0x12f1   : > { %v2688_v45 = vmul.f32 %v6467_v43, %v2664_v16 }
0x12f2   : > { %v6469_v46 = vpop.eup %6468 }
0x12f3   : > { %v2689_v47 = vmul.f32 %v6469_v46, %v2665_v26  ;;  %v2697_v48 = vmul.f32 %v5423_v44, %v2688_v45 }
0x12f4   : > { %v6471_v49 = vpop.eup %6470 }
0x12f5   : > { %v2690_v51 = vmul.f32 %v6471_v49, %v2666_v29  ;;  %v2698_v52 = vmul.f32 %v5423_v44, %v2689_v47  ;;  %v2706_v53 = vadd.f32 %v5424_v50, %v2697_v48 }
0x12f7   : > { %v2707_v54 = vadd.f32 %v5424_v50, %v2698_v52  ;;  %v2699_v55 = vmul.f32 %v5423_v44, %v2690_v51 }
0x12f9   : > { %v2709_v56 = vpack.c.bf16 %v2707_v54, %v2706_v53  ;;  %v2708_v57 = vadd.f32 %v5424_v50, %v2699_v55 }
0x12fb   : > { %6040 = vmatprep.mubr.msk.bf16.mxu0 %vm816_vm1, %v2709_v56  ;;  %v2710_v58 = vpack.c.bf16 %v2708_v57, %v2708_v57 }
0x12fd   : > { %6041 = vmatmul.mubr.msk.bf16.vlgmr.msra.gmra.mrb[52].mxu0 %vm816_vm1, %v2710_v58 }
0x13d0   : > { %v6042_v62 = vpop.f32.mrb[52].mxu0 }
0x13d1   : > { %v7206_v2 = vadd.f32 %v6042_v62, %v5425_v7  ;;  %v2774_v3 = vpop.f32.mrb[53].mxu0 }
0x13d2   : > { %v7208_v4 = vadd.f32 %v5425_v7, %v2774_v3  ;;  %v6043_v8 = vpop.f32.mrb[54].mxu0 }
0x13d3   : > { %v7211_v17 = vmul.f32 0.70710677, %v7206_v2  ;;  %v2777_v10 = vpop.f32.mrb[55].mxu0 }
0x13d4   : > { %v7214_v11 = vmul.f32 0.70710677, %v7208_v4  ;;  %v7216_v13 = vadd.f32 %v5425_v7, %v2777_v10 }
0x13d5   : > { %v2802_v25 = vand.u32 2147483647, %v7211_v17  ;;  %vm2796_vm6 = vcmp.ge.f32.partialorder %v7211_v17, 0.0 }
0x13d6   : > { %v2800_v1 = vand.u32 2147483647, %v7214_v11  ;;  %v7221_v9 = vmul.f32 0.70710677, %v7216_v13  ;;  %vm2794_vm7 = vcmp.ge.f32.partialorder %v7214_v11, 0.0 }
0x13d7   : > { %v2805_v15 = vmul.f32 0.3275911, %v2802_v25  ;;  %v2844_v26 = vsub.f32 0.0, %v2802_v25 }
0x13d8   : > { %v2803_v12 = vmul.f32 0.3275911, %v2800_v1  ;;  %v2801_v19 = vand.u32 2147483647, %v7221_v9  ;;  %v2842_v27 = vsub.f32 0.0, %v2800_v1  ;;  %vm2795_vm8 = vcmp.ge.f32.partialorder %v7221_v9, 0.0 }
0x13d9   : > { %v2808_v6 = vadd.f32 1.0, %v2805_v15  ;;  %v2847_v29 = vmul.f32 %v2844_v26, %v2802_v25  ;;  %v6623_v25 = vmov -1.0  }
0x13da   : > { %v2806_v16 = vadd.f32 1.0, %v2803_v12  ;;  %v2804_v23 = vmul.f32 0.3275911, %v2801_v19  ;;  %v2843_v30 = vsub.f32 0.0, %v2801_v19  ;;  %v2845_v18 = vmul.f32 %v2842_v27, %v2800_v1 }
0x13db   : > { %6472 = vrcp.f32 %v2808_v6  ;;  %v2852_v20 = vmul.f32 1.442695, %v2847_v29  ;;  %v2799_v1 = vsel %vm2796_vm6, 1.0, %v6623_v25  ;;  %v2797_v6 = vsel %vm2794_vm7, 1.0, %v6623_v25 }
0x13dc   : > { %6474 = vrcp.f32 %v2806_v16  ;;  %v2807_v24 = vadd.f32 1.0, %v2804_v23  ;;  %v2846_v22 = vmul.f32 %v2843_v30, %v2801_v19  ;;  %v2848_v37 = vmul.f32 1.442695, %v2845_v18 }
0x13dd   : > { %v2790_v27 = vmul.f32 0.5, %v7206_v2  ;;  %v2789_v29 = vmul.f32 0.5, %v7216_v13 }
0x13de   : > { %6476 = vrcp.f32 %v2807_v24  ;;  %v2850_v44 = vmul.f32 1.442695, %v2846_v22  ;;  %v2798_v24 = vsel %vm2795_vm8, 1.0, %v6623_v25 }
0x13df   : > { %6478 = vpow2.f32 %v2852_v20 }
0x13e0   : > { %6480 = vpow2.f32 %v2848_v37 }
0x13e1   : > { %6482 = vpow2.f32 %v2850_v44 }
0x13e5   : > { %v6473_v28 = vpop.eup %6472 }
0x13e6   : > { %v6475_v60 = vpop.eup %6474  ;;  %v2817_v31 = vmul.f32 1.0614054, %v6473_v28 }
0x13e7   : > { %v2815_v32 = vmul.f32 1.0614054, %v6475_v60 }
0x13e8   : > { %v2820_v33 = vadd.f32 -1.4531521, %v2817_v31  ;;  %v6477_v34 = vpop.eup %6476 }
0x13e9   : > { %v2818_v35 = vadd.f32 -1.4531521, %v2815_v32  ;;  %v2816_v38 = vmul.f32 1.0614054, %v6477_v34  ;;  %v6479_v59 = vpop.eup %6478 }
0x13ea   : > { %v2823_v36 = vmul.f32 %v6473_v28, %v2820_v33  ;;  %v6481_v5 = vpop.eup %6480  ;;  %v5430_v33 = vld [vmem:[%s7728_s18] ss:$0 sm:$0xff] }
0x13eb   : > { %v2821_v39 = vmul.f32 %v6475_v60, %v2818_v35  ;;  %v2819_v41 = vadd.f32 -1.4531521, %v2816_v38  ;;  %v6483_v10 = vpop.eup %6482 }
0x13ec   : > { %v2826_v40 = vadd.f32 1.4214138, %v2823_v36 }
0x13ed   : > { %v2824_v43 = vadd.f32 1.4214138, %v2821_v39  ;;  %v2822_v46 = vmul.f32 %v6477_v34, %v2819_v41 }
0x13ee   : > { %v2829_v45 = vmul.f32 %v6473_v28, %v2826_v40 }
0x13ef   : > { %v2827_v47 = vmul.f32 %v6475_v60, %v2824_v43  ;;  %v2825_v49 = vadd.f32 1.4214138, %v2822_v46 }
0x13f0   : > { %v2832_v48 = vadd.f32 -0.28449672, %v2829_v45 }
0x13f1   : > { %v2830_v50 = vadd.f32 -0.28449672, %v2827_v47  ;;  %v2828_v52 = vmul.f32 %v6477_v34, %v2825_v49 }
0x13f2   : > { %v2835_v51 = vmul.f32 %v6473_v28, %v2832_v48 }
0x13f3   : > { %v2833_v53 = vmul.f32 %v6475_v60, %v2830_v50  ;;  %v2831_v55 = vadd.f32 -0.28449672, %v2828_v52 }
0x13f4   : > { %v2838_v54 = vadd.f32 0.2548296, %v2835_v51 }
0x13f5   : > { %v2836_v56 = vadd.f32 0.2548296, %v2833_v53  ;;  %v2834_v58 = vmul.f32 %v6477_v34, %v2831_v55  ;;  %v6380_v55 = vld [vmem:[%s7773_s6 + $0x40] sm:$0xff]  }
0x13f6   : > { %v2841_v57 = vmul.f32 %v6473_v28, %v2838_v54  ;;  %v2788_v28 = vmul.f32 0.5, %v7208_v4  ;;  %6056 = vmatprep.subr.bf16.mxu0 %v6380_v55 }
0x13f7   : > { %v2839_v0 = vmul.f32 %v6475_v60, %v2836_v56  ;;  %v2837_v7 = vadd.f32 0.2548296, %v2834_v58  ;;  %v6381_v56 = vld [vmem:[%s7775_s27 + $0x40] sm:$0xff]   ;;  %6057 = vmatpush3.bf16.msra.mxu0 %v6380_v55  ;;  %v6383_v58 = vld [vmem:[%s7775_s27 + $0x48] sm:$0xff]  }
0x13f8   : > { %v2856_v63 = vmul.f32 %v6479_v59, %v2841_v57  ;;  %6072 = vmatprep.subr.bf16.mxu1 %v6381_v56  ;;  %v6382_v57 = vld [vmem:[%s7773_s6 + $0x48] sm:$0xff]   ;;  %v6384_v59 = vld [vmem:[%s7776_s29 + $0x40] sm:$0xff]  }
0x13f9   : > { %v2854_v62 = vmul.f32 %v6481_v5, %v2839_v0  ;;  %v2840_v8 = vmul.f32 %v6477_v34, %v2837_v7  ;;  %6058 = vmatprep.subr.bf16.mxu0 %v6382_v57 }
0x13fa   : > { %v2859_v3 = vsub.f32 1.0, %v2856_v63 }
0x13fb   : > { %v2857_v15 = vsub.f32 1.0, %v2854_v62  ;;  %v2855_v19 = vmul.f32 %v6483_v10, %v2840_v8  ;;  %6059 = vmatpush3.bf16.msra.mxu0 %v6382_v57  ;;  %v6386_v57 = vld [vmem:[%s7776_s29 + $0x50] sm:$0xff]  }
0x13fc   : > { %v2862_v12 = vmul.f32 %v2859_v3, %v2799_v1  ;;  %6064 = vmatprep.subr.bf16.mxu0 %v6384_v59 }
0x13fd   : > { %v2860_v16 = vmul.f32 %v2857_v15, %v2797_v6  ;;  %v2858_v17 = vsub.f32 1.0, %v2855_v19 }
0x13fe   : > { %v2865_v23 = vadd.f32 1.0, %v2862_v12  ;;  %v5439_v12 = vld [vmem:[%s7721_s11 + $0x1] ss:$0 sm:$0xff] }
0x13ff   : > { %v2863_v11 = vadd.f32 1.0, %v2860_v16  ;;  %v2861_v26 = vmul.f32 %v2858_v17, %v2798_v24  ;;  %v5440_v24 = vld [vmem:[%s7722_s12 + $0x1] ss:$0 sm:$0xff] }
0x1400   : > { %v2868_v60 = vmul.f32 %v2865_v23, %v2790_v27 }
0x1401   : > { %v2864_v30 = vadd.f32 1.0, %v2861_v26  ;;  %v2866_v31 = vmul.f32 %v2863_v11, %v2788_v28 }
0x1402   : > { %v2870_v9 = vpack.c.bf16 %v2868_v60, %v2868_v60 }
0x1403   : > { %v2867_v18 = vmul.f32 %v2864_v30, %v2789_v29 }
0x1405   : > { %v2869_v32 = vpack.c.bf16 %v2867_v18, %v2866_v31  ;;  %v6385_v18 = vld [vmem:[%s7776_s29 + $0x48] sm:$0xff]  }
0x1407   : > { %6052 = vmatprep.mubr.msk.bf16.mxu1 %vm755_vm0, %v2869_v32 }
0x1408   : > { %6053 = vmatmul.mubr.msk.bf16.vlgmr.msra.gmra.mrb[48].mxu1 %vm755_vm0, %v2870_v9 }
0x1409   : > { %6073 = vmatpush3.bf16.msra.mxu1 %v6381_v56 }
0x140a   : > { %6074 = vmatprep.subr.bf16.mxu1 %v6383_v58 }
0x140d   : > { %6075 = vmatpush3.bf16.msra.mxu1 %v6383_v58 }
0x14db   : > { %v6054_v34 = vpop.f32.mrb[48].mxu1 }
0x14dc   : > { %v2950_v2 = vpop.f32.mrb[49].mxu1  ;;  %v2959_v20 = vadd.f32 %v6054_v34, %v5430_v33  ;;  %v5446_v34 = vld [vmem:[%s7778_s26 + $0x4] ss:$0 sm:$0xff] }
0x14dd   : > { %v2951_v4 = vadd.f32 %v5430_v33, %v2950_v2  ;;  %v6055_v35 = vpop.f32.mrb[50].mxu1 }
0x14de   : > { %v2953_v13 = vpop.f32.mrb[51].mxu1  ;;  %v7242_v37 = vadd.f32 %v2959_v20, %v7161_v61 }
0x14df   : > { %v7239_v22 = vadd.f32 %v2951_v4, %v7158_v21  ;;  %v2954_v36 = vadd.f32 %v5430_v33, %v2953_v13  ;;  %v5466_v33 = vld [vmem:[%s7777_s8 + $0x4] ss:$0 sm:$0xff] }
0x14e0   : > { %v2977_v41 = vsel %vm816_vm1, %v7242_v37, 0.0 }
0x14e1   : > { %v7245_v38 = vadd.f32 %v2954_v36, %v7163_v14  ;;  %v2971_v39 = vsel %vm816_vm1, %v7239_v22, 0.0 }
0x14e2   : > { %2972 = vadd.xlane.f32.xlu0 %v2971_v39 }
0x14e3   : > { %v2974_v40 = vsel %vm816_vm1, %v7245_v38, 0.0 }
0x14e4   : > { %2975 = vadd.xlane.f32.xlu1 %v2974_v40 }
0x14e6   : > { %2978 = vadd.xlane.f32.xlu0 %v2977_v41 }
0x156f   : > { %v2973_v21 = vpop.xlane.xlu0 %2972 }
0x1570   : > { %v2980_v43 = vmul.f32 0.03125, %v2973_v21 }
0x1571   : > { %v2976_v44 = vpop.xlane.xlu1 %2975 }
0x1572   : > { %v2983_v61 = vsub.f32 %v7239_v22, %v2980_v43  ;;  %v2981_v45 = vmul.f32 0.03125, %v2976_v44 }
0x1573   : > { %v2979_v14 = vpop.xlane.xlu0 %2978 }
0x1574   : > { %v2984_v46 = vsub.f32 %v7245_v38, %v2981_v45  ;;  %v2982_v47 = vmul.f32 0.03125, %v2979_v14  ;;  %v2986_v48 = vmul.f32 %v2983_v61, %v2983_v61 }
0x1576   : > { %v2985_v49 = vsub.f32 %v7242_v37, %v2982_v47  ;;  %v2989_v50 = vsel %vm816_vm1, %v2986_v48, 0.0  ;;  %v2987_v51 = vmul.f32 %v2984_v46, %v2984_v46 }
0x1577   : > { %2990 = vadd.xlane.f32.xlu1 %v2989_v50 }
0x1578   : > { %v2992_v52 = vsel %vm816_vm1, %v2987_v51, 0.0  ;;  %v2988_v53 = vmul.f32 %v2985_v49, %v2985_v49 }
0x1579   : > { %2993 = vadd.xlane.f32.xlu0 %v2992_v52 }
0x157a   : > { %v2995_v54 = vsel %vm816_vm1, %v2988_v53, 0.0 }
0x157b   : > { %2996 = vadd.xlane.f32.xlu1 %v2995_v54 }
0x1604   : > { %v2991_v0 = vpop.xlane.xlu1 %2990 }
0x1605   : > { %v2998_v5 = vmul.f32 0.03125, %v2991_v0 }
0x1606   : > { %v2994_v63 = vpop.xlane.xlu0 %2993 }
0x1607   : > { %v3001_v7 = vadd.f32 1e-05, %v2998_v5  ;;  %v2999_v62 = vmul.f32 0.03125, %v2994_v63  ;;  %v6387_v5 = vld [vmem:[%s7776_s29 + $0x58] sm:$0xff]  }
0x1608   : > { %v2997_v3 = vpop.xlane.xlu1 %2996 }
0x1609   : > { %6484 = vrsqrt.f32 %v3001_v7  ;;  %v3002_v8 = vadd.f32 1e-05, %v2999_v62  ;;  %v3000_v10 = vmul.f32 0.03125, %v2997_v3 }
0x160b   : > { %6486 = vrsqrt.f32 %v3002_v8  ;;  %v3003_v1 = vadd.f32 1e-05, %v3000_v10 }
0x160d   : > { %6488 = vrsqrt.f32 %v3003_v1 }
0x1613   : > { %v6485_v15 = vpop.eup %6484 }
0x1614   : > { %v3007_v6 = vmul.f32 %v6485_v15, %v2983_v61 }
0x1615   : > { %v6487_v19 = vpop.eup %6486 }
0x1616   : > { %v3016_v16 = vmul.f32 %v5439_v12, %v3007_v6  ;;  %v3008_v17 = vmul.f32 %v6487_v19, %v2984_v46  ;;  %v5456_v46 = vld [vmem:[%s7780_s2 + $0x4] ss:$0 sm:$0xff] }
0x1617   : > { %v6489_v23 = vpop.eup %6488 }
0x1618   : > { %v3017_v11 = vmul.f32 %v5439_v12, %v3008_v17  ;;  %v3009_v26 = vmul.f32 %v6489_v23, %v2985_v49  ;;  %v3025_v27 = vadd.f32 %v5440_v24, %v3016_v16  ;;  %v5491_v16 = vld [vmem:[%s7780_s2 + $0x5] ss:$0 sm:$0xff] }
0x161a   : > { %v3026_v28 = vadd.f32 %v5440_v24, %v3017_v11  ;;  %v3018_v29 = vmul.f32 %v5439_v12, %v3009_v26 }
0x161c   : > { %v7280_v30 = vpack.c.bf16 %v3026_v28, %v3025_v27  ;;  %v3027_v60 = vadd.f32 %v5440_v24, %v3018_v29 }
0x161e   : > { %v7282_v31 = vpack.c.bf16 %v3027_v60, %v3027_v60  ;;  %6060 = vmatprep.mubr.msk.bf16.mxu0 %vm816_vm1, %v7280_v30  ;;  %6076 = vmatprep.mubr.msk.bf16.mxu1 %vm816_vm1, %v7280_v30 }
0x1620   : > { %6061 = vmatmul.mubr.msk.bf16.vlgmr.msra.gmra.mrb[56].mxu0 %vm816_vm1, %v7282_v31  ;;  %6077 = vmatmul.mubr.msk.bf16.vlgmr.msra.gmra.mrb[52].mxu1 %vm816_vm1, %v7282_v31 }
0x1621   : > { %6065 = vmatpush3.bf16.msra.mxu0 %v6384_v59  ;;  %6068 = vmatprep.mubr.msk.bf16.mxu0 %vm816_vm1, %v7280_v30 }
0x1622   : > { %6066 = vmatprep.subr.bf16.mxu0 %v6385_v18 }
0x1625   : > { %6067 = vmatpush3.bf16.msra.mxu0 %v6385_v18 }
0x1628   : > { %6069 = vmatmul.mubr.msk.bf16.vlgmr.msra.gmra.mrb[60].mxu0 %vm816_vm1, %v7282_v31 }
0x16f3   : > { %v6062_v32 = vpop.f32.mrb[56].mxu0  ;;  %v6078_v9 = vpop.f32.mrb[52].mxu1 }
0x16f4   : > { %v3095_v2 = vpop.f32.mrb[57].mxu0  ;;  %v3241_v20 = vpop.f32.mrb[53].mxu1  ;;  %v3250_v13 = vadd.f32 %v6078_v9, %v5466_v33  ;;  %v3104_v59 = vadd.f32 %v6062_v32, %v5446_v34 }
0x16f5   : > { %v6063_v4 = vpop.f32.mrb[58].mxu0  ;;  %v6079_v35 = vpop.f32.mrb[54].mxu1  ;;  %v3096_v40 = vadd.f32 %v5446_v34, %v3095_v2  ;;  %v3242_v41 = vadd.f32 %v5466_v33, %v3241_v20 }
0x16f6   : > { %v3098_v36 = vpop.f32.mrb[59].mxu0  ;;  %v3244_v39 = vpop.f32.mrb[55].mxu1  ;;  %v3355_v45 = vpack.c.bf16 %v3250_v13, %v3250_v13  ;;  %v3256_v0 = vpack.c.bf16 %v3104_v59, %v3104_v59 }
0x16f7   : > { %v3099_v21 = vadd.f32 %v5446_v34, %v3098_v36  ;;  %v3245_v43 = vadd.f32 %v5466_v33, %v3244_v39 }
0x16f8   : > { %v3363_v50 = vsel %vm1205_vm3, %v3355_v45, 0 }
0x16f9   : > { %v3255_v44 = vpack.c.bf16 %v3099_v21, %v3096_v40  ;;  %v3354_v61 = vpack.c.bf16 %v3245_v43, %v3242_v41 }
0x16fb   : > { %v6070_v14 = vpop.f32.mrb[60].mxu0  ;;  %6084 = vmatprep.mubr.msk.bf16.mxu0 %vm1100_vm2, %v3255_v44  ;;  %6088 = vmatprep.subr.bf16.mxu1 %v3354_v61  ;;  %v6388_v44 = vld [vmem:[%s7773_s6 + $0x50] sm:$0xff]  }
0x16fc   : > { %v3168_v47 = vpop.f32.mrb[61].mxu0  ;;  %6089 = vmatpush3.bf16.msra.mxu1 %v3354_v61  ;;  %v3177_v51 = vadd.f32 %v6070_v14, %v5456_v46 }
0x16fd   : > { %v6071_v48 = vpop.f32.mrb[62].mxu0  ;;  %6286 = vmatprep.subr.msk.bf16.mxu1 %vm1205_vm3, %v3355_v45  ;;  %v3169_v52 = vadd.f32 %v5456_v46, %v3168_v47 }
0x16fe   : > { %v3171_v49 = vpop.f32.mrb[63].mxu0  ;;  %v3258_v55 = vpack.c.bf16 %v3177_v51, %v3177_v51 }
0x16ff   : > { %v3172_v53 = vadd.f32 %v5456_v46, %v3171_v49 }
0x1700   : > { %6091 = vmatpush3.bf16.msra.mxu1 %v3363_v50  ;;  %v3269_v58 = vsel %vm1100_vm2, %v3258_v55, 0 }
0x1701   : > { %v3257_v54 = vpack.c.bf16 %v3172_v53, %v3169_v52  ;;  %6096 = vmatprep.subr.bf16.mxu1 %v6388_v44 }
0x1703   : > { %6284 = vmatprep.subr.msk.bf16.mxu0 %vm1100_vm2, %v3257_v54  ;;  %v3266_v56 = vsel %vm1100_vm2, %v3257_v54, 0  ;;  %v6389_v54 = vld [vmem:[%s7773_s6 + $0x58] sm:$0xff]  }
0x1704   : > { %6081 = vmatpush3.bf16.xpose.msra.mxu0 %v3266_v56  ;;  %v6391_v56 = vld [vmem:[%s7775_s27 + $0x58] sm:$0xff]  }
0x1705   : > { %6285 = vmatprep.subr.msk.bf16.mxu0 %vm1100_vm2, %v3258_v55  ;;  %v6390_v55 = vld [vmem:[%s7775_s27 + $0x50] sm:$0xff]  }
0x170c   : > { %6083 = vmatpush3.bf16.xpose.msra.mxu0 %v3269_v58 }
0x170d   : > { %6104 = vmatprep.subr.bf16.mxu0 %v6386_v57 }
0x1713   : > { %6085 = vmatmul.mubr.msk.bf16.vlgmr.msra.gmra.mrb[64].mxu0 %vm1100_vm2, %v3256_v0 }
0x1714   : > { %6105 = vmatpush3.bf16.msra.mxu0 %v6386_v57  ;;  %6108 = vmatprep.mubr.msk.bf16.mxu0 %vm816_vm1, %v7280_v30  ;;  %v5475_v57 = vld [vmem:[%s7719_s9 + $0x10] sm:$0xf] }
0x1715   : > { %6106 = vmatprep.subr.bf16.mxu0 %v6387_v5 }
0x1718   : > { %6107 = vmatpush3.bf16.msra.mxu0 %v6387_v5 }
0x171b   : > { %6109 = vmatmul.mubr.msk.bf16.vlgmr.msra.gmra.mrb[68].mxu0 %vm816_vm1, %v7282_v31 }
0x17e6   : > { %v6086_v63 = vpop.f32.mrb[64].mxu0 }
0x17e7   : > { %v3305_v7 = vpop.f32.mrb[65].mxu0  ;;  %v3314_v10 = vadd.f32 %v6086_v63, %v6908_v42 }
0x17e8   : > { %v3306_v62 = vadd.f32 %v3305_v7, %v6908_v42  ;;  %v6087_v3 = vpop.f32.mrb[66].mxu0 }
0x17e9   : > { %v3308_v8 = vpop.f32.mrb[67].mxu0  ;;  %v3325_v19 = vsel %vm1161_vm5, %v3314_v10, -inf }
0x17ea   : > { %v3309_v1 = vadd.f32 %v3308_v8, %v6908_v42  ;;  %v3319_v15 = vsel %vm1161_vm5, %v3306_v62, -inf }
0x17eb   : > { %3320 = vmax.xlane.f32.xlu0 %v3319_v15 }
0x17ec   : > { %v3322_v12 = vsel %vm1161_vm5, %v3309_v1, -inf }
0x17ed   : > { %3323 = vmax.xlane.f32.xlu1 %v3322_v12 }
0x17ee   : > { %v6110_v6 = vpop.f32.mrb[68].mxu0 }
0x17ef   : > { %v3549_v17 = vpop.f32.mrb[69].mxu0  ;;  %3326 = vmax.xlane.f32.xlu0 %v3325_v19  ;;  %v3558_v11 = vadd.f32 %v6110_v6, %v5491_v16 }
0x17f0   : > { %v6111_v23 = vpop.f32.mrb[70].mxu0  ;;  %v3550_v26 = vadd.f32 %v5491_v16, %v3549_v17  ;;  %v6392_v17 = vld [vmem:[%s7776_s29 + $0x60] sm:$0xff]  }
0x17f1   : > { %v3552_v24 = vpop.f32.mrb[71].mxu0  ;;  %v3639_v29 = vpack.c.bf16 %v3558_v11, %v3558_v11 }
0x17f2   : > { %v3553_v27 = vadd.f32 %v5491_v16, %v3552_v24  ;;  %v3862_v16 = vsel %vm1205_vm3, %v5475_v57, 0  ;;  %v5501_v24 = vld [vmem:[%s7777_s8 + $0x5] ss:$0 sm:$0xff] }
0x17f3   : > { %v3650_v18 = vsel %vm1100_vm2, %v3639_v29, 0 }
0x17f4   : > { %v3638_v28 = vpack.c.bf16 %v3553_v27, %v3550_v26 }
0x17f6   : > { %6287 = vmatprep.subr.msk.bf16.mxu0 %vm1100_vm2, %v3638_v28  ;;  %v3647_v60 = vsel %vm1100_vm2, %v3638_v28, 0 }
0x17f7   : > { %6121 = vmatpush3.bf16.xpose.msra.mxu0 %v3647_v60 }
0x17f8   : > { %6288 = vmatprep.subr.msk.bf16.mxu0 %vm1100_vm2, %v3639_v29 }
0x17ff   : > { %6123 = vmatpush3.bf16.xpose.msra.mxu0 %v3650_v18 }
0x1800   : > { %6291 = vmatprep.subr.msk.bf16.mxu0 %vm1205_vm3, %v5475_v57 }
0x1878   : > { %v3321_v32 = vpop.xlane.xlu0 %3320 }
0x1879   : > { %v3328_v9 = vsub.f32 %v3306_v62, %v3321_v32  ;;  %v5481_v62 = vld [vmem:[%s7778_s26 + $0x5] ss:$0 sm:$0xff] }
0x187a   : > { %v3324_v33 = vpop.xlane.xlu1 %3323 }
0x187b   : > { %v3331_v34 = vmul.f32 1.442695, %v3328_v9  ;;  %v3329_v2 = vsub.f32 %v3309_v1, %v3324_v33  ;;  %v6393_v9 = vld [vmem:[%s7776_s29 + $0x68] sm:$0xff]  }
0x187c   : > { %v3327_v20 = vpop.xlane.xlu0 %3326 }
0x187d   : > { %6490 = vpow2.f32 %v3331_v34  ;;  %v3333_v4 = vmul.f32 1.442695, %v3329_v2  ;;  %v3330_v35 = vsub.f32 %v3314_v10, %v3327_v20 }
0x187f   : > { %6492 = vpow2.f32 %v3333_v4  ;;  %v3335_v13 = vmul.f32 1.442695, %v3330_v35 }
0x1881   : > { %6494 = vpow2.f32 %v3335_v13 }
0x1887   : > { %v6491_v36 = vpop.eup %6490 }
0x1888   : > { %v3337_v39 = vsel %vm1161_vm5, %v6491_v36, 0.0 }
0x1889   : > { %v6493_v40 = vpop.eup %6492  ;;  %3338 = vadd.xlane.f32.xlu1 %v3337_v39 }
0x188a   : > { %v3340_v41 = vsel %vm1161_vm5, %v6493_v40, 0.0 }
0x188b   : > { %v6495_v21 = vpop.eup %6494  ;;  %3341 = vadd.xlane.f32.xlu0 %v3340_v41 }
0x188c   : > { %v3343_v43 = vsel %vm1161_vm5, %v6495_v21, 0.0 }
0x188d   : > { %3344 = vadd.xlane.f32.xlu1 %v3343_v43 }
0x1916   : > { %v3339_v61 = vpop.xlane.xlu1 %3338 }
0x1917   : > { %6496 = vrcp.f32 %v3339_v61 }
0x1918   : > { %v3342_v45 = vpop.xlane.xlu0 %3341 }
0x1919   : > { %6498 = vrcp.f32 %v3342_v45 }
0x191a   : > { %v3345_v14 = vpop.xlane.xlu1 %3344 }
0x191b   : > { %6500 = vrcp.f32 %v3345_v14 }
0x1921   : > { %v6497_v46 = vpop.eup %6496 }
0x1922   : > { %v3349_v48 = vmul.f32 %v6497_v46, %v6491_v36  ;;  %v5530_v46 = vld [vmem:[%s7780_s2 + $0x6] ss:$0 sm:$0xff] }
0x1923   : > { %v6499_v47 = vpop.eup %6498 }
0x1924   : > { %v3350_v49 = vmul.f32 %v6499_v47, %v6493_v40 }
0x1925   : > { %v6501_v50 = vpop.eup %6500 }
0x1926   : > { %v3351_v51 = vmul.f32 %v6501_v50, %v6495_v21  ;;  %v3352_v52 = vpack.c.bf16 %v3350_v49, %v3349_v48 }
0x1928   : > { %6092 = vmatprep.mubr.msk.bf16.mxu1 %vm1161_vm5, %v3352_v52  ;;  %v3353_v53 = vpack.c.bf16 %v3351_v51, %v3351_v51 }
0x192a   : > { %6093 = vmatmul.mubr.msk.bf16.vlgmr.msra.gmra.mrb[56].mxu1 %vm1161_vm5, %v3353_v53 }
0x192b   : > { %6097 = vmatpush3.bf16.msra.mxu1 %v6388_v44  ;;  %6100 = vmatprep.mubr.msk.bf16.mxu1 %vm816_vm1, %v7280_v30 }
0x192c   : > { %6098 = vmatprep.subr.bf16.mxu1 %v6389_v54 }
0x192f   : > { %6099 = vmatpush3.bf16.msra.mxu1 %v6389_v54 }
0x1930   : > { %6112 = vmatprep.subr.bf16.mxu1 %v6390_v55 }
0x1932   : > { %6101 = vmatmul.mubr.msk.bf16.vlgmr.msra.gmra.mrb[60].mxu1 %vm816_vm1, %v7282_v31 }
0x1933   : > { %6113 = vmatpush3.bf16.msra.mxu1 %v6390_v55  ;;  %6116 = vmatprep.mubr.msk.bf16.mxu1 %vm816_vm1, %v7280_v30 }
0x1934   : > { %6114 = vmatprep.subr.bf16.mxu1 %v6391_v56 }
0x1937   : > { %6115 = vmatpush3.bf16.msra.mxu1 %v6391_v56 }
0x193a   : > { %6117 = vmatmul.mubr.msk.bf16.vlgmr.msra.gmra.mrb[64].mxu1 %vm816_vm1, %v7282_v31 }
0x19fd   : > { %v6094_v58 = vpop.f32.mrb[56].mxu1 }
0x19fe   : > { %v3399_v59 = vpop.f32.mrb[57].mxu1  ;;  %v3414_v32 = vpack.c.bf16 %v6094_v58, %v6094_v58 }
0x19ff   : > { %v6095_v0 = vpop.f32.mrb[58].mxu1 }
0x1a00   : > { %v3402_v5 = vpop.f32.mrb[59].mxu1 }
0x1a01   : > { %v3413_v63 = vpack.c.bf16 %v3402_v5, %v3399_v59 }
0x1a05   : > { %v6102_v7 = vpop.f32.mrb[60].mxu1 }
0x1a06   : > { %v3476_v3 = vpop.f32.mrb[61].mxu1  ;;  %v3485_v10 = vadd.f32 %v6102_v7, %v5481_v62 }
0x1a07   : > { %v6103_v8 = vpop.f32.mrb[62].mxu1  ;;  %v3477_v15 = vadd.f32 %v5481_v62, %v3476_v3 }
0x1a08   : > { %v3479_v1 = vpop.f32.mrb[63].mxu1  ;;  %v3637_v19 = vpack.c.bf16 %v3485_v10, %v3485_v10 }
0x1a09   : > { %v3480_v12 = vadd.f32 %v5481_v62, %v3479_v1 }
0x1a0b   : > { %v3636_v6 = vpack.c.bf16 %v3480_v12, %v3477_v15 }
0x1a0d   : > { %v6118_v23 = vpop.f32.mrb[64].mxu1  ;;  %6124 = vmatprep.mubr.msk.bf16.mxu0 %vm1100_vm2, %v3636_v6 }
0x1a0e   : > { %v3622_v11 = vpop.f32.mrb[65].mxu1  ;;  %6125 = vmatmul.mubr.msk.bf16.vlgmr.msra.gmra.mrb[72].mxu0 %vm1100_vm2, %v3637_v19  ;;  %v3631_v28 = vadd.f32 %v6118_v23, %v5501_v24  ;;  %v5510_v19 = vld [vmem:[%s7719_s9 + $0x14] sm:$0xf] }
0x1a0f   : > { %v6119_v26 = vpop.f32.mrb[66].mxu1  ;;  %6144 = vmatprep.mubr.msk.bf16.mxu0 %vm1100_vm2, %v3413_v63  ;;  %6143 = vmatpush3.bf16.msra.mxu0 %v3862_v16  ;;  %v3623_v29 = vadd.f32 %v5501_v24, %v3622_v11 }
0x1a10   : > { %v3625_v27 = vpop.f32.mrb[67].mxu1  ;;  %6156 = vmatprep.subr.bf16.mxu0 %v6392_v17  ;;  %v3736_v33 = vpack.c.bf16 %v3631_v28, %v3631_v28 }
0x1a11   : > { %v3626_v60 = vadd.f32 %v5501_v24, %v3625_v27 }
0x1a12   : > { %v3744_v34 = vsel %vm1205_vm3, %v3736_v33, 0 }
0x1a13   : > { %v3735_v18 = vpack.c.bf16 %v3626_v60, %v3623_v29 }
0x1a15   : > { %6128 = vmatprep.subr.bf16.mxu1 %v3735_v18 }
0x1a16   : > { %6129 = vmatpush3.bf16.msra.mxu1 %v3735_v18  ;;  %6145 = vmatmul.mubr.msk.bf16.vlgmr.msra.gmra.mrb[76].mxu0 %vm1100_vm2, %v3414_v32  ;;  %v3805_v32 = vsel %vm1205_vm3, %v5510_v19, 0 }
0x1a17   : > { %6289 = vmatprep.subr.msk.bf16.mxu1 %vm1205_vm3, %v3736_v33  ;;  %6157 = vmatpush3.bf16.msra.mxu0 %v6392_v17 }
0x1a18   : > { %6160 = vmatprep.mubr.msk.bf16.mxu0 %vm816_vm1, %v7280_v30  ;;  %6158 = vmatprep.subr.bf16.mxu0 %v6393_v9 }
0x1a1a   : > { %6131 = vmatpush3.bf16.msra.mxu1 %v3744_v34 }
0x1a1b   : > { %6159 = vmatpush3.bf16.msra.mxu0 %v6393_v9  ;;  %6290 = vmatprep.subr.msk.bf16.mxu1 %vm1205_vm3, %v5510_v19  ;;  %v6394_v9 = vld [vmem:[%s7773_s6 + $0x60] sm:$0xff]  }
0x1a1e   : > { %6161 = vmatmul.mubr.msk.bf16.vlgmr.msra.gmra.mrb[80].mxu0 %vm816_vm1, %v7282_v31 }
0x1ae1   : > { %v6126_v2 = vpop.f32.mrb[72].mxu0 }
0x1ae2   : > { %v3686_v20 = vpop.f32.mrb[73].mxu0  ;;  %v3695_v36 = vadd.f32 %v6126_v2, %v6908_v42 }
0x1ae3   : > { %v3687_v4 = vadd.f32 %v3686_v20, %v6908_v42  ;;  %v6127_v35 = vpop.f32.mrb[74].mxu0 }
0x1ae4   : > { %v3689_v13 = vpop.f32.mrb[75].mxu0  ;;  %v3706_v43 = vsel %vm1161_vm5, %v3695_v36, -inf }
0x1ae5   : > { %v3690_v39 = vadd.f32 %v3689_v13, %v6908_v42  ;;  %v3700_v40 = vsel %vm1161_vm5, %v3687_v4, -inf  ;;  %v6395_v13 = vld [vmem:[%s7773_s6 + $0x68] sm:$0xff]  }
0x1ae6   : > { %3701 = vmax.xlane.f32.xlu0 %v3700_v40  ;;  %v6398_v40 = vld [vmem:[%s7773_s6 + $0x70] sm:$0xff]  }
0x1ae7   : > { %v3703_v41 = vsel %vm1161_vm5, %v3690_v39, -inf }
0x1ae8   : > { %3704 = vmax.xlane.f32.xlu1 %v3703_v41 }
0x1ae9   : > { %v7396_v21 = vpop.f32.mrb[76].mxu0 }
0x1aea   : > { %3707 = vmax.xlane.f32.xlu0 %v3706_v43  ;;  %v7399_v44 = vpop.f32.mrb[77].mxu0 }
0x1aeb   : > { %v6147_v61 = vpop.f32.mrb[78].mxu0 }
0x1aec   : > { %v7401_v45 = vpop.f32.mrb[79].mxu0 }
0x1af1   : > { %v6162_v14 = vpop.f32.mrb[80].mxu0 }
0x1af2   : > { %v4044_v47 = vpop.f32.mrb[81].mxu0  ;;  %v4053_v50 = vadd.f32 %v6162_v14, %v5530_v46 }
0x1af3   : > { %v6163_v48 = vpop.f32.mrb[82].mxu0  ;;  %v4045_v51 = vadd.f32 %v5530_v46, %v4044_v47 }
0x1af4   : > { %v4047_v49 = vpop.f32.mrb[83].mxu0  ;;  %v4134_v54 = vpack.c.bf16 %v4053_v50, %v4053_v50  ;;  %v5520_v50 = vld [vmem:[%s7778_s26 + $0x6] ss:$0 sm:$0xff] }
0x1af5   : > { %v4048_v52 = vadd.f32 %v5530_v46, %v4047_v49 }
0x1af6   : > { %v4145_v56 = vsel %vm1100_vm2, %v4134_v54, 0 }
0x1af7   : > { %v4133_v53 = vpack.c.bf16 %v4048_v52, %v4045_v51 }
0x1af9   : > { %6292 = vmatprep.subr.msk.bf16.mxu0 %vm1100_vm2, %v4133_v53  ;;  %v4142_v55 = vsel %vm1100_vm2, %v4133_v53, 0 }
0x1afa   : > { %6173 = vmatpush3.bf16.xpose.msra.mxu0 %v4142_v55 }
0x1afb   : > { %6293 = vmatprep.subr.msk.bf16.mxu0 %vm1100_vm2, %v4134_v54 }
0x1b02   : > { %6175 = vmatpush3.bf16.xpose.msra.mxu0 %v4145_v56 }
0x1b03   : > { %6194 = vmatprep.subr.bf16.mxu0 %v6398_v40 }
0x1b73   : > { %v3702_v57 = vpop.xlane.xlu0 %3701 }
0x1b74   : > { %v3709_v58 = vsub.f32 %v3687_v4, %v3702_v57 }
0x1b75   : > { %v3705_v59 = vpop.xlane.xlu1 %3704 }
0x1b76   : > { %v3712_v0 = vmul.f32 1.442695, %v3709_v58  ;;  %v3710_v5 = vsub.f32 %v3690_v39, %v3705_v59  ;;  %v6397_v39 = vld [vmem:[%s7775_s27 + $0x68] sm:$0xff]  }
0x1b77   : > { %v3708_v63 = vpop.xlane.xlu0 %3707 }
0x1b78   : > { %6502 = vpow2.f32 %v3712_v0  ;;  %v3714_v7 = vmul.f32 1.442695, %v3710_v5  ;;  %v3711_v62 = vsub.f32 %v3695_v36, %v3708_v63  ;;  %v6396_v36 = vld [vmem:[%s7775_s27 + $0x60] sm:$0xff]   ;;  %v6400_v63 = vld [vmem:[%s7775_s27 + $0x70] sm:$0xff]  }
0x1b7a   : > { %6504 = vpow2.f32 %v3714_v7  ;;  %v3716_v3 = vmul.f32 1.442695, %v3711_v62 }
0x1b7c   : > { %6506 = vpow2.f32 %v3716_v3 }
0x1b82   : > { %v6503_v8 = vpop.eup %6502 }
0x1b83   : > { %v3718_v10 = vsel %vm1161_vm5, %v6503_v8, 0.0 }
0x1b84   : > { %v6505_v1 = vpop.eup %6504  ;;  %3719 = vadd.xlane.f32.xlu1 %v3718_v10  ;;  %v6401_v10 = vld [vmem:[%s7775_s27 + $0x78] sm:$0xff]  }
0x1b85   : > { %v3721_v15 = vsel %vm1161_vm5, %v6505_v1, 0.0 }
0x1b86   : > { %v6507_v12 = vpop.eup %6506  ;;  %3722 = vadd.xlane.f32.xlu0 %v3721_v15 }
0x1b87   : > { %v3724_v6 = vsel %vm1161_vm5, %v6507_v12, 0.0 }
0x1b88   : > { %3725 = vadd.xlane.f32.xlu1 %v3724_v6 }
0x1c11   : > { %v3720_v16 = vpop.xlane.xlu1 %3719 }
0x1c12   : > { %6508 = vrcp.f32 %v3720_v16 }
0x1c13   : > { %v3723_v17 = vpop.xlane.xlu0 %3722 }
0x1c14   : > { %6510 = vrcp.f32 %v3723_v17 }
0x1c15   : > { %v3726_v23 = vpop.xlane.xlu1 %3725 }
0x1c16   : > { %6512 = vrcp.f32 %v3726_v23 }
0x1c1c   : > { %v6509_v24 = vpop.eup %6508 }
0x1c1d   : > { %v3730_v26 = vmul.f32 %v6509_v24, %v6503_v8 }
0x1c1e   : > { %v6511_v11 = vpop.eup %6510 }
0x1c1f   : > { %v3731_v27 = vmul.f32 %v6511_v11, %v6505_v1 }
0x1c20   : > { %v6513_v28 = vpop.eup %6512 }
0x1c21   : > { %v3732_v29 = vmul.f32 %v6513_v28, %v6507_v12  ;;  %v3733_v60 = vpack.c.bf16 %v3731_v27, %v3730_v26  ;;  %v5557_v27 = vld [vmem:[%s7778_s26 + $0x7] ss:$0 sm:$0xff] }
0x1c23   : > { %6132 = vmatprep.mubr.msk.bf16.mxu1 %vm1161_vm5, %v3733_v60  ;;  %v3734_v18 = vpack.c.bf16 %v3732_v29, %v3732_v29 }
0x1c25   : > { %6133 = vmatmul.mubr.msk.bf16.vlgmr.msra.gmra.mrb[68].mxu1 %vm1161_vm5, %v3734_v18 }
0x1c26   : > { %6137 = vmatpush3.bf16.msra.mxu1 %v3805_v32 }
0x1c27   : > { %6148 = vmatprep.subr.bf16.mxu1 %v6394_v9 }
0x1cf8   : > { %v6134_v33 = vpop.f32.mrb[68].mxu1 }
0x1cf9   : > { %v3780_v34 = vpop.f32.mrb[69].mxu1  ;;  %v3795_v35 = vpack.c.bf16 %v6134_v33, %v6134_v33 }
0x1cfa   : > { %v6135_v2 = vpop.f32.mrb[70].mxu1 }
0x1cfb   : > { %v3783_v20 = vpop.f32.mrb[71].mxu1 }
0x1cfc   : > { %v3794_v4 = vpack.c.bf16 %v3783_v20, %v3780_v34 }
0x1cfe   : > { %6138 = vmatprep.mubr.msk.bf16.mxu1 %vm1100_vm2, %v3794_v4  ;;  %v5577_v4 = vld [vmem:[%s7777_s8 + $0x7] ss:$0 sm:$0xff] }
0x1cff   : > { %6139 = vmatmul.mubr.msk.bf16.vlgmr.msra.gmra.mrb[72].mxu1 %vm1100_vm2, %v3795_v35 }
0x1d00   : > { %6149 = vmatpush3.bf16.msra.mxu1 %v6394_v9  ;;  %6152 = vmatprep.mubr.msk.bf16.mxu1 %vm816_vm1, %v7280_v30 }
0x1d01   : > { %6150 = vmatprep.subr.bf16.mxu1 %v6395_v13 }
0x1d04   : > { %6151 = vmatpush3.bf16.msra.mxu1 %v6395_v13 }
0x1d05   : > { %6164 = vmatprep.subr.bf16.mxu1 %v6396_v36 }
0x1d07   : > { %6153 = vmatmul.mubr.msk.bf16.vlgmr.msra.gmra.mrb[76].mxu1 %vm816_vm1, %v7282_v31 }
0x1d08   : > { %6165 = vmatpush3.bf16.msra.mxu1 %v6396_v36  ;;  %6168 = vmatprep.mubr.msk.bf16.mxu1 %vm816_vm1, %v7280_v30 }
0x1d09   : > { %6166 = vmatprep.subr.bf16.mxu1 %v6397_v39 }
0x1d0c   : > { %6167 = vmatpush3.bf16.msra.mxu1 %v6397_v39 }
0x1d0f   : > { %6169 = vmatmul.mubr.msk.bf16.vlgmr.msra.gmra.mrb[80].mxu1 %vm816_vm1, %v7282_v31 }
0x1dd2   : > { %v6140_v41 = vpop.f32.mrb[72].mxu1 }
0x1dd3   : > { %v7446_v43 = vadd.f32 %v7396_v21, %v6140_v41  ;;  %v3841_v61 = vpop.f32.mrb[73].mxu1 }
0x1dd4   : > { %v7449_v14 = vadd.f32 %v7399_v44, %v3841_v61  ;;  %v6141_v46 = vpop.f32.mrb[74].mxu1  ;;  %v6399_v44 = vld [vmem:[%s7773_s6 + $0x78] sm:$0xff]   ;;  %s7668_s6 = scalar_lea.hbm %s7781_s28, %s5624_s3 }
0x1dd5   : > { %v3844_v47 = vpop.f32.mrb[75].mxu1 }
0x1dd6   : > { %v7452_v48 = vadd.f32 %v7401_v45, %v3844_v47  ;;  %v5540_v45 = vld [vmem:[%s7777_s8 + $0x6] ss:$0 sm:$0xff]  ;;  %s6562_s8 = sshll.u32 %s6626_s4, 4  ;;  %s6563_s8 = int_to_ptr.vmem [resolvable:$false] %s6562_s8 }
0x1dd7   : > { %s6564_s1 = scalar_lea.vmem %s6563_s8, 32 }
0x1dda   : > { %v6154_v49 = vpop.f32.mrb[76].mxu1 }
0x1ddb   : > { %v3971_v51 = vpop.f32.mrb[77].mxu1  ;;  %v3980_v53 = vadd.f32 %v6154_v49, %v5520_v50 }
0x1ddc   : > { %v6155_v52 = vpop.f32.mrb[78].mxu1  ;;  %v3972_v21 = vadd.f32 %v5520_v50, %v3971_v51 }
0x1ddd   : > { %v3974_v54 = vpop.f32.mrb[79].mxu1  ;;  %v4132_v57 = vpack.c.bf16 %v3980_v53, %v3980_v53 }
0x1dde   : > { %v3975_v55 = vadd.f32 %v5520_v50, %v3974_v54 }
0x1de0   : > { %v4131_v56 = vpack.c.bf16 %v3975_v55, %v3972_v21 }
0x1de2   : > { %v6170_v58 = vpop.f32.mrb[80].mxu1  ;;  %6176 = vmatprep.mubr.msk.bf16.mxu0 %vm1100_vm2, %v4131_v56 }
0x1de3   : > { %v4117_v59 = vpop.f32.mrb[81].mxu1  ;;  %6177 = vmatmul.mubr.msk.bf16.vlgmr.msra.gmra.mrb[84].mxu0 %vm1100_vm2, %v4132_v57  ;;  %v4126_v7 = vadd.f32 %v6170_v58, %v5540_v45 }
0x1de4   : > { %v6171_v0 = vpop.f32.mrb[82].mxu1  ;;  %6195 = vmatpush3.bf16.msra.mxu0 %v6398_v40  ;;  %6198 = vmatprep.mubr.msk.bf16.mxu0 %vm816_vm1, %v7280_v30  ;;  %v4118_v62 = vadd.f32 %v5540_v45, %v4117_v59 }
0x1de5   : > { %v4120_v5 = vpop.f32.mrb[83].mxu1  ;;  %6196 = vmatprep.subr.bf16.mxu0 %v6399_v44  ;;  %v4231_v1 = vpack.c.bf16 %v4126_v7, %v4126_v7 }
0x1de6   : > { %v4121_v3 = vadd.f32 %v5540_v45, %v4120_v5  ;;  %v5549_v5 = vld [vmem:[%s7719_s9 + $0x18] sm:$0xf] }
0x1de7   : > { %v4239_v15 = vsel %vm1205_vm3, %v4231_v1, 0 }
0x1de8   : > { %v4230_v8 = vpack.c.bf16 %v4121_v3, %v4118_v62  ;;  %6197 = vmatpush3.bf16.msra.mxu0 %v6399_v44 }
0x1de9   : > { %6210 = vmatprep.subr.bf16.mxu0 %v6400_v63 }
0x1dea   : > { %6180 = vmatprep.subr.bf16.mxu1 %v4230_v8 }
0x1deb   : > { %6181 = vmatpush3.bf16.msra.mxu1 %v4230_v8  ;;  %6199 = vmatmul.mubr.msk.bf16.vlgmr.msra.gmra.mrb[88].mxu0 %vm816_vm1, %v7282_v31 }
0x1dec   : > { %6294 = vmatprep.subr.msk.bf16.mxu1 %vm1205_vm3, %v4231_v1  ;;  %6211 = vmatpush3.bf16.msra.mxu0 %v6400_v63 }
0x1ded   : > { %6214 = vmatprep.mubr.msk.bf16.mxu0 %vm816_vm1, %v7280_v30  ;;  %6212 = vmatprep.subr.bf16.mxu0 %v6401_v10 }
0x1def   : > { %6183 = vmatpush3.bf16.msra.mxu1 %v4239_v15 }
0x1df0   : > { %6213 = vmatpush3.bf16.msra.mxu0 %v6401_v10  ;;  %6295 = vmatprep.subr.msk.bf16.mxu1 %vm1205_vm3, %v5549_v5 }
0x1df3   : > { %6215 = vmatmul.mubr.msk.bf16.vlgmr.msra.gmra.mrb[92].mxu0 %vm816_vm1, %v7282_v31 }
0x1eb6   : > { %v6178_v12 = vpop.f32.mrb[84].mxu0 }
0x1eb7   : > { %v4181_v6 = vpop.f32.mrb[85].mxu0  ;;  %v4190_v23 = vadd.f32 %v6178_v12, %v6908_v42 }
0x1eb8   : > { %v4182_v19 = vadd.f32 %v4181_v6, %v6908_v42  ;;  %v6179_v16 = vpop.f32.mrb[86].mxu0 }
0x1eb9   : > { %v4184_v17 = vpop.f32.mrb[87].mxu0  ;;  %v4201_v29 = vsel %vm1161_vm5, %v4190_v23, -inf  ;;  %v4300_v16 = vsel %vm1205_vm3, %v5549_v5, 0 }
0x1eba   : > { %v4185_v24 = vadd.f32 %v4184_v17, %v6908_v42  ;;  %v4195_v11 = vsel %vm1161_vm5, %v4182_v19, -inf  ;;  %v6402_v17 = vld [vmem:[%s7776_s29 + $0x70] sm:$0xff]  }
0x1ebb   : > { %4196 = vmax.xlane.f32.xlu0 %v4195_v11 }
0x1ebc   : > { %v4198_v26 = vsel %vm1161_vm5, %v4185_v24, -inf }
0x1ebd   : > { %4199 = vmax.xlane.f32.xlu1 %v4198_v26 }
0x1ebe   : > { %v6200_v28 = vpop.f32.mrb[88].mxu0 }
0x1ebf   : > { %v7490_v60 = vadd.f32 %v6200_v28, %v5557_v27  ;;  %v4412_v18 = vpop.f32.mrb[89].mxu0  ;;  %4202 = vmax.xlane.f32.xlu0 %v4201_v29  ;;  %v6403_v29 = vld [vmem:[%s7776_s29 + $0x78] sm:$0xff]  }
0x1ec0   : > { %v6201_v32 = vpop.f32.mrb[90].mxu0  ;;  %v7492_v33 = vadd.f32 %v5557_v27, %v4412_v18 }
0x1ec1   : > { %v4415_v9 = vpop.f32.mrb[91].mxu0 }
0x1ec2   : > { %v7494_v34 = vadd.f32 %v5557_v27, %v4415_v9 }
0x1ec4   : > { %v4572_v2 = vpack.c.bf16 %v7494_v34, %v7492_v33 }
0x1ec6   : > { %v6216_v20 = vpop.f32.mrb[92].mxu0 }
0x1ec7   : > { %v4558_v35 = vpop.f32.mrb[93].mxu0  ;;  %v4567_v39 = vadd.f32 %v6216_v20, %v5577_v4 }
0x1ec8   : > { %v6217_v13 = vpop.f32.mrb[94].mxu0  ;;  %v4559_v40 = vadd.f32 %v5577_v4, %v4558_v35 }
0x1ec9   : > { %v4561_v36 = vpop.f32.mrb[95].mxu0  ;;  %v4672_v46 = vpack.c.bf16 %v4567_v39, %v4567_v39 }
0x1eca   : > { %v4562_v41 = vadd.f32 %v5577_v4, %v4561_v36 }
0x1ecb   : > { %v4680_v47 = vsel %vm1205_vm3, %v4672_v46, 0 }
0x1ecc   : > { %v4671_v61 = vpack.c.bf16 %v4562_v41, %v4559_v40 }
0x1ece   : > { %6226 = vmatprep.subr.bf16.mxu0 %v4671_v61 }
0x1ecf   : > { %6227 = vmatpush3.bf16.msra.mxu0 %v4671_v61  ;;  %v4573_v61 = vpack.c.bf16 %v7490_v60, %v7490_v60 }
0x1ed0   : > { %6298 = vmatprep.subr.msk.bf16.mxu0 %vm1205_vm3, %v4672_v46 }
0x1ed3   : > { %6229 = vmatpush3.bf16.msra.mxu0 %v4680_v47 }
0x1f48   : > { %v4197_v49 = vpop.xlane.xlu0 %4196 }
0x1f49   : > { %v4204_v50 = vsub.f32 %v4182_v19, %v4197_v49 }
0x1f4a   : > { %v4200_v51 = vpop.xlane.xlu1 %4199 }
0x1f4b   : > { %v4207_v52 = vmul.f32 1.442695, %v4204_v50  ;;  %v4205_v53 = vsub.f32 %v4185_v24, %v4200_v51 }
0x1f4c   : > { %v4203_v54 = vpop.xlane.xlu0 %4202 }
0x1f4d   : > { %6514 = vpow2.f32 %v4207_v52  ;;  %v4209_v21 = vmul.f32 1.442695, %v4205_v53  ;;  %v4206_v55 = vsub.f32 %v4190_v23, %v4203_v54 }
0x1f4f   : > { %6516 = vpow2.f32 %v4209_v21  ;;  %v4211_v56 = vmul.f32 1.442695, %v4206_v55 }
0x1f51   : > { %6518 = vpow2.f32 %v4211_v56 }
0x1f57   : > { %v6515_v57 = vpop.eup %6514 }
0x1f58   : > { %v4213_v44 = vsel %vm1161_vm5, %v6515_v57, 0.0 }
0x1f59   : > { %v6517_v58 = vpop.eup %6516  ;;  %4214 = vadd.xlane.f32.xlu1 %v4213_v44 }
0x1f5a   : > { %v4216_v45 = vsel %vm1161_vm5, %v6517_v58, 0.0 }
0x1f5b   : > { %v6519_v59 = vpop.eup %6518  ;;  %4217 = vadd.xlane.f32.xlu0 %v4216_v45 }
0x1f5c   : > { %v4219_v0 = vsel %vm1161_vm5, %v6519_v59, 0.0 }
0x1f5d   : > { %4220 = vadd.xlane.f32.xlu1 %v4219_v0 }
0x1fe6   : > { %v4215_v63 = vpop.xlane.xlu1 %4214 }
0x1fe7   : > { %6520 = vrcp.f32 %v4215_v63 }
0x1fe8   : > { %v4218_v7 = vpop.xlane.xlu0 %4217 }
0x1fe9   : > { %6522 = vrcp.f32 %v4218_v7 }
0x1fea   : > { %v4221_v62 = vpop.xlane.xlu1 %4220 }
0x1feb   : > { %6524 = vrcp.f32 %v4221_v62 }
0x1ff1   : > { %v6521_v3 = vpop.eup %6520 }
0x1ff2   : > { %v4225_v10 = vmul.f32 %v6521_v3, %v6515_v57 }
0x1ff3   : > { %v6523_v8 = vpop.eup %6522 }
0x1ff4   : > { %v4226_v1 = vmul.f32 %v6523_v8, %v6517_v58 }
0x1ff5   : > { %v6525_v15 = vpop.eup %6524 }
0x1ff6   : > { %v4227_v12 = vmul.f32 %v6525_v15, %v6519_v59  ;;  %v4228_v6 = vpack.c.bf16 %v4226_v1, %v4225_v10  ;;  %v5586_v10 = vld [vmem:[%s7719_s9 + $0x1c] sm:$0xf] }
0x1ff7   : > { %6299 = vmatprep.subr.msk.bf16.mxu0 %vm1205_vm3, %v5586_v10 }
0x1ff8   : > { %6184 = vmatprep.mubr.msk.bf16.mxu1 %vm1161_vm5, %v4228_v6  ;;  %v4229_v19 = vpack.c.bf16 %v4227_v12, %v4227_v12 }
0x1ffa   : > { %6185 = vmatmul.mubr.msk.bf16.vlgmr.msra.gmra.mrb[84].mxu1 %vm1161_vm5, %v4229_v19 }
0x1ffb   : > { %6189 = vmatpush3.bf16.msra.mxu1 %v4300_v16 }
0x1ffc   : > { %6202 = vmatprep.subr.bf16.mxu1 %v6402_v17 }
0x20cd   : > { %v6186_v23 = vpop.f32.mrb[84].mxu1 }
0x20ce   : > { %v4275_v24 = vpop.f32.mrb[85].mxu1  ;;  %v4290_v28 = vpack.c.bf16 %v6186_v23, %v6186_v23 }
0x20cf   : > { %v6187_v11 = vpop.f32.mrb[86].mxu1 }
0x20d0   : > { %v4278_v26 = vpop.f32.mrb[87].mxu1 }
0x20d1   : > { %v4289_v27 = vpack.c.bf16 %v4278_v26, %v4275_v24 }
0x20d3   : > { %6190 = vmatprep.mubr.msk.bf16.mxu1 %vm1100_vm2, %v4289_v27  ;;  %v4741_v27 = vsel %vm1205_vm3, %v5586_v10, 0  ;;  %v5593_v10 = vld [vmem:[%s7723_s13 + $0x1] ss:$0 sm:$0xff] }
0x20d4   : > { %6191 = vmatmul.mubr.msk.bf16.vlgmr.msra.gmra.mrb[88].mxu1 %vm1100_vm2, %v4290_v28 }
0x20d5   : > { %6203 = vmatpush3.bf16.msra.mxu1 %v6402_v17  ;;  %6206 = vmatprep.mubr.msk.bf16.mxu1 %vm816_vm1, %v7280_v30 }
0x20d6   : > { %6204 = vmatprep.subr.bf16.mxu1 %v6403_v29 }
0x20d9   : > { %6205 = vmatpush3.bf16.msra.mxu1 %v6403_v29 }
0x20dc   : > { %6207 = vmatmul.mubr.msk.bf16.vlgmr.msra.gmra.mrb[92].mxu1 %vm816_vm1, %v7282_v31  ;;  %v5567_v31 = vld [vmem:[%s7780_s2 + $0x7] ss:$0 sm:$0xff]  ;;  %s702_s2 = scalar_lea.vmem [#allocation2], %s701_s23 }
0x20dd   : > { %6222 = vmatprep.mubr.msk.bf16.mxu1 %vm1100_vm2, %v4572_v2  ;;  %s5220_s0 = sshll.u32 %s702_s2, 4  ;;  %s7670_s0 = int_to_ptr.vmem [resolvable:$true] %s5220_s0 }
0x20de   : > { %s6558_s5 = scalar_lea.vmem %s7670_s0, 16  ;;  %p6565_p0 = scmp.lt.s32.totalorder %s7670_s0, %s6563_s8 }
0x20df   : > { %p6559_p11 = scmp.ne.s32.totalorder %s7670_s0, %s6558_s5  ;;  %p6566_p1 = scmp.lt.s32.totalorder %s6564_s1, %s6558_s5 }
0x20e1   : > { %p6560_p12 = pnand %p6559_p11, %p6785_p5  ;;  %p6567_p2 = por %p6566_p1, %p6565_p0 }
0x20e3   : > { %p6561_p13 = pneg %p6560_p12 }
0x20e5   : > { %p6568_p3 = pnand %p6567_p2, %p6561_p13 }
0x21a7   : > { %v6192_v18 = vpop.f32.mrb[88].mxu1 }
0x21a8   : > { %v7530_v32 = vadd.f32 %v6192_v18, %v7446_v43  ;;  %v4336_v9 = vpop.f32.mrb[89].mxu1 }
0x21a9   : > { %v7533_v20 = vadd.f32 %v4336_v9, %v7449_v14  ;;  %v6193_v4 = vpop.f32.mrb[90].mxu1 }
0x21aa   : > { %v4339_v30 = vpop.f32.mrb[91].mxu1 }
0x21ab   : > { %v7536_v35 = vadd.f32 %v4339_v30, %v7452_v48 }
0x21af   : > { %v6208_v13 = vpop.f32.mrb[92].mxu1 }
0x21b0   : > { %v4485_v33 = vpop.f32.mrb[93].mxu1  ;;  %v4494_v36 = vadd.f32 %v6208_v13, %v5567_v31 }
0x21b1   : > { %v6209_v34 = vpop.f32.mrb[94].mxu1  ;;  %v4486_v43 = vadd.f32 %v5567_v31, %v4485_v33 }
0x21b2   : > { %v4488_v2 = vpop.f32.mrb[95].mxu1  ;;  %v4575_v41 = vpack.c.bf16 %v4494_v36, %v4494_v36  ;;  %v5590_v36 = vld [vmem:[%s7720_s10 + $0x1] ss:$0 sm:$0xff] }
0x21b3   : > { %v4489_v39 = vadd.f32 %v5567_v31, %v4488_v2 }
0x21b4   : > { %v4586_v48 = vsel %vm1100_vm2, %v4575_v41, 0 }
0x21b5   : > { %v4574_v40 = vpack.c.bf16 %v4489_v39, %v4486_v43 }
0x21b7   : > { %6296 = vmatprep.subr.msk.bf16.mxu1 %vm1100_vm2, %v4574_v40  ;;  %v4583_v14 = vsel %vm1100_vm2, %v4574_v40, 0 }
0x21b8   : > { %6219 = vmatpush3.bf16.xpose.msra.mxu1 %v4583_v14 }
0x21b9   : > { %6297 = vmatprep.subr.msk.bf16.mxu1 %vm1100_vm2, %v4575_v41 }
0x21c0   : > { %6221 = vmatpush3.bf16.xpose.msra.mxu1 %v4586_v48 }
0x21c7   : > { %6223 = vmatmul.mubr.msk.bf16.vlgmr.msra.gmra.mrb[96].mxu1 %vm1100_vm2, %v4573_v61 }
0x229a   : > { %v6224_v46 = vpop.f32.mrb[96].mxu1 }
0x229b   : > { %v4622_v47 = vpop.f32.mrb[97].mxu1  ;;  %v4631_v52 = vadd.f32 %v6224_v46, %v6908_v42 }
0x229c   : > { %v4623_v49 = vadd.f32 %v4622_v47, %v6908_v42  ;;  %v6225_v50 = vpop.f32.mrb[98].mxu1 }
0x229d   : > { %v4625_v51 = vpop.f32.mrb[99].mxu1  ;;  %v4642_v60 = vsel %vm1161_vm5, %v4631_v52, -inf }
0x229e   : > { %v4626_v53 = vadd.f32 %v4625_v51, %v6908_v42  ;;  %v4636_v54 = vsel %vm1161_vm5, %v4623_v49, -inf }
0x229f   : > { %4637 = vmax.xlane.f32.xlu0 %v4636_v54 }
0x22a0   : > { %v4639_v21 = vsel %vm1161_vm5, %v4626_v53, -inf }
0x22a1   : > { %4640 = vmax.xlane.f32.xlu1 %v4639_v21 }
0x22a3   : > { %4643 = vmax.xlane.f32.xlu0 %v4642_v60 }
0x232c   : > { %v4638_v55 = vpop.xlane.xlu0 %4637 }
0x232d   : > { %v4645_v56 = vsub.f32 %v4623_v49, %v4638_v55 }
0x232e   : > { %v4641_v57 = vpop.xlane.xlu1 %4640 }
0x232f   : > { %v4648_v44 = vmul.f32 1.442695, %v4645_v56  ;;  %v4646_v58 = vsub.f32 %v4626_v53, %v4641_v57 }
0x2330   : > { %v4644_v45 = vpop.xlane.xlu0 %4643 }
0x2331   : > { %6526 = vpow2.f32 %v4648_v44  ;;  %v4650_v59 = vmul.f32 1.442695, %v4646_v58  ;;  %v4647_v0 = vsub.f32 %v4631_v52, %v4644_v45  ;;  %v6404_v44 = vld [vmem:[%s7725_s15 + $0x10] sm:$0xff]   ;;  %v6405_v58 = vld [vmem:[%s7725_s15 + $0x18] sm:$0xff]  }
0x2332   : > { %6240 = vmatprep.subr.bf16.mxu1 %v6404_v44 }
0x2333   : > { %6528 = vpow2.f32 %v4650_v59  ;;  %v4652_v42 = vmul.f32 1.442695, %v4647_v0  ;;  %6241 = vmatpush3.bf16.msra.mxu1 %v6404_v44 }
0x2334   : > { %6242 = vmatprep.subr.bf16.mxu1 %v6405_v58 }
0x2335   : > { %6530 = vpow2.f32 %v4652_v42 }
0x2337   : > { %6243 = vmatpush3.bf16.msra.mxu1 %v6405_v58 }
0x233b   : > { %v6527_v5 = vpop.eup %6526 }
0x233c   : > { %v4654_v63 = vsel %vm1161_vm5, %v6527_v5, 0.0 }
0x233d   : > { %v6529_v7 = vpop.eup %6528  ;;  %4655 = vadd.xlane.f32.xlu1 %v4654_v63 }
0x233e   : > { %v4657_v62 = vsel %vm1161_vm5, %v6529_v7, 0.0 }
0x233f   : > { %v6531_v3 = vpop.eup %6530  ;;  %4658 = vadd.xlane.f32.xlu0 %v4657_v62 }
0x2340   : > { %v4660_v8 = vsel %vm1161_vm5, %v6531_v3, 0.0 }
0x2341   : > { %4661 = vadd.xlane.f32.xlu1 %v4660_v8 }
0x23ca   : > { %v4656_v1 = vpop.xlane.xlu1 %4655 }
0x23cb   : > { %6532 = vrcp.f32 %v4656_v1 }
0x23cc   : > { %v4659_v15 = vpop.xlane.xlu0 %4658 }
0x23cd   : > { %6534 = vrcp.f32 %v4659_v15 }
0x23ce   : > { %v4662_v12 = vpop.xlane.xlu1 %4661 }
0x23cf   : > { %6536 = vrcp.f32 %v4662_v12 }
0x23d5   : > { %v6533_v6 = vpop.eup %6532 }
0x23d6   : > { %v4666_v16 = vmul.f32 %v6533_v6, %v6527_v5 }
0x23d7   : > { %v6535_v19 = vpop.eup %6534 }
0x23d8   : > { %v4667_v17 = vmul.f32 %v6535_v19, %v6529_v7 }
0x23d9   : > { %v6537_v23 = vpop.eup %6536 }
0x23da   : > { %v4668_v24 = vmul.f32 %v6537_v23, %v6531_v3  ;;  %v4669_v11 = vpack.c.bf16 %v4667_v17, %v4666_v16  ;;  %v5594_v16 = vld [vmem:[%s7724_s14 + $0x1] ss:$0 sm:$0xff] }
0x23dc   : > { %6230 = vmatprep.mubr.msk.bf16.mxu0 %vm1161_vm5, %v4669_v11  ;;  %v4670_v26 = vpack.c.bf16 %v4668_v24, %v4668_v24 }
0x23de   : > { %6231 = vmatmul.mubr.msk.bf16.vlgmr.msra.gmra.mrb[96].mxu0 %vm1161_vm5, %v4670_v26 }
0x23df   : > { %6235 = vmatpush3.bf16.msra.mxu0 %v4741_v27 }
0x24b1   : > { %v6232_v28 = vpop.f32.mrb[96].mxu0 }
0x24b2   : > { %v4716_v29 = vpop.f32.mrb[97].mxu0  ;;  %v4731_v30 = vpack.c.bf16 %v6232_v28, %v6232_v28 }
0x24b3   : > { %v6233_v18 = vpop.f32.mrb[98].mxu0 }
0x24b4   : > { %v4719_v9 = vpop.f32.mrb[99].mxu0  ;;  %v6406_v18 = vld [vmem:[%s7727_s17 + $0x20] sm:$0xff]  }
0x24b5   : > { %v4730_v4 = vpack.c.bf16 %v4719_v9, %v4716_v29  ;;  %6248 = vmatprep.subr.bf16.mxu0 %v6406_v18  ;;  %v6407_v9 = vld [vmem:[%s7727_s17 + $0x28] sm:$0xff]  }
0x24b7   : > { %6236 = vmatprep.mubr.msk.bf16.mxu0 %vm1100_vm2, %v4730_v4  ;;  %v6408_v4 = vld [vmem:[%s7727_s17 + $0x30] sm:$0xff]  }
0x24b8   : > { %6237 = vmatmul.mubr.msk.bf16.vlgmr.msra.gmra.mrb[100].mxu0 %vm1100_vm2, %v4731_v30  ;;  %v6409_v30 = vld [vmem:[%s7727_s17 + $0x38] sm:$0xff]  }
0x24b9   : > { %6249 = vmatpush3.bf16.msra.mxu0 %v6406_v18 }
0x24ba   : > { %6250 = vmatprep.subr.bf16.mxu0 %v6407_v9 }
0x24bd   : > { %6251 = vmatpush3.bf16.msra.mxu0 %v6407_v9 }
0x24be   : > { %6252 = vmatprep.subr.bf16.mxu0 %v6408_v4 }
0x24c1   : > { %6253 = vmatpush3.bf16.msra.mxu0 %v6408_v4 }
0x24c2   : > { %6254 = vmatprep.subr.bf16.mxu0 %v6409_v30 }
0x24c5   : > { %6255 = vmatpush3.bf16.msra.mxu0 %v6409_v30 }
0x258b   : > { %v6238_v13 = vpop.f32.mrb[100].mxu0 }
0x258c   : > { %v4793_v31 = vadd.f32 %v6238_v13, %v7530_v32  ;;  %v4777_v33 = vpop.f32.mrb[101].mxu0  ;;  %v5600_v13 = vld [vmem:[%s7726_s16 + $0x1] ss:$0 sm:$0xff] }
0x258d   : > { %v4791_v34 = vadd.f32 %v4777_v33, %v7533_v20  ;;  %v6239_v2 = vpop.f32.mrb[102].mxu0 }
0x258e   : > { %v4780_v43 = vpop.f32.mrb[103].mxu0  ;;  %v4796_v39 = vadd.f32 %v4793_v31, %v7242_v37 }
0x258f   : > { %v4794_v40 = vadd.f32 %v4791_v34, %v7239_v22  ;;  %v4792_v41 = vadd.f32 %v4780_v43, %v7536_v35 }
0x2590   : > { %v4807_v61 = vadd.f32 %v5590_v36, %v4796_v39 }
0x2591   : > { %v7574_v14 = vadd.f32 %v5590_v36, %v4794_v40  ;;  %v4795_v48 = vadd.f32 %v4792_v41, %v7245_v38 }
0x2592   : > { %v4818_v47 = vsel %vm816_vm1, %v4807_v61, 0.0 }
0x2593   : > { %v4812_v32 = vsel %vm816_vm1, %v7574_v14, 0.0  ;;  %v4806_v20 = vadd.f32 %v5590_v36, %v4795_v48 }
0x2594   : > { %4813 = vadd.xlane.f32.xlu0 %v4812_v32 }
0x2595   : > { %v4815_v46 = vsel %vm816_vm1, %v4806_v20, 0.0 }
0x2596   : > { %4816 = vadd.xlane.f32.xlu1 %v4815_v46 }
0x2598   : > { %4819 = vadd.xlane.f32.xlu0 %v4818_v47 }
0x2621   : > { %v4814_v37 = vpop.xlane.xlu0 %4813 }
0x2622   : > { %v4821_v22 = vmul.f32 0.03125, %v4814_v37 }
0x2623   : > { %v4817_v49 = vpop.xlane.xlu1 %4816 }
0x2624   : > { %v4824_v35 = vsub.f32 %v7574_v14, %v4821_v22  ;;  %v4822_v50 = vmul.f32 0.03125, %v4817_v49 }
0x2625   : > { %v4820_v51 = vpop.xlane.xlu0 %4819 }
0x2626   : > { %v4825_v38 = vsub.f32 %v4806_v20, %v4822_v50  ;;  %v4823_v52 = vmul.f32 0.03125, %v4820_v51  ;;  %v4827_v53 = vmul.f32 %v4824_v35, %v4824_v35 }
0x2628   : > { %v4826_v54 = vsub.f32 %v4807_v61, %v4823_v52  ;;  %v4830_v21 = vsel %vm816_vm1, %v4827_v53, 0.0  ;;  %v4828_v60 = vmul.f32 %v4825_v38, %v4825_v38 }
0x2629   : > { %4831 = vadd.xlane.f32.xlu1 %v4830_v21 }
0x262a   : > { %v4833_v55 = vsel %vm816_vm1, %v4828_v60, 0.0  ;;  %v4829_v56 = vmul.f32 %v4826_v54, %v4826_v54 }
0x262b   : > { %4834 = vadd.xlane.f32.xlu0 %v4833_v55 }
0x262c   : > { %v4836_v57 = vsel %vm816_vm1, %v4829_v56, 0.0 }
0x262d   : > { %4837 = vadd.xlane.f32.xlu1 %v4836_v57 }
0x26b6   : > { %v4832_v45 = vpop.xlane.xlu1 %4831 }
0x26b7   : > { %v4839_v59 = vmul.f32 0.03125, %v4832_v45 }
0x26b8   : > { %v4835_v0 = vpop.xlane.xlu0 %4834 }
0x26b9   : > { %v4842_v42 = vadd.f32 1e-05, %v4839_v59  ;;  %v4840_v5 = vmul.f32 0.03125, %v4835_v0 }
0x26ba   : > { %v4838_v63 = vpop.xlane.xlu1 %4837 }
0x26bb   : > { %6538 = vrsqrt.f32 %v4842_v42  ;;  %v4843_v7 = vadd.f32 1e-05, %v4840_v5  ;;  %v4841_v62 = vmul.f32 0.03125, %v4838_v63 }
0x26bd   : > { %6540 = vrsqrt.f32 %v4843_v7  ;;  %v4844_v3 = vadd.f32 1e-05, %v4841_v62 }
0x26bf   : > { %6542 = vrsqrt.f32 %v4844_v3 }
0x26c5   : > { %v6539_v8 = vpop.eup %6538 }
0x26c6   : > { %v4848_v1 = vmul.f32 %v6539_v8, %v4824_v35 }
0x26c7   : > { %v6541_v15 = vpop.eup %6540 }
0x26c8   : > { %v4849_v12 = vmul.f32 %v6541_v15, %v4825_v38  ;;  %v4857_v6 = vmul.f32 %v5593_v10, %v4848_v1 }
0x26c9   : > { %v6543_v19 = vpop.eup %6542 }
0x26ca   : > { %v4850_v17 = vmul.f32 %v6543_v19, %v4826_v54  ;;  %v4858_v23 = vmul.f32 %v5593_v10, %v4849_v12  ;;  %v4866_v24 = vadd.f32 %v5594_v16, %v4857_v6 }
0x26cc   : > { %v4867_v11 = vadd.f32 %v5594_v16, %v4858_v23  ;;  %v4859_v26 = vmul.f32 %v5593_v10, %v4850_v17 }
0x26ce   : > { %v4869_v27 = vpack.c.bf16 %v4867_v11, %v4866_v24  ;;  %v4868_v28 = vadd.f32 %v5594_v16, %v4859_v26 }
0x26d0   : > { %6244 = vmatprep.mubr.msk.bf16.mxu1 %vm816_vm1, %v4869_v27  ;;  %v4870_v29 = vpack.c.bf16 %v4868_v28, %v4868_v28 }
0x26d2   : > { %6245 = vmatmul.mubr.msk.bf16.vlgmr.msra.gmra.mrb[100].mxu1 %vm816_vm1, %v4870_v29 }
0x27a5   : > { %v6246_v31 = vpop.f32.mrb[100].mxu1 }
0x27a6   : > { %v7614_v33 = vadd.f32 %v6246_v31, %v5600_v13  ;;  %v4936_v34 = vpop.f32.mrb[101].mxu1 }
0x27a7   : > { %v7616_v2 = vadd.f32 %v5600_v13, %v4936_v34  ;;  %v6247_v36 = vpop.f32.mrb[102].mxu1 }
0x27a8   : > { %v7619_v43 = vmul.f32 0.70710677, %v7614_v33  ;;  %v4939_v39 = vpop.f32.mrb[103].mxu1 }
0x27a9   : > { %v7622_v40 = vmul.f32 0.70710677, %v7616_v2  ;;  %v7624_v41 = vadd.f32 %v5600_v13, %v4939_v39 }
0x27aa   : > { %v4964_v48 = vand.u32 2147483647, %v7619_v43  ;;  %vm4958_vm9 = vcmp.ge.f32.partialorder %v7619_v43, 0.0 }
0x27ab   : > { %v4962_v32 = vand.u32 2147483647, %v7622_v40  ;;  %v7629_v61 = vmul.f32 0.70710677, %v7624_v41  ;;  %vm4956_vm10 = vcmp.ge.f32.partialorder %v7622_v40, 0.0  ;;  %v4961_v36 = vsel %vm4958_vm9, 1.0, %v6623_v25 }
0x27ac   : > { %v4967_v20 = vmul.f32 0.3275911, %v4964_v48  ;;  %v5006_v50 = vsub.f32 0.0, %v4964_v48 }
0x27ad   : > { %v4965_v46 = vmul.f32 0.3275911, %v4962_v32  ;;  %v4963_v37 = vand.u32 2147483647, %v7629_v61  ;;  %v5004_v51 = vsub.f32 0.0, %v4962_v32  ;;  %vm4957_vm11 = vcmp.ge.f32.partialorder %v7629_v61, 0.0 }
0x27ae   : > { %v4970_v47 = vadd.f32 1.0, %v4967_v20  ;;  %v5009_v52 = vmul.f32 %v5006_v50, %v4964_v48  ;;  %v4951_v50 = vmul.f32 0.5, %v7624_v41 }
0x27af   : > { %v4968_v22 = vadd.f32 1.0, %v4965_v46  ;;  %v4966_v49 = vmul.f32 0.3275911, %v4963_v37  ;;  %v5005_v53 = vsub.f32 0.0, %v4963_v37  ;;  %v5007_v60 = vmul.f32 %v5004_v51, %v4962_v32 }
0x27b0   : > { %6544 = vrcp.f32 %v4970_v47  ;;  %v5014_v44 = vmul.f32 1.442695, %v5009_v52  ;;  %v4959_v32 = vsel %vm4956_vm10, 1.0, %v6623_v25 }
0x27b1   : > { %6546 = vrcp.f32 %v4968_v22  ;;  %v4969_v35 = vadd.f32 1.0, %v4966_v49  ;;  %v5008_v45 = vmul.f32 %v5005_v53, %v4963_v37  ;;  %v5010_v0 = vmul.f32 1.442695, %v5007_v60 }
0x27b2   : > { %v4960_v37 = vsel %vm4957_vm11, 1.0, %v6623_v25  ;;  %v4952_v49 = vmul.f32 0.5, %v7614_v33  ;;  %v5614_v25 = vld [vmem:[%s7728_s18 + $0x1] ss:$0 sm:$0xff] }
0x27b3   : > { %6548 = vrcp.f32 %v4969_v35  ;;  %v5012_v3 = vmul.f32 1.442695, %v5008_v45  ;;  %v4950_v35 = vmul.f32 0.5, %v7616_v2 }
0x27b4   : > { %6550 = vpow2.f32 %v5014_v44 }
0x27b5   : > { %6552 = vpow2.f32 %v5010_v0  ;;  %v6410_v0 = vld [vmem:[%s7731_s21] sm:$0xff]  }
0x27b6   : > { %6554 = vpow2.f32 %v5012_v3  ;;  %v5127_v3 = vld [vmem:[%s7729_s19] sm:$0x1] }
0x27ba   : > { %v6545_v38 = vpop.eup %6544 }
0x27bb   : > { %v6547_v54 = vpop.eup %6546  ;;  %v4979_v21 = vmul.f32 1.0614054, %v6545_v38 }
0x27bc   : > { %v4977_v55 = vmul.f32 1.0614054, %v6547_v54 }
0x27bd   : > { %v4982_v56 = vadd.f32 -1.4531521, %v4979_v21  ;;  %v6549_v57 = vpop.eup %6548 }
0x27be   : > { %v4980_v58 = vadd.f32 -1.4531521, %v4977_v55  ;;  %v4978_v42 = vmul.f32 1.0614054, %v6549_v57  ;;  %v6551_v28 = vpop.eup %6550 }
0x27bf   : > { %v4985_v59 = vmul.f32 %v6545_v38, %v4982_v56  ;;  %v6553_v18 = vpop.eup %6552 }
0x27c0   : > { %v4983_v5 = vmul.f32 %v6547_v54, %v4980_v58  ;;  %v4981_v7 = vadd.f32 -1.4531521, %v4978_v42  ;;  %v6555_v34 = vpop.eup %6554  ;;  %v6624_v42 = vmov 0.0  }
0x27c1   : > { %v4988_v63 = vadd.f32 1.4214138, %v4985_v59  ;;  %6260 = vmatprep.subr.bf16.mxu1 %v6624_v42  ;;  %6264 = vmatprep.mubr.msk.bf16.mxu1 %vm6625_vm13, %v6624_v42 }
0x27c2   : > { %v4986_v62 = vadd.f32 1.4214138, %v4983_v5  ;;  %v4984_v10 = vmul.f32 %v6549_v57, %v4981_v7  ;;  %6261 = vmatpush3.bf16.msra.mxu1 %v6410_v0 }
0x27c3   : > { %v4991_v8 = vmul.f32 %v6545_v38, %v4988_v63  ;;  %6262 = vmatprep.subr.bf16.mxu1 %v6624_v42 }
0x27c4   : > { %v4989_v1 = vmul.f32 %v6547_v54, %v4986_v62  ;;  %v4987_v12 = vadd.f32 1.4214138, %v4984_v10  ;;  %v5128_v10 = vld [vmem:[%s7730_s20] sm:$0x1] }
0x27c5   : > { %v4994_v15 = vadd.f32 -0.28449672, %v4991_v8 }
0x27c6   : > { %v4992_v6 = vadd.f32 -0.28449672, %v4989_v1  ;;  %v4990_v16 = vmul.f32 %v6549_v57, %v4987_v12 }
0x27c7   : > { %v4997_v19 = vmul.f32 %v6545_v38, %v4994_v15 }
0x27c8   : > { %v4995_v17 = vmul.f32 %v6547_v54, %v4992_v6  ;;  %v4993_v24 = vadd.f32 -0.28449672, %v4990_v16  ;;  %v5150_v6 = vld [vmem:[%s7732_s22] sm:$0x1] }
0x27c9   : > { %v5000_v23 = vadd.f32 0.2548296, %v4997_v19 }
0x27ca   : > { %v4998_v11 = vadd.f32 0.2548296, %v4995_v17  ;;  %v4996_v27 = vmul.f32 %v6549_v57, %v4993_v24 }
0x27cb   : > { %v5003_v26 = vmul.f32 %v6545_v38, %v5000_v23 }
0x27cc   : > { %v5001_v29 = vmul.f32 %v6547_v54, %v4998_v11  ;;  %v4999_v4 = vadd.f32 0.2548296, %v4996_v27 }
0x27cd   : > { %v5018_v9 = vmul.f32 %v6551_v28, %v5003_v26 }
0x27ce   : > { %v5016_v30 = vmul.f32 %v6553_v18, %v5001_v29  ;;  %v5002_v31 = vmul.f32 %v6549_v57, %v4999_v4 }
0x27cf   : > { %v5021_v13 = vsub.f32 1.0, %v5018_v9 }
0x27d0   : > { %v5019_v39 = vsub.f32 1.0, %v5016_v30  ;;  %v5017_v20 = vmul.f32 %v6555_v34, %v5002_v31 }
0x27d1   : > { %v5024_v48 = vmul.f32 %v5021_v13, %v4961_v36 }
0x27d2   : > { %v5022_v46 = vmul.f32 %v5019_v39, %v4959_v32  ;;  %v5020_v47 = vsub.f32 1.0, %v5017_v20 }
0x27d3   : > { %v5027_v43 = vadd.f32 1.0, %v5024_v48 }
0x27d4   : > { %v5025_v22 = vadd.f32 1.0, %v5022_v46  ;;  %v5023_v40 = vmul.f32 %v5020_v47, %v4960_v37 }
0x27d5   : > { %v5030_v38 = vmul.f32 %v5027_v43, %v4952_v49 }
0x27d6   : > { %v5026_v51 = vadd.f32 1.0, %v5023_v40  ;;  %v5028_v52 = vmul.f32 %v5025_v22, %v4950_v35 }
0x27d7   : > { %v5032_v61 = vpack.c.bf16 %v5030_v38, %v5030_v38 }
0x27d8   : > { %v5029_v53 = vmul.f32 %v5026_v51, %v4951_v50 }
0x27da   : > { %v5031_v54 = vpack.c.bf16 %v5029_v53, %v5028_v52 }
0x27dc   : > { %6256 = vmatprep.mubr.msk.bf16.mxu0 %vm755_vm0, %v5031_v54 }
0x27dd   : > { %6257 = vmatmul.mubr.msk.bf16.vlgmr.msra.gmra.mrb[104].mxu0 %vm755_vm0, %v5032_v61 }
0x28b0   : > { %v6258_v21 = vpop.f32.mrb[104].mxu0 }
0x28b1   : > { %v5114_v33 = vpop.f32.mrb[105].mxu0 }
0x28b2   : > { %v5115_v60 = vadd.f32 %v5614_v25, %v5114_v33  ;;  %v6259_v2 = vpop.f32.mrb[106].mxu0 }
0x28b3   : > { %v5117_v55 = vpop.f32.mrb[107].mxu0 }
0x28b4   : > { %v5126_v41 = vadd.f32 %v5115_v60, %v7574_v14  ;;  %v6411_v14 = vld [vmem:[%s7731_s21 + $0x8] sm:$0xff]  }
0x28b5   : > { %6263 = vmatpush3.bf16.msra.mxu1 %v6411_v14 }
0x28b6   : > { %v5130_v56 = vsel %vm5129_vm12, %v5126_v41, 0.0 }
0x28b7   : > { %5131 = vadd.xlane.f32.xlu0 %v5130_v56 }
0x2944   : > { %v5132_v57 = vpop.xlane.xlu0 %5131 }
0x2945   : > { %v5133_v44 = vmul.f32 0.03125, %v5132_v57 }
0x2947   : > { %v5134_v58 = vsub.f32 %v5126_v41, %v5133_v44 }
0x2949   : > { %v5135_v45 = vmul.f32 %v5134_v58, %v5134_v58 }
0x294b   : > { %v5136_v59 = vsel %vm5129_vm12, %v5135_v45, 0.0 }
0x294c   : > { %5137 = vadd.xlane.f32.xlu1 %v5136_v59 }
0x29d9   : > { %v5138_v5 = vpop.xlane.xlu1 %5137 }
0x29da   : > { %v5139_v63 = vmul.f32 0.03125, %v5138_v5 }
0x29dc   : > { %v5140_v7 = vadd.f32 1e-05, %v5139_v63 }
0x29de   : > { %6556 = vrsqrt.f32 %v5140_v7 }
0x29e8   : > { %v6557_v62 = vpop.eup %6556 }
0x29e9   : > { %v5142_v8 = vmul.f32 %v6557_v62, %v5134_v58 }
0x29eb   : > { %v5143_v1 = vmul.f32 %v5142_v8, %v5127_v3 }
0x29ed   : > { %v5144_v15 = vadd.f32 %v5143_v1, %v5128_v10 }
0x29ef   : > { %v5145_v12 = vpack.c.bf16 %v5144_v15, %v5144_v15 }
0x29f1   : > { %6265 = vmatmul.mubr.msk.bf16.vlgmr.msra.gmra.mrb[104].mxu1 %vm816_vm1, %v5145_v12 }
0x2ac4   : > { %v5200_v19 = vpop.f32.mrb[104].mxu1 }
0x2ac5   : > { %v5201_v16 = vadd.f32 %v5200_v19, %v5150_v6  ;;  %v6266_v17 = vpop.f32.mrb[105].mxu1 }
0x2ac6   : > { %v5203_v23 = vpop.f32.mrb[106].mxu1 }
0x2ac7   : > { %5206 = vst [vmem:[%s702_s2] sm:$0x1] %v5201_v16  ;;  %v6267_v24 = vpop.f32.mrb[107].mxu1 }
0x2ac8   : > { %6571 = shalt.err (!%p6568_p3)
}
0x2ac9   : > { %s6572_s2 = scalar_lea.hbm %s7668_s6, 16  ;;  %s6576_s24 = scalar_lea.hbm %s7781_s28, 32 }
0x2aca   : > { %p6573_p4 = scmp.ne.s32.totalorder %s7668_s6, %s6572_s2  ;;  %p6577_p9 = scmp.lt.u32.totalorder %s7668_s6, %s7781_s28 }
0x2acb   : > { %p6578_p10 = scmp.lt.u32.totalorder %s6576_s24, %s6572_s2  ;;  %p6580_p12 = scmp.lt.u32.totalorder %s6572_s2, %s7668_s6 }
0x2acc   : > { %p6574_p7 = pnand %p6573_p4, %p6785_p5 }
0x2acd   : > { %p6579_p11 = por %p6578_p10, %p6577_p9 }
0x2ace   : > { %p6575_p8 = pneg %p6574_p7 }
0x2acf   : > { %p6581_p13 = por %p6580_p12, %p6579_p11 }
0x2ad1   : > { %p6582_p0 = pnand %p6581_p13, %p6575_p8 }
0x2ad3   : > { %6585 = shalt.err (!%p6582_p0)
}
0x2ad4   : > { %6301 = dma.vmem_to_hbm [thread:$0]  (%p6785_p5), %s7670_s0, 16, %s7668_s6, %s5208_s25  }
0x2ad5 PF: > { %s7782_s5 = sld [smem:[#allocation7_spill]]  ;;  %s7783_s1 = sld [smem:[#allocation5_spill]] }
0x2adb   : > { %p6307_p1 = scmp.ge.s32.totalorder %s7782_s5, 2  ;;  %s5232_s3 = sand.u32 1, %s7783_s1  }
0x2adc   : > { %s5233_s4 = scalar_lea.sflag [#allocation3], %s5232_s3 }
0x2add   : > { %p6304_p2 = pnand %p6307_p1, %p6789_p6 }
0x2adf   : > { %6603 = dma.done.wait (!%p6304_p2), %s5233_s4, 16  }
0x2ae0   : > { %6605 = vsyncadd (!%p6304_p2), %s5233_s4, 4294967280  ;;  %s7785_s25 = sld [smem:[#allocation8_spill]]  ;;  %s7786_s2 = sld [smem:[#allocation6_spill]] }
0x2ae1   : > { %s7787_s24 = sld [smem:[#allocation9_spill]]  ;;  %s7788_s4 = smov %s6612_s30 }
0x2ae6   : > { %p33_p3 = scmp.ge.s32.totalorder %s7785_s25, 4   ;;  %s7789_s30 = smov %s7786_s2 }
0x2ae8   :  { %35 = sbr.rel (!%p33_p3) target bundleno = 14 (0xe), region = 205 }
0x2aef   :  { %5237 = vsyncpa [#allocation3], 1 }
0x2af0   :  { %5239 = vsyncpa [#allocation3 + $0x1], 1 }

</bundles_post_ra>
